<compile_context>
chip_gen: v5e
topology: v5e:2x2
jax: 0.10.0
libtpu: 0.0.40
codegen_flags: <defaults>
</compile_context>

<pallas_src>
import functools

import jax
import jax.numpy as jnp
from jax.experimental import pallas as pl
from jax.experimental.pallas import tpu as pltpu

EPS = 1e-5  # nn.LayerNorm default


def _layer_norm(x, g, b):
    mu = jnp.mean(x, axis=-1, keepdims=True)
    var = jnp.mean(jnp.square(x - mu), axis=-1, keepdims=True)
    return (x - mu) * jax.lax.rsqrt(var + EPS) * g + b


def _erf(x):
    # Abramowitz & Stegun 7.1.26 rational approximation, with the rational
    # term's divide replaced by an approx EUP reciprocal (adds ~1e-4 rel err;
    # fine for inference and consistent with bf16 MXU operands elsewhere).
    p = 0.3275911
    a1, a2, a3, a4, a5 = (0.254829592, -0.284496736, 1.421413741,
                          -1.453152027, 1.061405429)
    ax = jnp.abs(x)
    t = pl.reciprocal(1.0 + p * ax, approx=True)
    poly = ((((a5 * t + a4) * t + a3) * t + a2) * t + a1) * t
    y = 1.0 - poly * jnp.exp(-(ax * ax))
    return jnp.where(x < 0.0, -y, y)


def _gelu(x):
    # erf-form GELU (matches nn.GELU() up to the approx-reciprocal error).
    return 0.5 * x * (1.0 + _erf(x * 0.7071067811865476))


# --------------------------------------------------------------------------
# Fused per-image kernel: feat_res4 amax + PatchMerging + `depth` Swin blocks
# + feat_res5 amax.  One grid step == one image (one 8x8 attention window).
# --------------------------------------------------------------------------
def _swin_head_kernel(xm_ref, pm_g_ref, pm_b_ref, pm_w_ref,
                      g1_ref, b1_ref, wqkv_ref, bqkv_ref, relb_ref,
                      wp_ref, bp_ref, g2_ref, b2_ref,
                      w1_ref, b1m_ref, w2_ref, b2m_ref,
                      res4_ref, res5_ref,
                      *, num_heads, depth, tokens, dim):
    bf16 = jnp.bfloat16
    c2 = 2 * dim
    hd = c2 // num_heads

    xm = xm_ref[0]                                         # (T, 4C) f32

    # ---- feat_res4: amax over H*W of the raw input.  xm already holds every
    # spatial position of this image (4 positions per row, 4 C-lane groups),
    # so max over rows then over the 4 lane groups == amax over (H, W). ----
    m = jnp.max(xm, axis=0, keepdims=True)                 # (1, 4C)
    r4 = m[:, 0:dim]
    for g in range(1, 4):                                  # static (4 groups)
        r4 = jnp.maximum(r4, m[:, g * dim:(g + 1) * dim])
    res4_ref[0] = r4

    # ---- PatchMerging core: LayerNorm(4C) + Linear(4C -> 2C, no bias) ----
    xn = _layer_norm(xm, pm_g_ref[...], pm_b_ref[...])
    tok = jnp.dot(xn.astype(bf16), pm_w_ref[...],
                  preferred_element_type=jnp.float32)      # (T, 2C) f32

    for d in range(depth):                                 # static unroll (2)
        # ---------- window attention branch ----------
        xn1 = _layer_norm(tok, g1_ref[d], b1_ref[d])
        # Fused q/k/v projection: one (T, C2) @ (C2, 3*C2) MXU pass.
        # Column layout: [q_h0..q_hH | k_h0..k_hH | v_h0..v_hH], q pre-scaled.
        qkv = jnp.dot(xn1.astype(bf16), wqkv_ref[d],
                      preferred_element_type=jnp.float32) + bqkv_ref[d]
        relb_d = relb_ref[d]                               # (T, heads*T)

        head_outs = []
        for h in range(num_heads):                         # static unroll (2)
            q = qkv[:, h * hd:(h + 1) * hd]                # (T, hd), scaled
            k = qkv[:, c2 + h * hd:c2 + (h + 1) * hd]
            v = qkv[:, 2 * c2 + h * hd:2 * c2 + (h + 1) * hd]
            s = jax.lax.dot_general(q.astype(bf16), k.astype(bf16),
                                    (((1,), (1,)), ((), ())),
                                    preferred_element_type=jnp.float32)
            s = s + relb_d[:, h * tokens:(h + 1) * tokens]
            s = s - jnp.max(s, axis=-1, keepdims=True)
            p = jnp.exp(s)
            attn = p * pl.reciprocal(jnp.sum(p, axis=-1, keepdims=True),
                                     approx=True)
            head_outs.append(jnp.dot(attn.astype(bf16), v.astype(bf16),
                                     preferred_element_type=jnp.float32))
        o = head_outs[0] if num_heads == 1 else jnp.concatenate(head_outs, -1)
        # Single output projection (K = C2), StochasticDepth = identity (eval).
        tok = tok + jnp.dot(o.astype(bf16), wp_ref[d],
                            preferred_element_type=jnp.float32) + bp_ref[d]

        # ---------- MLP branch ----------
        xn2 = _layer_norm(tok, g2_ref[d], b2_ref[d])
        hmid = jnp.dot(xn2.astype(bf16), w1_ref[d],
                       preferred_element_type=jnp.float32) + b1m_ref[d]
        hmid = _gelu(hmid)
        tok = tok + jnp.dot(hmid.astype(bf16), w2_ref[d],
                            preferred_element_type=jnp.float32) + b2m_ref[d]

    # ---- feat_res5: amax over the (H/2 * W/2) tokens of the head output ----
    res5_ref[0] = jnp.max(tok, axis=0, keepdims=True)


# --------------------------------------------------------------------------
# Forward wrapper (layout plumbing in plain JAX, all hot work in one kernel).
# --------------------------------------------------------------------------
def swin_head_forward(x_nchw, params, *, num_heads):
    N, C, H, W = x_nchw.shape
    x_nhwc = jnp.transpose(x_nchw, (0, 2, 3, 1))           # permute(0,2,3,1)

    # torchvision PatchMerging 2x2 neighbourhood gather (x0,x1,x2,x3 order).
    x0 = x_nhwc[:, 0::2, 0::2, :]
    x1 = x_nhwc[:, 1::2, 0::2, :]
    x2 = x_nhwc[:, 0::2, 1::2, :]
    x3 = x_nhwc[:, 1::2, 1::2, :]
    xm = jnp.concatenate([x0, x1, x2, x3], axis=-1)         # (N, H/2, W/2, 4C)

    Hp, Wp = H // 2, W // 2
    T = Hp * Wp
    C2 = 2 * C
    xm = xm.reshape(N, T, 4 * C)                            # (N, 64, 128)

    pm = params['patch_merge']
    blk = params['blocks']
    depth = blk['g1'].shape[0]                              # static (shape)

    def const_spec(a):
        nd = a.ndim
        return pl.BlockSpec(a.shape, lambda b, _nd=nd: (0,) * _nd)

    weights = (pm['g'], pm['b'], pm['w'],
               blk['g1'], blk['b1'], blk['wqkv'], blk['bqkv'], blk['relb'],
               blk['wp'], blk['bp'], blk['g2'], blk['b2'],
               blk['w1'], blk['b1m'], blk['w2'], blk['b2m'])

    kern = functools.partial(_swin_head_kernel, num_heads=num_heads,
                             depth=depth, tokens=T, dim=C)

    res4, res5 = pl.pallas_call(
        kern,
        grid_spec=pltpu.PrefetchScalarGridSpec(
            num_scalar_prefetch=0,
            grid=(N,),
            in_specs=[pl.BlockSpec((1, T, 4 * C), lambda b: (b, 0, 0))]
                     + [const_spec(w) for w in weights],
            out_specs=(pl.BlockSpec((1, 1, C), lambda b: (b, 0, 0)),
                       pl.BlockSpec((1, 1, C2), lambda b: (b, 0, 0))),
        ),
        out_shape=(jax.ShapeDtypeStruct((N, 1, C), jnp.float32),
                   jax.ShapeDtypeStruct((N, 1, C2), jnp.float32)),
        compiler_params=pltpu.CompilerParams(
            dimension_semantics=("parallel",)),
    )(xm, *weights)

    feat_res4 = jnp.transpose(res4, (0, 2, 1))[..., None]   # (N, C, 1, 1)
    feat_res5 = jnp.transpose(res5, (0, 2, 1))[..., None]   # (N, 2C, 1, 1)
    return {'feat_res4': feat_res4, 'feat_res5': feat_res5}


# --------------------------------------------------------------------------
# Deterministic synthetic parameters (stacked over depth, fused layouts,
# matmul weights in bf16, q-scale folded).
# To load real torchvision weights:
#   pm.w                  = patch_merge.reduction.weight.T
#   wqkv[d]               = blocks[d].attn.qkv.weight.T      (cols = q|k|v,
#                           heads contiguous within each), q cols * hd**-0.5
#   bqkv[d]               = blocks[d].attn.qkv.bias, q part * hd**-0.5
#   relb[d, :, h*T:(h+1)*T] = gathered dense relative_position_bias[h]
#   wp[d]                 = blocks[d].attn.proj.weight.T
#   w1[d]/w2[d]           = mlp[0].weight.T / mlp[3].weight.T
# --------------------------------------------------------------------------
def init_params(key, dim=32, num_heads=2, depth=2, mlp_ratio=4, win_tokens=64):
    C2 = 2 * dim
    hd = C2 // num_heads
    hidden = C2 * mlp_ratio
    keys = iter(jax.random.split(key, 16))

    def w(shape):
        return (0.02 * jax.random.normal(next(keys), shape)).astype(jnp.float32)

    # fold 1/sqrt(hd) into the q third of the fused qkv weight + bias
    q_scale = float(hd) ** -0.5
    col_scale = jnp.concatenate(
        [jnp.full((C2,), q_scale, jnp.float32),
         jnp.ones((2 * C2,), jnp.float32)])
    wqkv = (w((depth, C2, 3 * C2)) * col_scale).astype(jnp.bfloat16)
    bqkv = w((depth, 1, 3 * C2)) * col_scale

    return {
        'patch_merge': {
            'g': jnp.ones((1, 4 * dim), jnp.float32),
            'b': jnp.zeros((1, 4 * dim), jnp.float32),
            'w': w((4 * dim, C2)).astype(jnp.bfloat16),
        },
        'blocks': {
            'g1': jnp.ones((depth, 1, C2), jnp.float32),
            'b1': jnp.zeros((depth, 1, C2), jnp.float32),
            'wqkv': wqkv,
            'bqkv': bqkv,
            'relb': w((depth, win_tokens, num_heads * win_tokens)),
            'wp': w((depth, C2, C2)).astype(jnp.bfloat16),
            'bp': w((depth, 1, C2)),
            'g2': jnp.ones((depth, 1, C2), jnp.float32),
            'b2': jnp.zeros((depth, 1, C2), jnp.float32),
            'w1': w((depth, C2, hidden)).astype(jnp.bfloat16),
            'b1m': w((depth, 1, hidden)),
            'w2': w((depth, hidden, C2)).astype(jnp.bfloat16),
            'b2m': w((depth, 1, C2)),
        },
    }


if __name__ == "__main__":
    key = jax.random.PRNGKey(0)
    k_x, k_p = jax.random.split(key)

    N, C, H, W = 2, 32, 16, 16          # small, Swin-consistent shapes
    x = jax.random.normal(k_x, (N, C, H, W), dtype=jnp.float32)

    num_heads = 2
    params = init_params(k_p, dim=C, num_heads=num_heads, depth=2, mlp_ratio=4,
                         win_tokens=(H // 2) * (W // 2))
    out_channels = [C, 2 * C]           # mirrors SwinHead.out_channels

    fwd = jax.jit(functools.partial(swin_head_forward, num_heads=num_heads))
    out = fwd(x, params)
    jax.block_until_ready(out)

    assert out['feat_res4'].shape == (N, C, 1, 1)
    assert out['feat_res5'].shape == (N, 2 * C, 1, 1)
    assert bool(jnp.all(jnp.isfinite(out['feat_res4'])))
    assert bool(jnp.all(jnp.isfinite(out['feat_res5'])))
    print("KERNEL_OK")
</pallas_src>

<mosaic_0001>
module attributes {stable_mosaic.version = 11 : i64} {
  func.func @_swin_head_kernel(%arg0: i32, %arg1: memref<1x64x128xf32, #tpu.memory_space<vmem>>, %arg2: memref<1x128xf32, #tpu.memory_space<vmem>>, %arg3: memref<1x128xf32, #tpu.memory_space<vmem>>, %arg4: memref<128x64xbf16, #tpu.memory_space<vmem>>, %arg5: memref<2x1x64xf32, #tpu.memory_space<vmem>>, %arg6: memref<2x1x64xf32, #tpu.memory_space<vmem>>, %arg7: memref<2x64x192xbf16, #tpu.memory_space<vmem>>, %arg8: memref<2x1x192xf32, #tpu.memory_space<vmem>>, %arg9: memref<2x64x128xf32, #tpu.memory_space<vmem>>, %arg10: memref<2x64x64xbf16, #tpu.memory_space<vmem>>, %arg11: memref<2x1x64xf32, #tpu.memory_space<vmem>>, %arg12: memref<2x1x64xf32, #tpu.memory_space<vmem>>, %arg13: memref<2x1x64xf32, #tpu.memory_space<vmem>>, %arg14: memref<2x64x256xbf16, #tpu.memory_space<vmem>>, %arg15: memref<2x1x256xf32, #tpu.memory_space<vmem>>, %arg16: memref<2x256x64xbf16, #tpu.memory_space<vmem>>, %arg17: memref<2x1x64xf32, #tpu.memory_space<vmem>>, %arg18: memref<1x1x32xf32, #tpu.memory_space<vmem>>, %arg19: memref<1x1x64xf32, #tpu.memory_space<vmem>>) attributes {dimension_semantics = [#tpu.dimension_semantics<parallel>], iteration_bounds = array<i64: 2>, scalar_prefetch = 0 : i64, scratch_operands = 0 : i64, tpu.core_type = #tpu.core_type<tc>, window_params = [{transform_indices = @transform_0, window_bounds = array<i64: 1, 64, 128>}, {pipeline_mode = #tpu.pipeline_mode<synchronous>, transform_indices = @transform_1, window_bounds = array<i64: 1, 128>}, {pipeline_mode = #tpu.pipeline_mode<synchronous>, transform_indices = @transform_2, window_bounds = array<i64: 1, 128>}, {pipeline_mode = #tpu.pipeline_mode<synchronous>, transform_indices = @transform_3, window_bounds = array<i64: 128, 64>}, {pipeline_mode = #tpu.pipeline_mode<synchronous>, transform_indices = @transform_4, window_bounds = array<i64: 2, 1, 64>}, {pipeline_mode = #tpu.pipeline_mode<synchronous>, transform_indices = @transform_5, window_bounds = array<i64: 2, 1, 64>}, {pipeline_mode = #tpu.pipeline_mode<synchronous>, transform_indices = @transform_6, window_bounds = array<i64: 2, 64, 192>}, {pipeline_mode = #tpu.pipeline_mode<synchronous>, transform_indices = @transform_7, window_bounds = array<i64: 2, 1, 192>}, {pipeline_mode = #tpu.pipeline_mode<synchronous>, transform_indices = @transform_8, window_bounds = array<i64: 2, 64, 128>}, {pipeline_mode = #tpu.pipeline_mode<synchronous>, transform_indices = @transform_9, window_bounds = array<i64: 2, 64, 64>}, {pipeline_mode = #tpu.pipeline_mode<synchronous>, transform_indices = @transform_10, window_bounds = array<i64: 2, 1, 64>}, {pipeline_mode = #tpu.pipeline_mode<synchronous>, transform_indices = @transform_11, window_bounds = array<i64: 2, 1, 64>}, {pipeline_mode = #tpu.pipeline_mode<synchronous>, transform_indices = @transform_12, window_bounds = array<i64: 2, 1, 64>}, {pipeline_mode = #tpu.pipeline_mode<synchronous>, transform_indices = @transform_13, window_bounds = array<i64: 2, 64, 256>}, {pipeline_mode = #tpu.pipeline_mode<synchronous>, transform_indices = @transform_14, window_bounds = array<i64: 2, 1, 256>}, {pipeline_mode = #tpu.pipeline_mode<synchronous>, transform_indices = @transform_15, window_bounds = array<i64: 2, 256, 64>}, {pipeline_mode = #tpu.pipeline_mode<synchronous>, transform_indices = @transform_16, window_bounds = array<i64: 2, 1, 64>}, {transform_indices = @transform_17, window_bounds = array<i64: 1, 1, 32>}, {transform_indices = @transform_18, window_bounds = array<i64: 1, 1, 64>}]} {
    %c0 = arith.constant 0 : index
    %c0_0 = arith.constant 0 : index
    %c0_1 = arith.constant 0 : index
    %0 = vector.load %arg1[%c0, %c0_0, %c0_1] : memref<1x64x128xf32, #tpu.memory_space<vmem>>, vector<1x64x128xf32>
    %1 = vector.shape_cast %0 : vector<1x64x128xf32> to vector<64x128xf32>
    %cst = arith.constant dense<0xFF800000> : vector<128xf32>
    %2 = vector.multi_reduction <maximumf>, %1, %cst [0] : vector<64x128xf32> to vector<128xf32>
    %3 = vector.shape_cast %2 : vector<128xf32> to vector<1x128xf32>
    %4 = vector.extract_strided_slice %3 {offsets = [0, 0], sizes = [1, 32], strides = [1, 1]} : vector<1x128xf32> to vector<1x32xf32>
    %5 = vector.extract_strided_slice %3 {offsets = [0, 32], sizes = [1, 32], strides = [1, 1]} : vector<1x128xf32> to vector<1x32xf32>
    %6 = arith.maximumf %4, %5 : vector<1x32xf32>
    %7 = vector.extract_strided_slice %3 {offsets = [0, 64], sizes = [1, 32], strides = [1, 1]} : vector<1x128xf32> to vector<1x32xf32>
    %8 = arith.maximumf %6, %7 : vector<1x32xf32>
    %9 = vector.extract_strided_slice %3 {offsets = [0, 96], sizes = [1, 32], strides = [1, 1]} : vector<1x128xf32> to vector<1x32xf32>
    %10 = arith.maximumf %8, %9 : vector<1x32xf32>
    %c0_2 = arith.constant 0 : index
    %c0_3 = arith.constant 0 : index
    %c0_4 = arith.constant 0 : index
    %11 = vector.load %arg18[%c0_2, %c0_3, %c0_4] : memref<1x1x32xf32, #tpu.memory_space<vmem>>, vector<1x1x32xf32>
    %12 = vector.shape_cast %11 : vector<1x1x32xf32> to vector<1x32xf32>
    %13 = vector.shape_cast %10 : vector<1x32xf32> to vector<1x1x32xf32>
    tpu.vector_store %arg18[%c0_2, %c0_3, %c0_4], %13 {strides = array<i32>} : memref<1x1x32xf32, #tpu.memory_space<vmem>>, vector<1x1x32xf32>,
    %c0_5 = arith.constant 0 : index
    %c0_6 = arith.constant 0 : index
    %14 = vector.load %arg2[%c0_5, %c0_6] : memref<1x128xf32, #tpu.memory_space<vmem>>, vector<1x128xf32>
    %c0_7 = arith.constant 0 : index
    %c0_8 = arith.constant 0 : index
    %15 = vector.load %arg3[%c0_7, %c0_8] : memref<1x128xf32, #tpu.memory_space<vmem>>, vector<1x128xf32>
    %cst_9 = arith.constant dense<0.000000e+00> : vector<64xf32>
    %16 = vector.multi_reduction <add>, %1, %cst_9 [1] : vector<64x128xf32> to vector<64xf32>
    %17 = vector.shape_cast %16 : vector<64xf32> to vector<64x1xf32>
    %cst_10 = arith.constant 1.280000e+02 : f32
    %18 = vector.broadcast %cst_10 : f32 to vector<64x1xf32>
    %19 = arith.divf %17, %18 : vector<64x1xf32>
    %20 = vector.broadcast %19 : vector<64x1xf32> to vector<64x128xf32>
    %21 = arith.subf %1, %20 : vector<64x128xf32>
    %22 = arith.mulf %21, %21 : vector<64x128xf32>
    %cst_11 = arith.constant dense<0.000000e+00> : vector<64xf32>
    %23 = vector.multi_reduction <add>, %22, %cst_11 [1] : vector<64x128xf32> to vector<64xf32>
    %24 = vector.shape_cast %23 : vector<64xf32> to vector<64x1xf32>
    %cst_12 = arith.constant 1.280000e+02 : f32
    %25 = vector.broadcast %cst_12 : f32 to vector<64x1xf32>
    %26 = arith.divf %24, %25 : vector<64x1xf32>
    %27 = vector.broadcast %19 : vector<64x1xf32> to vector<64x128xf32>
    %28 = arith.subf %1, %27 : vector<64x128xf32>
    %cst_13 = arith.constant 9.99999974E-6 : f32
    %29 = vector.broadcast %cst_13 : f32 to vector<64x1xf32>
    %30 = arith.addf %26, %29 : vector<64x1xf32>
    %31 = math.rsqrt %30 : vector<64x1xf32>
    %32 = vector.broadcast %31 : vector<64x1xf32> to vector<64x128xf32>
    %33 = arith.mulf %28, %32 : vector<64x128xf32>
    %34 = vector.broadcast %14 : vector<1x128xf32> to vector<64x128xf32>
    %35 = arith.mulf %33, %34 : vector<64x128xf32>
    %36 = vector.broadcast %15 : vector<1x128xf32> to vector<64x128xf32>
    %37 = arith.addf %35, %36 : vector<64x128xf32>
    %38 = arith.truncf %37 : vector<64x128xf32> to vector<64x128xbf16>
    %c0_14 = arith.constant 0 : index
    %c0_15 = arith.constant 0 : index
    %39 = vector.load %arg4[%c0_14, %c0_15] : memref<128x64xbf16, #tpu.memory_space<vmem>>, vector<128x64xbf16>
    %cst_16 = arith.constant dense<0.000000e+00> : vector<64x64xf32>
    %40 = tpu.matmul %38, %39, %cst_16 {dimension_numbers = #tpu.dot_dimension_numbers<[1], [0], [0], [1], [0, 0, 1, 1], [], []>} : vector<64x128xbf16>, vector<128x64xbf16>, vector<64x64xf32> -> vector<64x64xf32>
    %c0_17 = arith.constant 0 : index
    %c0_18 = arith.constant 0 : index
    %c0_19 = arith.constant 0 : index
    %41 = vector.load %arg5[%c0_17, %c0_18, %c0_19] : memref<2x1x64xf32, #tpu.memory_space<vmem>>, vector<1x1x64xf32>
    %42 = vector.shape_cast %41 : vector<1x1x64xf32> to vector<1x64xf32>
    %c0_20 = arith.constant 0 : index
    %c0_21 = arith.constant 0 : index
    %c0_22 = arith.constant 0 : index
    %43 = vector.load %arg6[%c0_20, %c0_21, %c0_22] : memref<2x1x64xf32, #tpu.memory_space<vmem>>, vector<1x1x64xf32>
    %44 = vector.shape_cast %43 : vector<1x1x64xf32> to vector<1x64xf32>
    %cst_23 = arith.constant dense<0.000000e+00> : vector<64xf32>
    %45 = vector.multi_reduction <add>, %40, %cst_23 [1] : vector<64x64xf32> to vector<64xf32>
    %46 = vector.shape_cast %45 : vector<64xf32> to vector<64x1xf32>
    %cst_24 = arith.constant 6.400000e+01 : f32
    %47 = vector.broadcast %cst_24 : f32 to vector<64x1xf32>
    %48 = arith.divf %46, %47 : vector<64x1xf32>
    %49 = vector.broadcast %48 : vector<64x1xf32> to vector<64x64xf32>
    %50 = arith.subf %40, %49 : vector<64x64xf32>
    %51 = arith.mulf %50, %50 : vector<64x64xf32>
    %cst_25 = arith.constant dense<0.000000e+00> : vector<64xf32>
    %52 = vector.multi_reduction <add>, %51, %cst_25 [1] : vector<64x64xf32> to vector<64xf32>
    %53 = vector.shape_cast %52 : vector<64xf32> to vector<64x1xf32>
    %cst_26 = arith.constant 6.400000e+01 : f32
    %54 = vector.broadcast %cst_26 : f32 to vector<64x1xf32>
    %55 = arith.divf %53, %54 : vector<64x1xf32>
    %56 = vector.broadcast %48 : vector<64x1xf32> to vector<64x64xf32>
    %57 = arith.subf %40, %56 : vector<64x64xf32>
    %cst_27 = arith.constant 9.99999974E-6 : f32
    %58 = vector.broadcast %cst_27 : f32 to vector<64x1xf32>
    %59 = arith.addf %55, %58 : vector<64x1xf32>
    %60 = math.rsqrt %59 : vector<64x1xf32>
    %61 = vector.broadcast %60 : vector<64x1xf32> to vector<64x64xf32>
    %62 = arith.mulf %57, %61 : vector<64x64xf32>
    %63 = vector.broadcast %42 : vector<1x64xf32> to vector<64x64xf32>
    %64 = arith.mulf %62, %63 : vector<64x64xf32>
    %65 = vector.broadcast %44 : vector<1x64xf32> to vector<64x64xf32>
    %66 = arith.addf %64, %65 : vector<64x64xf32>
    %67 = arith.truncf %66 : vector<64x64xf32> to vector<64x64xbf16>
    %c0_28 = arith.constant 0 : index
    %c0_29 = arith.constant 0 : index
    %c0_30 = arith.constant 0 : index
    %68 = vector.load %arg7[%c0_28, %c0_29, %c0_30] : memref<2x64x192xbf16, #tpu.memory_space<vmem>>, vector<1x64x192xbf16>
    %69 = vector.shape_cast %68 : vector<1x64x192xbf16> to vector<64x192xbf16>
    %cst_31 = arith.constant dense<0.000000e+00> : vector<64x192xf32>
    %70 = tpu.matmul %67, %69, %cst_31 {dimension_numbers = #tpu.dot_dimension_numbers<[1], [0], [0], [1], [0, 0, 1, 1], [], []>} : vector<64x64xbf16>, vector<64x192xbf16>, vector<64x192xf32> -> vector<64x192xf32>
    %c0_32 = arith.constant 0 : index
    %c0_33 = arith.constant 0 : index
    %c0_34 = arith.constant 0 : index
    %71 = vector.load %arg8[%c0_32, %c0_33, %c0_34] : memref<2x1x192xf32, #tpu.memory_space<vmem>>, vector<1x1x192xf32>
    %72 = vector.shape_cast %71 : vector<1x1x192xf32> to vector<1x192xf32>
    %73 = vector.broadcast %72 : vector<1x192xf32> to vector<64x192xf32>
    %74 = arith.addf %70, %73 : vector<64x192xf32>
    %c0_35 = arith.constant 0 : index
    %c0_36 = arith.constant 0 : index
    %c0_37 = arith.constant 0 : index
    %75 = vector.load %arg9[%c0_35, %c0_36, %c0_37] : memref<2x64x128xf32, #tpu.memory_space<vmem>>, vector<1x64x128xf32>
    %76 = vector.shape_cast %75 : vector<1x64x128xf32> to vector<64x128xf32>
    %77 = vector.extract_strided_slice %74 {offsets = [0, 0], sizes = [64, 32], strides = [1, 1]} : vector<64x192xf32> to vector<64x32xf32>
    %78 = vector.extract_strided_slice %74 {offsets = [0, 64], sizes = [64, 32], strides = [1, 1]} : vector<64x192xf32> to vector<64x32xf32>
    %79 = vector.extract_strided_slice %74 {offsets = [0, 128], sizes = [64, 32], strides = [1, 1]} : vector<64x192xf32> to vector<64x32xf32>
    %80 = arith.truncf %77 : vector<64x32xf32> to vector<64x32xbf16>
    %81 = arith.truncf %78 : vector<64x32xf32> to vector<64x32xbf16>
    %cst_38 = arith.constant dense<0.000000e+00> : vector<64x64xf32>
    %82 = tpu.matmul %80, %81, %cst_38 {dimension_numbers = #tpu.dot_dimension_numbers<[1], [1], [0], [0], [0, 0, 1, 0], [], []>} : vector<64x32xbf16>, vector<64x32xbf16>, vector<64x64xf32> -> vector<64x64xf32>
    %83 = vector.extract_strided_slice %76 {offsets = [0, 0], sizes = [64, 64], strides = [1, 1]} : vector<64x128xf32> to vector<64x64xf32>
    %84 = arith.addf %82, %83 : vector<64x64xf32>
    %cst_39 = arith.constant dense<0xFF800000> : vector<64xf32>
    %85 = vector.multi_reduction <maximumf>, %84, %cst_39 [1] : vector<64x64xf32> to vector<64xf32>
    %86 = vector.shape_cast %85 : vector<64xf32> to vector<64x1xf32>
    %87 = vector.broadcast %86 : vector<64x1xf32> to vector<64x64xf32>
    %88 = arith.subf %84, %87 : vector<64x64xf32>
    %89 = math.exp %88 : vector<64x64xf32>
    %cst_40 = arith.constant dense<0.000000e+00> : vector<64xf32>
    %90 = vector.multi_reduction <add>, %89, %cst_40 [1] : vector<64x64xf32> to vector<64xf32>
    %91 = vector.shape_cast %90 : vector<64xf32> to vector<64x1xf32>
    %92 = tpu.reciprocal %91 {approx = true} : vector<64x1xf32> -> vector<64x1xf32>
    %93 = vector.broadcast %92 : vector<64x1xf32> to vector<64x64xf32>
    %94 = arith.mulf %89, %93 : vector<64x64xf32>
    %95 = arith.truncf %94 : vector<64x64xf32> to vector<64x64xbf16>
    %96 = arith.truncf %79 : vector<64x32xf32> to vector<64x32xbf16>
    %cst_41 = arith.constant dense<0.000000e+00> : vector<64x32xf32>
    %97 = tpu.matmul %95, %96, %cst_41 {dimension_numbers = #tpu.dot_dimension_numbers<[1], [0], [0], [1], [0, 0, 1, 1], [], []>} : vector<64x64xbf16>, vector<64x32xbf16>, vector<64x32xf32> -> vector<64x32xf32>
    %98 = vector.extract_strided_slice %74 {offsets = [0, 32], sizes = [64, 32], strides = [1, 1]} : vector<64x192xf32> to vector<64x32xf32>
    %99 = vector.extract_strided_slice %74 {offsets = [0, 96], sizes = [64, 32], strides = [1, 1]} : vector<64x192xf32> to vector<64x32xf32>
    %100 = vector.extract_strided_slice %74 {offsets = [0, 160], sizes = [64, 32], strides = [1, 1]} : vector<64x192xf32> to vector<64x32xf32>
    %101 = arith.truncf %98 : vector<64x32xf32> to vector<64x32xbf16>
    %102 = arith.truncf %99 : vector<64x32xf32> to vector<64x32xbf16>
    %cst_42 = arith.constant dense<0.000000e+00> : vector<64x64xf32>
    %103 = tpu.matmul %101, %102, %cst_42 {dimension_numbers = #tpu.dot_dimension_numbers<[1], [1], [0], [0], [0, 0, 1, 0], [], []>} : vector<64x32xbf16>, vector<64x32xbf16>, vector<64x64xf32> -> vector<64x64xf32>
    %104 = vector.extract_strided_slice %76 {offsets = [0, 64], sizes = [64, 64], strides = [1, 1]} : vector<64x128xf32> to vector<64x64xf32>
    %105 = arith.addf %103, %104 : vector<64x64xf32>
    %cst_43 = arith.constant dense<0xFF800000> : vector<64xf32>
    %106 = vector.multi_reduction <maximumf>, %105, %cst_43 [1] : vector<64x64xf32> to vector<64xf32>
    %107 = vector.shape_cast %106 : vector<64xf32> to vector<64x1xf32>
    %108 = vector.broadcast %107 : vector<64x1xf32> to vector<64x64xf32>
    %109 = arith.subf %105, %108 : vector<64x64xf32>
    %110 = math.exp %109 : vector<64x64xf32>
    %cst_44 = arith.constant dense<0.000000e+00> : vector<64xf32>
    %111 = vector.multi_reduction <add>, %110, %cst_44 [1] : vector<64x64xf32> to vector<64xf32>
    %112 = vector.shape_cast %111 : vector<64xf32> to vector<64x1xf32>
    %113 = tpu.reciprocal %112 {approx = true} : vector<64x1xf32> -> vector<64x1xf32>
    %114 = vector.broadcast %113 : vector<64x1xf32> to vector<64x64xf32>
    %115 = arith.mulf %110, %114 : vector<64x64xf32>
    %116 = arith.truncf %115 : vector<64x64xf32> to vector<64x64xbf16>
    %117 = arith.truncf %100 : vector<64x32xf32> to vector<64x32xbf16>
    %cst_45 = arith.constant dense<0.000000e+00> : vector<64x32xf32>
    %118 = tpu.matmul %116, %117, %cst_45 {dimension_numbers = #tpu.dot_dimension_numbers<[1], [0], [0], [1], [0, 0, 1, 1], [], []>} : vector<64x64xbf16>, vector<64x32xbf16>, vector<64x32xf32> -> vector<64x32xf32>
    %119 = tpu.concatenate %97, %118 in 1 : vector<64x32xf32>, vector<64x32xf32> -> vector<64x64xf32>
    %120 = arith.truncf %119 : vector<64x64xf32> to vector<64x64xbf16>
    %c0_46 = arith.constant 0 : index
    %c0_47 = arith.constant 0 : index
    %c0_48 = arith.constant 0 : index
    %121 = vector.load %arg10[%c0_46, %c0_47, %c0_48] : memref<2x64x64xbf16, #tpu.memory_space<vmem>>, vector<1x64x64xbf16>
    %122 = vector.shape_cast %121 : vector<1x64x64xbf16> to vector<64x64xbf16>
    %cst_49 = arith.constant dense<0.000000e+00> : vector<64x64xf32>
    %123 = tpu.matmul %120, %122, %cst_49 {dimension_numbers = #tpu.dot_dimension_numbers<[1], [0], [0], [1], [0, 0, 1, 1], [], []>} : vector<64x64xbf16>, vector<64x64xbf16>, vector<64x64xf32> -> vector<64x64xf32>
    %124 = arith.addf %40, %123 : vector<64x64xf32>
    %c0_50 = arith.constant 0 : index
    %c0_51 = arith.constant 0 : index
    %c0_52 = arith.constant 0 : index
    %125 = vector.load %arg11[%c0_50, %c0_51, %c0_52] : memref<2x1x64xf32, #tpu.memory_space<vmem>>, vector<1x1x64xf32>
    %126 = vector.shape_cast %125 : vector<1x1x64xf32> to vector<1x64xf32>
    %127 = vector.broadcast %126 : vector<1x64xf32> to vector<64x64xf32>
    %128 = arith.addf %124, %127 : vector<64x64xf32>
    %c0_53 = arith.constant 0 : index
    %c0_54 = arith.constant 0 : index
    %c0_55 = arith.constant 0 : index
    %129 = vector.load %arg12[%c0_53, %c0_54, %c0_55] : memref<2x1x64xf32, #tpu.memory_space<vmem>>, vector<1x1x64xf32>
    %130 = vector.shape_cast %129 : vector<1x1x64xf32> to vector<1x64xf32>
    %c0_56 = arith.constant 0 : index
    %c0_57 = arith.constant 0 : index
    %c0_58 = arith.constant 0 : index
    %131 = vector.load %arg13[%c0_56, %c0_57, %c0_58] : memref<2x1x64xf32, #tpu.memory_space<vmem>>, vector<1x1x64xf32>
    %132 = vector.shape_cast %131 : vector<1x1x64xf32> to vector<1x64xf32>
    %cst_59 = arith.constant dense<0.000000e+00> : vector<64xf32>
    %133 = vector.multi_reduction <add>, %128, %cst_59 [1] : vector<64x64xf32> to vector<64xf32>
    %134 = vector.shape_cast %133 : vector<64xf32> to vector<64x1xf32>
    %cst_60 = arith.constant 6.400000e+01 : f32
    %135 = vector.broadcast %cst_60 : f32 to vector<64x1xf32>
    %136 = arith.divf %134, %135 : vector<64x1xf32>
    %137 = vector.broadcast %136 : vector<64x1xf32> to vector<64x64xf32>
    %138 = arith.subf %128, %137 : vector<64x64xf32>
    %139 = arith.mulf %138, %138 : vector<64x64xf32>
    %cst_61 = arith.constant dense<0.000000e+00> : vector<64xf32>
    %140 = vector.multi_reduction <add>, %139, %cst_61 [1] : vector<64x64xf32> to vector<64xf32>
    %141 = vector.shape_cast %140 : vector<64xf32> to vector<64x1xf32>
    %cst_62 = arith.constant 6.400000e+01 : f32
    %142 = vector.broadcast %cst_62 : f32 to vector<64x1xf32>
    %143 = arith.divf %141, %142 : vector<64x1xf32>
    %144 = vector.broadcast %136 : vector<64x1xf32> to vector<64x64xf32>
    %145 = arith.subf %128, %144 : vector<64x64xf32>
    %cst_63 = arith.constant 9.99999974E-6 : f32
    %146 = vector.broadcast %cst_63 : f32 to vector<64x1xf32>
    %147 = arith.addf %143, %146 : vector<64x1xf32>
    %148 = math.rsqrt %147 : vector<64x1xf32>
    %149 = vector.broadcast %148 : vector<64x1xf32> to vector<64x64xf32>
    %150 = arith.mulf %145, %149 : vector<64x64xf32>
    %151 = vector.broadcast %130 : vector<1x64xf32> to vector<64x64xf32>
    %152 = arith.mulf %150, %151 : vector<64x64xf32>
    %153 = vector.broadcast %132 : vector<1x64xf32> to vector<64x64xf32>
    %154 = arith.addf %152, %153 : vector<64x64xf32>
    %155 = arith.truncf %154 : vector<64x64xf32> to vector<64x64xbf16>
    %c0_64 = arith.constant 0 : index
    %c0_65 = arith.constant 0 : index
    %c0_66 = arith.constant 0 : index
    %156 = vector.load %arg14[%c0_64, %c0_65, %c0_66] : memref<2x64x256xbf16, #tpu.memory_space<vmem>>, vector<1x64x256xbf16>
    %157 = vector.shape_cast %156 : vector<1x64x256xbf16> to vector<64x256xbf16>
    %cst_67 = arith.constant dense<0.000000e+00> : vector<64x256xf32>
    %158 = tpu.matmul %155, %157, %cst_67 {dimension_numbers = #tpu.dot_dimension_numbers<[1], [0], [0], [1], [0, 0, 1, 1], [], []>} : vector<64x64xbf16>, vector<64x256xbf16>, vector<64x256xf32> -> vector<64x256xf32>
    %c0_68 = arith.constant 0 : index
    %c0_69 = arith.constant 0 : index
    %c0_70 = arith.constant 0 : index
    %159 = vector.load %arg15[%c0_68, %c0_69, %c0_70] : memref<2x1x256xf32, #tpu.memory_space<vmem>>, vector<1x1x256xf32>
    %160 = vector.shape_cast %159 : vector<1x1x256xf32> to vector<1x256xf32>
    %161 = vector.broadcast %160 : vector<1x256xf32> to vector<64x256xf32>
    %162 = arith.addf %158, %161 : vector<64x256xf32>
    %cst_71 = arith.constant 5.000000e-01 : f32
    %163 = vector.broadcast %cst_71 : f32 to vector<64x256xf32>
    %164 = arith.mulf %163, %162 : vector<64x256xf32>
    %cst_72 = arith.constant 0.707106769 : f32
    %165 = vector.broadcast %cst_72 : f32 to vector<64x256xf32>
    %166 = arith.mulf %162, %165 : vector<64x256xf32>
    %167 = math.absf %166 : vector<64x256xf32>
    %cst_73 = arith.constant 0.327591091 : f32
    %168 = vector.broadcast %cst_73 : f32 to vector<64x256xf32>
    %169 = arith.mulf %168, %167 : vector<64x256xf32>
    %cst_74 = arith.constant 1.000000e+00 : f32
    %170 = vector.broadcast %cst_74 : f32 to vector<64x256xf32>
    %171 = arith.addf %170, %169 : vector<64x256xf32>
    %172 = tpu.reciprocal %171 {approx = true} : vector<64x256xf32> -> vector<64x256xf32>
    %cst_75 = arith.constant 1.06140542 : f32
    %173 = vector.broadcast %cst_75 : f32 to vector<64x256xf32>
    %174 = arith.mulf %173, %172 : vector<64x256xf32>
    %cst_76 = arith.constant -1.45315206 : f32
    %175 = vector.broadcast %cst_76 : f32 to vector<64x256xf32>
    %176 = arith.addf %174, %175 : vector<64x256xf32>
    %177 = arith.mulf %176, %172 : vector<64x256xf32>
    %cst_77 = arith.constant 1.42141378 : f32
    %178 = vector.broadcast %cst_77 : f32 to vector<64x256xf32>
    %179 = arith.addf %177, %178 : vector<64x256xf32>
    %180 = arith.mulf %179, %172 : vector<64x256xf32>
    %cst_78 = arith.constant -0.284496725 : f32
    %181 = vector.broadcast %cst_78 : f32 to vector<64x256xf32>
    %182 = arith.addf %180, %181 : vector<64x256xf32>
    %183 = arith.mulf %182, %172 : vector<64x256xf32>
    %cst_79 = arith.constant 0.254829586 : f32
    %184 = vector.broadcast %cst_79 : f32 to vector<64x256xf32>
    %185 = arith.addf %183, %184 : vector<64x256xf32>
    %186 = arith.mulf %185, %172 : vector<64x256xf32>
    %187 = arith.mulf %167, %167 : vector<64x256xf32>
    %cst_80 = arith.constant 0.000000e+00 : f32
    %188 = vector.broadcast %cst_80 : f32 to vector<64x256xf32>
    %189 = arith.subf %188, %187 : vector<64x256xf32>
    %190 = math.exp %189 : vector<64x256xf32>
    %191 = arith.mulf %186, %190 : vector<64x256xf32>
    %cst_81 = arith.constant 1.000000e+00 : f32
    %192 = vector.broadcast %cst_81 : f32 to vector<64x256xf32>
    %193 = arith.subf %192, %191 : vector<64x256xf32>
    %cst_82 = arith.constant 0.000000e+00 : f32
    %194 = vector.broadcast %cst_82 : f32 to vector<64x256xf32>
    %195 = arith.cmpf olt, %166, %194 : vector<64x256xf32>
    %cst_83 = arith.constant 0.000000e+00 : f32
    %196 = vector.broadcast %cst_83 : f32 to vector<64x256xf32>
    %197 = arith.subf %196, %193 : vector<64x256xf32>
    %198 = arith.select %195, %197, %193 : vector<64x256xi1>, vector<64x256xf32>
    %cst_84 = arith.constant 1.000000e+00 : f32
    %199 = vector.broadcast %cst_84 : f32 to vector<64x256xf32>
    %200 = arith.addf %199, %198 : vector<64x256xf32>
    %201 = arith.mulf %164, %200 : vector<64x256xf32>
    %202 = arith.truncf %201 : vector<64x256xf32> to vector<64x256xbf16>
    %c0_85 = arith.constant 0 : index
    %c0_86 = arith.constant 0 : index
    %c0_87 = arith.constant 0 : index
    %203 = vector.load %arg16[%c0_85, %c0_86, %c0_87] : memref<2x256x64xbf16, #tpu.memory_space<vmem>>, vector<1x256x64xbf16>
    %204 = vector.shape_cast %203 : vector<1x256x64xbf16> to vector<256x64xbf16>
    %cst_88 = arith.constant dense<0.000000e+00> : vector<64x64xf32>
    %205 = tpu.matmul %202, %204, %cst_88 {dimension_numbers = #tpu.dot_dimension_numbers<[1], [0], [0], [1], [0, 0, 1, 1], [], []>} : vector<64x256xbf16>, vector<256x64xbf16>, vector<64x64xf32> -> vector<64x64xf32>
    %206 = arith.addf %128, %205 : vector<64x64xf32>
    %c0_89 = arith.constant 0 : index
    %c0_90 = arith.constant 0 : index
    %c0_91 = arith.constant 0 : index
    %207 = vector.load %arg17[%c0_89, %c0_90, %c0_91] : memref<2x1x64xf32, #tpu.memory_space<vmem>>, vector<1x1x64xf32>
    %208 = vector.shape_cast %207 : vector<1x1x64xf32> to vector<1x64xf32>
    %209 = vector.broadcast %208 : vector<1x64xf32> to vector<64x64xf32>
    %210 = arith.addf %206, %209 : vector<64x64xf32>
    %c1 = arith.constant 1 : index
    %c0_92 = arith.constant 0 : index
    %c0_93 = arith.constant 0 : index
    %211 = vector.load %arg5[%c1, %c0_92, %c0_93] : memref<2x1x64xf32, #tpu.memory_space<vmem>>, vector<1x1x64xf32>
    %212 = vector.shape_cast %211 : vector<1x1x64xf32> to vector<1x64xf32>
    %c1_94 = arith.constant 1 : index
    %c0_95 = arith.constant 0 : index
    %c0_96 = arith.constant 0 : index
    %213 = vector.load %arg6[%c1_94, %c0_95, %c0_96] : memref<2x1x64xf32, #tpu.memory_space<vmem>>, vector<1x1x64xf32>
    %214 = vector.shape_cast %213 : vector<1x1x64xf32> to vector<1x64xf32>
    %cst_97 = arith.constant dense<0.000000e+00> : vector<64xf32>
    %215 = vector.multi_reduction <add>, %210, %cst_97 [1] : vector<64x64xf32> to vector<64xf32>
    %216 = vector.shape_cast %215 : vector<64xf32> to vector<64x1xf32>
    %cst_98 = arith.constant 6.400000e+01 : f32
    %217 = vector.broadcast %cst_98 : f32 to vector<64x1xf32>
    %218 = arith.divf %216, %217 : vector<64x1xf32>
    %219 = vector.broadcast %218 : vector<64x1xf32> to vector<64x64xf32>
    %220 = arith.subf %210, %219 : vector<64x64xf32>
    %221 = arith.mulf %220, %220 : vector<64x64xf32>
    %cst_99 = arith.constant dense<0.000000e+00> : vector<64xf32>
    %222 = vector.multi_reduction <add>, %221, %cst_99 [1] : vector<64x64xf32> to vector<64xf32>
    %223 = vector.shape_cast %222 : vector<64xf32> to vector<64x1xf32>
    %cst_100 = arith.constant 6.400000e+01 : f32
    %224 = vector.broadcast %cst_100 : f32 to vector<64x1xf32>
    %225 = arith.divf %223, %224 : vector<64x1xf32>
    %226 = vector.broadcast %218 : vector<64x1xf32> to vector<64x64xf32>
    %227 = arith.subf %210, %226 : vector<64x64xf32>
    %cst_101 = arith.constant 9.99999974E-6 : f32
    %228 = vector.broadcast %cst_101 : f32 to vector<64x1xf32>
    %229 = arith.addf %225, %228 : vector<64x1xf32>
    %230 = math.rsqrt %229 : vector<64x1xf32>
    %231 = vector.broadcast %230 : vector<64x1xf32> to vector<64x64xf32>
    %232 = arith.mulf %227, %231 : vector<64x64xf32>
    %233 = vector.broadcast %212 : vector<1x64xf32> to vector<64x64xf32>
    %234 = arith.mulf %232, %233 : vector<64x64xf32>
    %235 = vector.broadcast %214 : vector<1x64xf32> to vector<64x64xf32>
    %236 = arith.addf %234, %235 : vector<64x64xf32>
    %237 = arith.truncf %236 : vector<64x64xf32> to vector<64x64xbf16>
    %c1_102 = arith.constant 1 : index
    %c0_103 = arith.constant 0 : index
    %c0_104 = arith.constant 0 : index
    %238 = vector.load %arg7[%c1_102, %c0_103, %c0_104] : memref<2x64x192xbf16, #tpu.memory_space<vmem>>, vector<1x64x192xbf16>
    %239 = vector.shape_cast %238 : vector<1x64x192xbf16> to vector<64x192xbf16>
    %cst_105 = arith.constant dense<0.000000e+00> : vector<64x192xf32>
    %240 = tpu.matmul %237, %239, %cst_105 {dimension_numbers = #tpu.dot_dimension_numbers<[1], [0], [0], [1], [0, 0, 1, 1], [], []>} : vector<64x64xbf16>, vector<64x192xbf16>, vector<64x192xf32> -> vector<64x192xf32>
    %c1_106 = arith.constant 1 : index
    %c0_107 = arith.constant 0 : index
    %c0_108 = arith.constant 0 : index
    %241 = vector.load %arg8[%c1_106, %c0_107, %c0_108] : memref<2x1x192xf32, #tpu.memory_space<vmem>>, vector<1x1x192xf32>
    %242 = vector.shape_cast %241 : vector<1x1x192xf32> to vector<1x192xf32>
    %243 = vector.broadcast %242 : vector<1x192xf32> to vector<64x192xf32>
    %244 = arith.addf %240, %243 : vector<64x192xf32>
    %c1_109 = arith.constant 1 : index
    %c0_110 = arith.constant 0 : index
    %c0_111 = arith.constant 0 : index
    %245 = vector.load %arg9[%c1_109, %c0_110, %c0_111] : memref<2x64x128xf32, #tpu.memory_space<vmem>>, vector<1x64x128xf32>
    %246 = vector.shape_cast %245 : vector<1x64x128xf32> to vector<64x128xf32>
    %247 = vector.extract_strided_slice %244 {offsets = [0, 0], sizes = [64, 32], strides = [1, 1]} : vector<64x192xf32> to vector<64x32xf32>
    %248 = vector.extract_strided_slice %244 {offsets = [0, 64], sizes = [64, 32], strides = [1, 1]} : vector<64x192xf32> to vector<64x32xf32>
    %249 = vector.extract_strided_slice %244 {offsets = [0, 128], sizes = [64, 32], strides = [1, 1]} : vector<64x192xf32> to vector<64x32xf32>
    %250 = arith.truncf %247 : vector<64x32xf32> to vector<64x32xbf16>
    %251 = arith.truncf %248 : vector<64x32xf32> to vector<64x32xbf16>
    %cst_112 = arith.constant dense<0.000000e+00> : vector<64x64xf32>
    %252 = tpu.matmul %250, %251, %cst_112 {dimension_numbers = #tpu.dot_dimension_numbers<[1], [1], [0], [0], [0, 0, 1, 0], [], []>} : vector<64x32xbf16>, vector<64x32xbf16>, vector<64x64xf32> -> vector<64x64xf32>
    %253 = vector.extract_strided_slice %246 {offsets = [0, 0], sizes = [64, 64], strides = [1, 1]} : vector<64x128xf32> to vector<64x64xf32>
    %254 = arith.addf %252, %253 : vector<64x64xf32>
    %cst_113 = arith.constant dense<0xFF800000> : vector<64xf32>
    %255 = vector.multi_reduction <maximumf>, %254, %cst_113 [1] : vector<64x64xf32> to vector<64xf32>
    %256 = vector.shape_cast %255 : vector<64xf32> to vector<64x1xf32>
    %257 = vector.broadcast %256 : vector<64x1xf32> to vector<64x64xf32>
    %258 = arith.subf %254, %257 : vector<64x64xf32>
    %259 = math.exp %258 : vector<64x64xf32>
    %cst_114 = arith.constant dense<0.000000e+00> : vector<64xf32>
    %260 = vector.multi_reduction <add>, %259, %cst_114 [1] : vector<64x64xf32> to vector<64xf32>
    %261 = vector.shape_cast %260 : vector<64xf32> to vector<64x1xf32>
    %262 = tpu.reciprocal %261 {approx = true} : vector<64x1xf32> -> vector<64x1xf32>
    %263 = vector.broadcast %262 : vector<64x1xf32> to vector<64x64xf32>
    %264 = arith.mulf %259, %263 : vector<64x64xf32>
    %265 = arith.truncf %264 : vector<64x64xf32> to vector<64x64xbf16>
    %266 = arith.truncf %249 : vector<64x32xf32> to vector<64x32xbf16>
    %cst_115 = arith.constant dense<0.000000e+00> : vector<64x32xf32>
    %267 = tpu.matmul %265, %266, %cst_115 {dimension_numbers = #tpu.dot_dimension_numbers<[1], [0], [0], [1], [0, 0, 1, 1], [], []>} : vector<64x64xbf16>, vector<64x32xbf16>, vector<64x32xf32> -> vector<64x32xf32>
    %268 = vector.extract_strided_slice %244 {offsets = [0, 32], sizes = [64, 32], strides = [1, 1]} : vector<64x192xf32> to vector<64x32xf32>
    %269 = vector.extract_strided_slice %244 {offsets = [0, 96], sizes = [64, 32], strides = [1, 1]} : vector<64x192xf32> to vector<64x32xf32>
    %270 = vector.extract_strided_slice %244 {offsets = [0, 160], sizes = [64, 32], strides = [1, 1]} : vector<64x192xf32> to vector<64x32xf32>
    %271 = arith.truncf %268 : vector<64x32xf32> to vector<64x32xbf16>
    %272 = arith.truncf %269 : vector<64x32xf32> to vector<64x32xbf16>
    %cst_116 = arith.constant dense<0.000000e+00> : vector<64x64xf32>
    %273 = tpu.matmul %271, %272, %cst_116 {dimension_numbers = #tpu.dot_dimension_numbers<[1], [1], [0], [0], [0, 0, 1, 0], [], []>} : vector<64x32xbf16>, vector<64x32xbf16>, vector<64x64xf32> -> vector<64x64xf32>
    %274 = vector.extract_strided_slice %246 {offsets = [0, 64], sizes = [64, 64], strides = [1, 1]} : vector<64x128xf32> to vector<64x64xf32>
    %275 = arith.addf %273, %274 : vector<64x64xf32>
    %cst_117 = arith.constant dense<0xFF800000> : vector<64xf32>
    %276 = vector.multi_reduction <maximumf>, %275, %cst_117 [1] : vector<64x64xf32> to vector<64xf32>
    %277 = vector.shape_cast %276 : vector<64xf32> to vector<64x1xf32>
    %278 = vector.broadcast %277 : vector<64x1xf32> to vector<64x64xf32>
    %279 = arith.subf %275, %278 : vector<64x64xf32>
    %280 = math.exp %279 : vector<64x64xf32>
    %cst_118 = arith.constant dense<0.000000e+00> : vector<64xf32>
    %281 = vector.multi_reduction <add>, %280, %cst_118 [1] : vector<64x64xf32> to vector<64xf32>
    %282 = vector.shape_cast %281 : vector<64xf32> to vector<64x1xf32>
    %283 = tpu.reciprocal %282 {approx = true} : vector<64x1xf32> -> vector<64x1xf32>
    %284 = vector.broadcast %283 : vector<64x1xf32> to vector<64x64xf32>
    %285 = arith.mulf %280, %284 : vector<64x64xf32>
    %286 = arith.truncf %285 : vector<64x64xf32> to vector<64x64xbf16>
    %287 = arith.truncf %270 : vector<64x32xf32> to vector<64x32xbf16>
    %cst_119 = arith.constant dense<0.000000e+00> : vector<64x32xf32>
    %288 = tpu.matmul %286, %287, %cst_119 {dimension_numbers = #tpu.dot_dimension_numbers<[1], [0], [0], [1], [0, 0, 1, 1], [], []>} : vector<64x64xbf16>, vector<64x32xbf16>, vector<64x32xf32> -> vector<64x32xf32>
    %289 = tpu.concatenate %267, %288 in 1 : vector<64x32xf32>, vector<64x32xf32> -> vector<64x64xf32>
    %290 = arith.truncf %289 : vector<64x64xf32> to vector<64x64xbf16>
    %c1_120 = arith.constant 1 : index
    %c0_121 = arith.constant 0 : index
    %c0_122 = arith.constant 0 : index
    %291 = vector.load %arg10[%c1_120, %c0_121, %c0_122] : memref<2x64x64xbf16, #tpu.memory_space<vmem>>, vector<1x64x64xbf16>
    %292 = vector.shape_cast %291 : vector<1x64x64xbf16> to vector<64x64xbf16>
    %cst_123 = arith.constant dense<0.000000e+00> : vector<64x64xf32>
    %293 = tpu.matmul %290, %292, %cst_123 {dimension_numbers = #tpu.dot_dimension_numbers<[1], [0], [0], [1], [0, 0, 1, 1], [], []>} : vector<64x64xbf16>, vector<64x64xbf16>, vector<64x64xf32> -> vector<64x64xf32>
    %294 = arith.addf %210, %293 : vector<64x64xf32>
    %c1_124 = arith.constant 1 : index
    %c0_125 = arith.constant 0 : index
    %c0_126 = arith.constant 0 : index
    %295 = vector.load %arg11[%c1_124, %c0_125, %c0_126] : memref<2x1x64xf32, #tpu.memory_space<vmem>>, vector<1x1x64xf32>
    %296 = vector.shape_cast %295 : vector<1x1x64xf32> to vector<1x64xf32>
    %297 = vector.broadcast %296 : vector<1x64xf32> to vector<64x64xf32>
    %298 = arith.addf %294, %297 : vector<64x64xf32>
    %c1_127 = arith.constant 1 : index
    %c0_128 = arith.constant 0 : index
    %c0_129 = arith.constant 0 : index
    %299 = vector.load %arg12[%c1_127, %c0_128, %c0_129] : memref<2x1x64xf32, #tpu.memory_space<vmem>>, vector<1x1x64xf32>
    %300 = vector.shape_cast %299 : vector<1x1x64xf32> to vector<1x64xf32>
    %c1_130 = arith.constant 1 : index
    %c0_131 = arith.constant 0 : index
    %c0_132 = arith.constant 0 : index
    %301 = vector.load %arg13[%c1_130, %c0_131, %c0_132] : memref<2x1x64xf32, #tpu.memory_space<vmem>>, vector<1x1x64xf32>
    %302 = vector.shape_cast %301 : vector<1x1x64xf32> to vector<1x64xf32>
    %cst_133 = arith.constant dense<0.000000e+00> : vector<64xf32>
    %303 = vector.multi_reduction <add>, %298, %cst_133 [1] : vector<64x64xf32> to vector<64xf32>
    %304 = vector.shape_cast %303 : vector<64xf32> to vector<64x1xf32>
    %cst_134 = arith.constant 6.400000e+01 : f32
    %305 = vector.broadcast %cst_134 : f32 to vector<64x1xf32>
    %306 = arith.divf %304, %305 : vector<64x1xf32>
    %307 = vector.broadcast %306 : vector<64x1xf32> to vector<64x64xf32>
    %308 = arith.subf %298, %307 : vector<64x64xf32>
    %309 = arith.mulf %308, %308 : vector<64x64xf32>
    %cst_135 = arith.constant dense<0.000000e+00> : vector<64xf32>
    %310 = vector.multi_reduction <add>, %309, %cst_135 [1] : vector<64x64xf32> to vector<64xf32>
    %311 = vector.shape_cast %310 : vector<64xf32> to vector<64x1xf32>
    %cst_136 = arith.constant 6.400000e+01 : f32
    %312 = vector.broadcast %cst_136 : f32 to vector<64x1xf32>
    %313 = arith.divf %311, %312 : vector<64x1xf32>
    %314 = vector.broadcast %306 : vector<64x1xf32> to vector<64x64xf32>
    %315 = arith.subf %298, %314 : vector<64x64xf32>
    %cst_137 = arith.constant 9.99999974E-6 : f32
    %316 = vector.broadcast %cst_137 : f32 to vector<64x1xf32>
    %317 = arith.addf %313, %316 : vector<64x1xf32>
    %318 = math.rsqrt %317 : vector<64x1xf32>
    %319 = vector.broadcast %318 : vector<64x1xf32> to vector<64x64xf32>
    %320 = arith.mulf %315, %319 : vector<64x64xf32>
    %321 = vector.broadcast %300 : vector<1x64xf32> to vector<64x64xf32>
    %322 = arith.mulf %320, %321 : vector<64x64xf32>
    %323 = vector.broadcast %302 : vector<1x64xf32> to vector<64x64xf32>
    %324 = arith.addf %322, %323 : vector<64x64xf32>
    %325 = arith.truncf %324 : vector<64x64xf32> to vector<64x64xbf16>
    %c1_138 = arith.constant 1 : index
    %c0_139 = arith.constant 0 : index
    %c0_140 = arith.constant 0 : index
    %326 = vector.load %arg14[%c1_138, %c0_139, %c0_140] : memref<2x64x256xbf16, #tpu.memory_space<vmem>>, vector<1x64x256xbf16>
    %327 = vector.shape_cast %326 : vector<1x64x256xbf16> to vector<64x256xbf16>
    %cst_141 = arith.constant dense<0.000000e+00> : vector<64x256xf32>
    %328 = tpu.matmul %325, %327, %cst_141 {dimension_numbers = #tpu.dot_dimension_numbers<[1], [0], [0], [1], [0, 0, 1, 1], [], []>} : vector<64x64xbf16>, vector<64x256xbf16>, vector<64x256xf32> -> vector<64x256xf32>
    %c1_142 = arith.constant 1 : index
    %c0_143 = arith.constant 0 : index
    %c0_144 = arith.constant 0 : index
    %329 = vector.load %arg15[%c1_142, %c0_143, %c0_144] : memref<2x1x256xf32, #tpu.memory_space<vmem>>, vector<1x1x256xf32>
    %330 = vector.shape_cast %329 : vector<1x1x256xf32> to vector<1x256xf32>
    %331 = vector.broadcast %330 : vector<1x256xf32> to vector<64x256xf32>
    %332 = arith.addf %328, %331 : vector<64x256xf32>
    %cst_145 = arith.constant 5.000000e-01 : f32
    %333 = vector.broadcast %cst_145 : f32 to vector<64x256xf32>
    %334 = arith.mulf %333, %332 : vector<64x256xf32>
    %cst_146 = arith.constant 0.707106769 : f32
    %335 = vector.broadcast %cst_146 : f32 to vector<64x256xf32>
    %336 = arith.mulf %332, %335 : vector<64x256xf32>
    %337 = math.absf %336 : vector<64x256xf32>
    %cst_147 = arith.constant 0.327591091 : f32
    %338 = vector.broadcast %cst_147 : f32 to vector<64x256xf32>
    %339 = arith.mulf %338, %337 : vector<64x256xf32>
    %cst_148 = arith.constant 1.000000e+00 : f32
    %340 = vector.broadcast %cst_148 : f32 to vector<64x256xf32>
    %341 = arith.addf %340, %339 : vector<64x256xf32>
    %342 = tpu.reciprocal %341 {approx = true} : vector<64x256xf32> -> vector<64x256xf32>
    %cst_149 = arith.constant 1.06140542 : f32
    %343 = vector.broadcast %cst_149 : f32 to vector<64x256xf32>
    %344 = arith.mulf %343, %342 : vector<64x256xf32>
    %cst_150 = arith.constant -1.45315206 : f32
    %345 = vector.broadcast %cst_150 : f32 to vector<64x256xf32>
    %346 = arith.addf %344, %345 : vector<64x256xf32>
    %347 = arith.mulf %346, %342 : vector<64x256xf32>
    %cst_151 = arith.constant 1.42141378 : f32
    %348 = vector.broadcast %cst_151 : f32 to vector<64x256xf32>
    %349 = arith.addf %347, %348 : vector<64x256xf32>
    %350 = arith.mulf %349, %342 : vector<64x256xf32>
    %cst_152 = arith.constant -0.284496725 : f32
    %351 = vector.broadcast %cst_152 : f32 to vector<64x256xf32>
    %352 = arith.addf %350, %351 : vector<64x256xf32>
    %353 = arith.mulf %352, %342 : vector<64x256xf32>
    %cst_153 = arith.constant 0.254829586 : f32
    %354 = vector.broadcast %cst_153 : f32 to vector<64x256xf32>
    %355 = arith.addf %353, %354 : vector<64x256xf32>
    %356 = arith.mulf %355, %342 : vector<64x256xf32>
    %357 = arith.mulf %337, %337 : vector<64x256xf32>
    %cst_154 = arith.constant 0.000000e+00 : f32
    %358 = vector.broadcast %cst_154 : f32 to vector<64x256xf32>
    %359 = arith.subf %358, %357 : vector<64x256xf32>
    %360 = math.exp %359 : vector<64x256xf32>
    %361 = arith.mulf %356, %360 : vector<64x256xf32>
    %cst_155 = arith.constant 1.000000e+00 : f32
    %362 = vector.broadcast %cst_155 : f32 to vector<64x256xf32>
    %363 = arith.subf %362, %361 : vector<64x256xf32>
    %cst_156 = arith.constant 0.000000e+00 : f32
    %364 = vector.broadcast %cst_156 : f32 to vector<64x256xf32>
    %365 = arith.cmpf olt, %336, %364 : vector<64x256xf32>
    %cst_157 = arith.constant 0.000000e+00 : f32
    %366 = vector.broadcast %cst_157 : f32 to vector<64x256xf32>
    %367 = arith.subf %366, %363 : vector<64x256xf32>
    %368 = arith.select %365, %367, %363 : vector<64x256xi1>, vector<64x256xf32>
    %cst_158 = arith.constant 1.000000e+00 : f32
    %369 = vector.broadcast %cst_158 : f32 to vector<64x256xf32>
    %370 = arith.addf %369, %368 : vector<64x256xf32>
    %371 = arith.mulf %334, %370 : vector<64x256xf32>
    %372 = arith.truncf %371 : vector<64x256xf32> to vector<64x256xbf16>
    %c1_159 = arith.constant 1 : index
    %c0_160 = arith.constant 0 : index
    %c0_161 = arith.constant 0 : index
    %373 = vector.load %arg16[%c1_159, %c0_160, %c0_161] : memref<2x256x64xbf16, #tpu.memory_space<vmem>>, vector<1x256x64xbf16>
    %374 = vector.shape_cast %373 : vector<1x256x64xbf16> to vector<256x64xbf16>
    %cst_162 = arith.constant dense<0.000000e+00> : vector<64x64xf32>
    %375 = tpu.matmul %372, %374, %cst_162 {dimension_numbers = #tpu.dot_dimension_numbers<[1], [0], [0], [1], [0, 0, 1, 1], [], []>} : vector<64x256xbf16>, vector<256x64xbf16>, vector<64x64xf32> -> vector<64x64xf32>
    %376 = arith.addf %298, %375 : vector<64x64xf32>
    %c1_163 = arith.constant 1 : index
    %c0_164 = arith.constant 0 : index
    %c0_165 = arith.constant 0 : index
    %377 = vector.load %arg17[%c1_163, %c0_164, %c0_165] : memref<2x1x64xf32, #tpu.memory_space<vmem>>, vector<1x1x64xf32>
    %378 = vector.shape_cast %377 : vector<1x1x64xf32> to vector<1x64xf32>
    %379 = vector.broadcast %378 : vector<1x64xf32> to vector<64x64xf32>
    %380 = arith.addf %376, %379 : vector<64x64xf32>
    %cst_166 = arith.constant dense<0xFF800000> : vector<64xf32>
    %381 = vector.multi_reduction <maximumf>, %380, %cst_166 [0] : vector<64x64xf32> to vector<64xf32>
    %382 = vector.shape_cast %381 : vector<64xf32> to vector<1x64xf32>
    %c0_167 = arith.constant 0 : index
    %c0_168 = arith.constant 0 : index
    %c0_169 = arith.constant 0 : index
    %383 = vector.load %arg19[%c0_167, %c0_168, %c0_169] : memref<1x1x64xf32, #tpu.memory_space<vmem>>, vector<1x1x64xf32>
    %384 = vector.shape_cast %383 : vector<1x1x64xf32> to vector<1x64xf32>
    %385 = vector.shape_cast %382 : vector<1x64xf32> to vector<1x1x64xf32>
    tpu.vector_store %arg19[%c0_167, %c0_168, %c0_169], %385 {strides = array<i32>} : memref<1x1x64xf32, #tpu.memory_space<vmem>>, vector<1x1x64xf32>,
    return
  }
  func.func @transform_0(%arg0: i32) -> (i32, i32, i32) {
    %c0_i32 = arith.constant 0 : i32
    %c0_i32_0 = arith.constant 0 : i32
    %c0_i32_1 = arith.constant 0 : i32
    return %arg0, %c0_i32, %c0_i32_0 : i32, i32, i32
  }
  func.func @transform_1(%arg0: i32) -> (i32, i32) {
    %c0_i32 = arith.constant 0 : i32
    %c0_i32_0 = arith.constant 0 : i32
    %c0_i32_1 = arith.constant 0 : i32
    return %c0_i32, %c0_i32_0 : i32, i32
  }
  func.func @transform_2(%arg0: i32) -> (i32, i32) {
    %c0_i32 = arith.constant 0 : i32
    %c0_i32_0 = arith.constant 0 : i32
    %c0_i32_1 = arith.constant 0 : i32
    return %c0_i32, %c0_i32_0 : i32, i32
  }
  func.func @transform_3(%arg0: i32) -> (i32, i32) {
    %c0_i32 = arith.constant 0 : i32
    %c0_i32_0 = arith.constant 0 : i32
    %c0_i32_1 = arith.constant 0 : i32
    return %c0_i32, %c0_i32_0 : i32, i32
  }
  func.func @transform_4(%arg0: i32) -> (i32, i32, i32) {
    %c0_i32 = arith.constant 0 : i32
    %c0_i32_0 = arith.constant 0 : i32
    %c0_i32_1 = arith.constant 0 : i32
    %c0_i32_2 = arith.constant 0 : i32
    return %c0_i32, %c0_i32_0, %c0_i32_1 : i32, i32, i32
  }
  func.func @transform_5(%arg0: i32) -> (i32, i32, i32) {
    %c0_i32 = arith.constant 0 : i32
    %c0_i32_0 = arith.constant 0 : i32
    %c0_i32_1 = arith.constant 0 : i32
    %c0_i32_2 = arith.constant 0 : i32
    return %c0_i32, %c0_i32_0, %c0_i32_1 : i32, i32, i32
  }
  func.func @transform_6(%arg0: i32) -> (i32, i32, i32) {
    %c0_i32 = arith.constant 0 : i32
    %c0_i32_0 = arith.constant 0 : i32
    %c0_i32_1 = arith.constant 0 : i32
    %c0_i32_2 = arith.constant 0 : i32
    return %c0_i32, %c0_i32_0, %c0_i32_1 : i32, i32, i32
  }
  func.func @transform_7(%arg0: i32) -> (i32, i32, i32) {
    %c0_i32 = arith.constant 0 : i32
    %c0_i32_0 = arith.constant 0 : i32
    %c0_i32_1 = arith.constant 0 : i32
    %c0_i32_2 = arith.constant 0 : i32
    return %c0_i32, %c0_i32_0, %c0_i32_1 : i32, i32, i32
  }
  func.func @transform_8(%arg0: i32) -> (i32, i32, i32) {
    %c0_i32 = arith.constant 0 : i32
    %c0_i32_0 = arith.constant 0 : i32
    %c0_i32_1 = arith.constant 0 : i32
    %c0_i32_2 = arith.constant 0 : i32
    return %c0_i32, %c0_i32_0, %c0_i32_1 : i32, i32, i32
  }
  func.func @transform_9(%arg0: i32) -> (i32, i32, i32) {
    %c0_i32 = arith.constant 0 : i32
    %c0_i32_0 = arith.constant 0 : i32
    %c0_i32_1 = arith.constant 0 : i32
    %c0_i32_2 = arith.constant 0 : i32
    return %c0_i32, %c0_i32_0, %c0_i32_1 : i32, i32, i32
  }
  func.func @transform_10(%arg0: i32) -> (i32, i32, i32) {
    %c0_i32 = arith.constant 0 : i32
    %c0_i32_0 = arith.constant 0 : i32
    %c0_i32_1 = arith.constant 0 : i32
    %c0_i32_2 = arith.constant 0 : i32
    return %c0_i32, %c0_i32_0, %c0_i32_1 : i32, i32, i32
  }
  func.func @transform_11(%arg0: i32) -> (i32, i32, i32) {
    %c0_i32 = arith.constant 0 : i32
    %c0_i32_0 = arith.constant 0 : i32
    %c0_i32_1 = arith.constant 0 : i32
    %c0_i32_2 = arith.constant 0 : i32
    return %c0_i32, %c0_i32_0, %c0_i32_1 : i32, i32, i32
  }
  func.func @transform_12(%arg0: i32) -> (i32, i32, i32) {
    %c0_i32 = arith.constant 0 : i32
    %c0_i32_0 = arith.constant 0 : i32
    %c0_i32_1 = arith.constant 0 : i32
    %c0_i32_2 = arith.constant 0 : i32
    return %c0_i32, %c0_i32_0, %c0_i32_1 : i32, i32, i32
  }
  func.func @transform_13(%arg0: i32) -> (i32, i32, i32) {
    %c0_i32 = arith.constant 0 : i32
    %c0_i32_0 = arith.constant 0 : i32
    %c0_i32_1 = arith.constant 0 : i32
    %c0_i32_2 = arith.constant 0 : i32
    return %c0_i32, %c0_i32_0, %c0_i32_1 : i32, i32, i32
  }
  func.func @transform_14(%arg0: i32) -> (i32, i32, i32) {
    %c0_i32 = arith.constant 0 : i32
    %c0_i32_0 = arith.constant 0 : i32
    %c0_i32_1 = arith.constant 0 : i32
    %c0_i32_2 = arith.constant 0 : i32
    return %c0_i32, %c0_i32_0, %c0_i32_1 : i32, i32, i32
  }
  func.func @transform_15(%arg0: i32) -> (i32, i32, i32) {
    %c0_i32 = arith.constant 0 : i32
    %c0_i32_0 = arith.constant 0 : i32
    %c0_i32_1 = arith.constant 0 : i32
    %c0_i32_2 = arith.constant 0 : i32
    return %c0_i32, %c0_i32_0, %c0_i32_1 : i32, i32, i32
  }
  func.func @transform_16(%arg0: i32) -> (i32, i32, i32) {
    %c0_i32 = arith.constant 0 : i32
    %c0_i32_0 = arith.constant 0 : i32
    %c0_i32_1 = arith.constant 0 : i32
    %c0_i32_2 = arith.constant 0 : i32
    return %c0_i32, %c0_i32_0, %c0_i32_1 : i32, i32, i32
  }
  func.func @transform_17(%arg0: i32) -> (i32, i32, i32) {
    %c0_i32 = arith.constant 0 : i32
    %c0_i32_0 = arith.constant 0 : i32
    %c0_i32_1 = arith.constant 0 : i32
    return %arg0, %c0_i32, %c0_i32_0 : i32, i32, i32
  }
  func.func @transform_18(%arg0: i32) -> (i32, i32, i32) {
    %c0_i32 = arith.constant 0 : i32
    %c0_i32_0 = arith.constant 0 : i32
    %c0_i32_1 = arith.constant 0 : i32
    return %arg0, %c0_i32, %c0_i32_0 : i32, i32, i32
  }
}

</mosaic_0001>

<bundles_post_ra>
// kernel: swin_head_forward.1
= control target key start
LH: loop header
LB: loop body
LE: loop exit
PB: predicated region body
PF: predicated region fallthrough
CT: control target
= control target key end

     0   :  { %s8239_s0 = inlined_call_operand.vmem [shape: f32[2,64,128], index: 0, kind: input, shape index: {}]   ;;  %s8240_s1 = inlined_call_operand.vmem [shape: f32[1,128], index: 1, kind: input, shape index: {}]   ;;  %s8241_s2 = inlined_call_operand.vmem [shape: f32[1,128], index: 2, kind: input, shape index: {}]   ;;  %s8242_s3 = inlined_call_operand.vmem [shape: bf16[128,64], index: 3, kind: input, shape index: {}]   ;;  %s8243_s4 = inlined_call_operand.vmem [shape: f32[2,1,64], index: 4, kind: input, shape index: {}]   ;;  %s8244_s5 = inlined_call_operand.vmem [shape: f32[2,1,64], index: 5, kind: input, shape index: {}]   ;;  %s8245_s6 = inlined_call_operand.vmem [shape: bf16[2,64,192], index: 6, kind: input, shape index: {}]   ;;  %s8246_s7 = inlined_call_operand.vmem [shape: f32[2,1,192], index: 7, kind: input, shape index: {}]   ;;  %s8247_s8 = inlined_call_operand.vmem [shape: f32[2,64,128], index: 8, kind: input, shape index: {}]   ;;  %s8248_s9 = inlined_call_operand.vmem [shape: bf16[2,64,64], index: 9, kind: input, shape index: {}]   ;;  %s8249_s10 = inlined_call_operand.vmem [shape: f32[2,1,64], index: 10, kind: input, shape index: {}]   ;;  %s8250_s11 = inlined_call_operand.vmem [shape: f32[2,1,64], index: 11, kind: input, shape index: {}]   ;;  %s8251_s12 = inlined_call_operand.vmem [shape: f32[2,1,64], index: 12, kind: input, shape index: {}]   ;;  %s8252_s13 = inlined_call_operand.vmem [shape: bf16[2,64,256], index: 13, kind: input, shape index: {}]   ;;  %s8253_s14 = inlined_call_operand.vmem [shape: f32[2,1,256], index: 14, kind: input, shape index: {}]   ;;  %s8254_s15 = inlined_call_operand.vmem [shape: bf16[2,256,64], index: 15, kind: input, shape index: {}]   ;;  %s8255_s16 = inlined_call_operand.vmem [shape: f32[2,1,64], index: 16, kind: input, shape index: {}]   ;;  %s8256_s17 = inlined_call_operand.hbm [shape: f32[2,1,32], index: 17, kind: output, shape index: {0}]   ;;  %s8257_s18 = inlined_call_operand.hbm [shape: f32[2,1,64], index: 18, kind: output, shape index: {1}]  }
   0x1   :  { %8269 = sst [smem:[#allocation13_spill]] %s8239_s0 }
   0x2   :  { %8270 = sst [smem:[#allocation14_spill]] %s8240_s1 }
   0x3   :  { %8271 = sst [smem:[#allocation15_spill]] %s8241_s2 }
   0x4   :  { %8272 = sst [smem:[#allocation16_spill]] %s8242_s3 }
   0x5   :  { %8273 = sst [smem:[#allocation17_spill]] %s8243_s4 }
   0x6   :  { %24 = vsyncpa [#allocation3], 0 }
   0x7   :  { %26 = vsyncpa [#allocation3 + $0x1], 0 }
   0x8   :  { %27 = vsyncpa [#allocation5], 0 }
   0x9   :  { %29 = vsyncpa [#allocation5 + $0x1], 0  ;;  %s6044_s27 = smov 0   ;;  %s6046_s28 = smov 0  }
   0xa   :  { %s6048_s29 = smov 0   ;;  %s6050_s30 = smov 0  }
   0xb LB: > { %8274 = sst [smem:[#allocation8_spill]] %s5930_s27  ;;  %s6065_s0 = sadd.s32 4294967295, %s5942_s30   ;;  %s5942_s30 = sphi %s6050_s30, %s8291_s30   ;;  %s5938_s29 = sphi %s6048_s29, %s8293_s29   ;;  %s5934_s28 = sphi %s6046_s28, %s8295_s28   ;;  %s5930_s27 = sphi %s6044_s27, %s8294_s27  }
   0xc   : > { %8275 = sst [smem:[#allocation9_spill]] %s5938_s29  ;;  %s4840_s19 = sadd.s32 4294967294, %s5942_s30  }
   0xd   : > { %s6069_s1 = sadd.s32 1, %s5942_s30   ;;  %s404_s20 = sadd.s32 1, %s5938_s29 }
   0xe   : > { %8276 = sst [smem:[#allocation10_spill]] %s6069_s1  ;;  %s401_s21 = ssub.s32 %s5942_s30, %s6069_s1 }
   0xf   : > { %p414_p0 = scmp.ne.s32.totalorder %s5938_s29, %s5934_s28  ;;  %p402_p1 = scmp.eq.s32.totalorder %s401_s21, 0 }
  0x10   : > { %p415_p2 = scmp.eq.s32.totalorder %s6065_s0, 1  ;;  %p420_p3 = scmp.ne.s32.totalorder %s5934_s28, %s5930_s27 }
  0x11   : > { %p421_p4 = scmp.eq.s32.totalorder %s4840_s19, 1  ;;  %p4843_p7 = scmp.ge.s32.totalorder %s5942_s30, 1 }
  0x12   : > { %s6080_s22 = scalar_select %p402_p1, %s5938_s29, %s404_s20  }
  0x13   : > { %p6082_p5 = por %p415_p2, %p414_p0  ;;  %p6086_p6 = por %p421_p4, %p420_p3 }
  0x14   : > { %8277 = sst [smem:[#allocation11_spill]] %s6080_s22  ;;  %p521_p8 = scmp.lt.s32.totalorder %s5942_s30, 3 }
  0x15   : > { %s8279_s23 = scalar_select %p6086_p6, 1, 0 }
  0x16   : > { %p522_p9 = pnand %p4843_p7, %p521_p8 }
  0x17   : > { %8280 = sst [smem:[#allocation12_spill]] %s8279_s23  ;;  %p578_p10 = scmp.lt.s32.totalorder (!%p522_p9), %s6065_s0, 1 }
  0x18   : > { %525 = sbr.rel (%p522_p9) target bundleno = 4734 (0x127e), region = 88  ;;  %s8281_s20 = sld [smem:[#allocation13_spill]] (!%p522_p9) }
  0x19   : > { %s8282_s3 = sld [smem:[#allocation16_spill]] (!%p522_p9)  ;;  %s8265_s29 = smov (!%p522_p9), 64  }
  0x1a   : > { %s8283_s23 = sld [smem:[#allocation14_spill]] (!%p522_p9)  ;;  %s8288_s26 = smov (!%p522_p9), 96  }
  0x1b   : > { %s8285_s4 = sld [smem:[#allocation17_spill]] (!%p522_p9) }
  0x1d   : > { %s579_s24 = scalar_select %p578_p10, %s6065_s0, 1  ;;  %v5944_v7 = vmov 128.0  }
  0x1e   : > { %5500 = vrcp.f32 %v5944_v7 }
  0x1f   : > { %s5312_s25 = sshll.u32 %s579_s24, 6  ;;  %v5320_v43 = vld [vmem:[%s8282_s3 + $0x38] sm:$0xff]  ;;  %v5319_v44 = vld [vmem:[%s8282_s3 + $0x30] sm:$0xff]  ;;  %v5318_v45 = vld [vmem:[%s8282_s3 + $0x28] sm:$0xff]  ;;  %s8267_s24 = smov 32  }
  0x20   : > { %s6097_s21 = scalar_lea.vmem %s8281_s20, %s5312_s25  ;;  %879 = vmatpush.bf16.msra.mxu0 %v5320_v43  ;;  %v5317_v46 = vld [vmem:[%s8282_s3 + $0x20] sm:$0xff]  ;;  %v5316_v47 = vld [vmem:[%s8282_s3 + $0x18] sm:$0xff]  ;;  %v5315_v48 = vld [vmem:[%s8282_s3 + $0x10] sm:$0xff]  ;;  %s8284_s25 = sld [smem:[#allocation15_spill]] }
  0x21   : > { %v588_v0 = vld [vmem:[%s6097_s21 + $0x20] sm:$0xff]  ;;  %v586_v1 = vld [vmem:[%s6097_s21 + $0x10] sm:$0xff]  ;;  %v589_v3 = vld [vmem:[%s6097_s21 + $0x28] sm:$0xff]  ;;  %s8287_s20 = smov 64  }
  0x22   : > { %v584_v2 = vld [vmem:[%s6097_s21] sm:$0xff]  ;;  %630 = vadd.xlane.f32.xlu2 %v588_v0  ;;  %626 = vadd.xlane.f32.xlu1 %v586_v1  ;;  %v587_v4 = vld [vmem:[%s6097_s21 + $0x18] sm:$0xff]  ;;  %v585_v5 = vld [vmem:[%s6097_s21 + $0x8] sm:$0xff] }
  0x23   : > { %622 = vadd.xlane.f32.xlu0 %v584_v2  ;;  %v590_v6 = vld [vmem:[%s6097_s21 + $0x30] sm:$0xff]  ;;  %v591_v30 = vld [vmem:[%s6097_s21 + $0x38] sm:$0xff]  ;;  %v5314_v49 = vld [vmem:[%s8282_s3 + $0x8] sm:$0xff] }
  0x24   : > { %v5501_v8 = vpop.eup %5500  ;;  %880 = vmatpush.bf16.msra.mxu0 %v5319_v44  ;;  %v5313_v53 = vld [vmem:[%s8282_s3] sm:$0xff] }
  0x25   : > { %v639_v9 = vmul.f32 128.0, %v5501_v8  ;;  %vm643_vm0 = vweird.f32 %v5501_v8 }
  0x27   : > { %v640_v10 = vsub.f32 1.0, %v639_v9 }
  0x28   : > { %881 = vmatpush.bf16.msra.mxu0 %v5318_v45 }
  0x29   : > { %v641_v11 = vmul.f32 %v5501_v8, %v640_v10 }
  0x2a   : > { %632 = vadd.xlane.f32.xlu2 %v589_v3  ;;  %628 = vadd.xlane.f32.xlu1 %v587_v4 }
  0x2b   : > { %624 = vadd.xlane.f32.xlu0 %v585_v5  ;;  %v642_v12 = vadd.f32 %v5501_v8, %v641_v11 }
  0x2c   : > { %882 = vmatpush.bf16.msra.mxu0 %v5317_v46 }
  0x2d   : > { %v6106_v13 = vsel %vm643_vm0, %v5501_v8, %v642_v12 }
  0x30   : > { %883 = vmatpush.bf16.msra.mxu0 %v5316_v47 }
  0x32   : > { %634 = vadd.xlane.f32.xlu2 %v590_v6 }
  0x34   : > { %884 = vmatpush.bf16.msra.mxu0 %v5315_v48 }
  0x38   : > { %885 = vmatpush.bf16.msra.mxu0 %v5314_v49 }
  0x3c   : > { %886 = vmatpush.bf16.msra.mxu0 %v5313_v53 }
  0x95   : > { %v631_v14 = vpop.xlane.xlu2 %630  ;;  %v627_v15 = vpop.xlane.xlu1 %626 }
  0x96   : > { %v623_v16 = vpop.xlane.xlu0 %622  ;;  %v649_v26 = vmul.f32 %v6106_v13, %v631_v14  ;;  %v647_v27 = vmul.f32 %v6106_v13, %v627_v15 }
  0x97   : > { %v645_v17 = vmul.f32 %v6106_v13, %v623_v16 }
  0x98   : > { %v6126_v33 = vsub.f32 %v588_v0, %v649_v26  ;;  %v6128_v34 = vsub.f32 %v586_v1, %v647_v27 }
  0x99   : > { %v6109_v18 = vsub.f32 %v584_v2, %v645_v17 }
  0x9a   : > { %v665_v38 = vmul.f32 %v6126_v33, %v6126_v33  ;;  %v663_v39 = vmul.f32 %v6128_v34, %v6128_v34 }
  0x9b   : > { %v661_v19 = vmul.f32 %v6109_v18, %v6109_v18 }
  0x9d   : > { %669 = vadd.xlane.f32.xlu0 %v661_v19  ;;  %v633_v20 = vpop.xlane.xlu2 %632  ;;  %v629_v21 = vpop.xlane.xlu1 %628 }
  0x9e   : > { %v648_v22 = vmul.f32 %v6106_v13, %v629_v21  ;;  %v625_v23 = vpop.xlane.xlu0 %624  ;;  %v650_v37 = vmul.f32 %v6106_v13, %v633_v20 }
  0x9f   : > { %v646_v24 = vmul.f32 %v6106_v13, %v625_v23 }
  0xa0   : > { %v6115_v25 = vsub.f32 %v587_v4, %v648_v22  ;;  %v6140_v41 = vsub.f32 %v589_v3, %v650_v37 }
  0xa1   : > { %v6119_v28 = vsub.f32 %v585_v5, %v646_v24 }
  0xa2   : > { %v664_v29 = vmul.f32 %v6115_v25, %v6115_v25  ;;  %v666_v42 = vmul.f32 %v6140_v41, %v6140_v41 }
  0xa3   : > { %v662_v31 = vmul.f32 %v6119_v28, %v6119_v28 }
  0xa4   : > { %675 = vadd.xlane.f32.xlu2 %v664_v29 }
  0xa5   : > { %636 = vadd.xlane.f32.xlu0 %v591_v30  ;;  %671 = vadd.xlane.f32.xlu1 %v662_v31  ;;  %v635_v32 = vpop.xlane.xlu2 %634 }
  0xa6   : > { %v651_v35 = vmul.f32 %v6106_v13, %v635_v32 }
  0xa8   : > { %v6131_v36 = vsub.f32 %v590_v6, %v651_v35 }
  0xaa   : > { %v667_v40 = vmul.f32 %v6131_v36, %v6131_v36 }
  0xac   : > { %681 = vadd.xlane.f32.xlu2 %v667_v40 }
  0xad   : > { %677 = vadd.xlane.f32.xlu0 %v665_v38  ;;  %673 = vadd.xlane.f32.xlu1 %v663_v39 }
  0xb5   : > { %679 = vadd.xlane.f32.xlu1 %v666_v42 }
 0x110   : > { %v670_v50 = vpop.xlane.xlu0 %669 }
 0x111   : > { %v685_v51 = vmul.f32 %v670_v50, %v6106_v13 }
 0x113   : > { %v693_v52 = vadd.f32 1e-05, %v685_v51 }
 0x115   : > { %5502 = vrsqrt.f32 %v693_v52  ;;  %vm707_vm2 = vweird.f32 %v693_v52 }
 0x117   : > { %v676_v54 = vpop.xlane.xlu2 %675 }
 0x118   : > { %v688_v55 = vmul.f32 %v676_v54, %v6106_v13  ;;  %v672_v56 = vpop.xlane.xlu1 %671  ;;  %v637_v57 = vpop.xlane.xlu0 %636 }
 0x119   : > { %v686_v58 = vmul.f32 %v672_v56, %v6106_v13  ;;  %v652_v59 = vmul.f32 %v6106_v13, %v637_v57 }
 0x11a   : > { %v6172_v60 = vadd.f32 1e-05, %v688_v55 }
 0x11b   : > { %v5503_v61 = vpop.eup %5502  ;;  %v694_v62 = vadd.f32 1e-05, %v686_v58  ;;  %v6174_v63 = vsub.f32 %v591_v30, %v652_v59  ;;  %v6194_v30 = vld [vmem:[%s8283_s23] ss:$0 sm:$0xff]  ;;  %s8286_s23 = smov 32  }
 0x11c   : > { %v702_v0 = vmul.f32 %v5503_v61, %v693_v52  ;;  %5504 = vrsqrt.f32 %v6172_v60  ;;  %vm708_vm1 = vweird.f32 %v5503_v61  ;;  %vm737_vm9 = vweird.f32 %v6172_v60 }
 0x11d   : > { %5506 = vrsqrt.f32 %v694_v62  ;;  %v668_v1 = vmul.f32 %v6174_v63, %v6174_v63  ;;  %vm709_vm3 = vmor %vm707_vm2, %vm708_vm1  ;;  %vm717_vm5 = vweird.f32 %v694_v62 }
 0x11e   : > { %v703_v2 = vmul.f32 %v5503_v61, %v702_v0 }
 0x11f   : > { %683 = vadd.xlane.f32.xlu0 %v668_v1 }
 0x120   : > { %v704_v3 = vmul.f32 0.5, %v703_v2  ;;  %v674_v4 = vpop.xlane.xlu1 %673  ;;  %v678_v5 = vpop.xlane.xlu0 %677 }
 0x121   : > { %v687_v6 = vmul.f32 %v674_v4, %v6106_v13  ;;  %v689_v11 = vmul.f32 %v678_v5, %v6106_v13 }
 0x122   : > { %v6180_v7 = vpop.eup %5504  ;;  %v705_v8 = vsub.f32 1.5, %v704_v3 }
 0x123   : > { %v5507_v9 = vpop.eup %5506  ;;  %v695_v10 = vadd.f32 1e-05, %v687_v6  ;;  %v732_v14 = vmul.f32 %v6180_v7, %v6172_v60  ;;  %v6185_v17 = vadd.f32 1e-05, %v689_v11  ;;  %vm738_vm10 = vweird.f32 %v6180_v7 }
 0x124   : > { %v706_v12 = vmul.f32 %v5503_v61, %v705_v8  ;;  %v712_v15 = vmul.f32 %v5507_v9, %v694_v62  ;;  %vm718_vm4 = vweird.f32 %v5507_v9  ;;  %vm739_vm12 = vmor %vm737_vm9, %vm738_vm10  ;;  %vm910_vm9 = vcmask 523264  }
 0x125   : > { %5508 = vrsqrt.f32 %v695_v10  ;;  %v733_v19 = vmul.f32 %v6180_v7, %v732_v14  ;;  %vm719_vm6 = vmor %vm717_vm5, %vm718_vm4  ;;  %vm727_vm7 = vweird.f32 %v695_v10  ;;  %vm747_vm15 = vweird.f32 %v6185_v17 }
 0x126   : > { %v713_v16 = vmul.f32 %v5507_v9, %v712_v15  ;;  %v710_v22 = vsel %vm709_vm3, %v5503_v61, %v706_v12  ;;  %5510 = vrsqrt.f32 %v6185_v17 }
 0x127   : > { %v781_v29 = vmul.f32 %v710_v22, %v6109_v18  ;;  %v734_v31 = vmul.f32 0.5, %v733_v19  ;;  %v6201_v18 = vld [vmem:[%s8284_s25] ss:$0 sm:$0xff]  ;;  %s8263_s25 = smov 96  }
 0x128   : > { %v714_v20 = vmul.f32 0.5, %v713_v16  ;;  %v680_v21 = vpop.xlane.xlu1 %679  ;;  %v682_v16 = vpop.xlane.xlu2 %681 }
 0x129   : > { %v690_v23 = vmul.f32 %v680_v21, %v6106_v13  ;;  %v792_v40 = vmul.f32 %v6194_v30, %v781_v29  ;;  %v735_v42 = vsub.f32 1.5, %v734_v31 }
 0x12a   : > { %v715_v24 = vsub.f32 1.5, %v714_v20 }
 0x12b   : > { %v5509_v26 = vpop.eup %5508  ;;  %v698_v27 = vadd.f32 1e-05, %v690_v23  ;;  %v803_v47 = vadd.f32 %v6201_v18, %v792_v40  ;;  %v736_v49 = vmul.f32 %v6180_v7, %v735_v42 }
 0x12c   : > { %v716_v32 = vmul.f32 %v5507_v9, %v715_v24  ;;  %v722_v35 = vmul.f32 %v5509_v26, %v695_v10  ;;  %vm728_vm8 = vweird.f32 %v5509_v26  ;;  %v5511_v44 = vpop.eup %5510 }
 0x12d   : > { %5512 = vrsqrt.f32 %v698_v27  ;;  %vm729_vm11 = vmor %vm727_vm7, %vm728_vm8  ;;  %v742_v51 = vmul.f32 %v5511_v44, %v6185_v17  ;;  %v740_v57 = vsel %vm739_vm12, %v6180_v7, %v736_v49  ;;  %vm757_vm13 = vweird.f32 %v698_v27 }
 0x12e   : > { %v723_v37 = vmul.f32 %v5509_v26, %v722_v35  ;;  %v720_v38 = vsel %vm719_vm6, %v5507_v9, %v716_v32  ;;  %v784_v60 = vmul.f32 %v740_v57, %v6115_v25  ;;  %vm748_vm0 = vweird.f32 %v5511_v44 }
 0x12f   : > { %v782_v39 = vmul.f32 %v720_v38, %v6119_v28  ;;  %v743_v56 = vmul.f32 %v5511_v44, %v742_v51  ;;  %vm749_vm2 = vmor %vm747_vm15, %vm748_vm0  ;;  %v691_v17 = vmul.f32 %v682_v16, %v6106_v13 }
 0x130   : > { %v724_v43 = vmul.f32 0.5, %v723_v37  ;;  %v795_v1 = vmul.f32 %v6194_v30, %v784_v60 }
 0x131   : > { %v793_v45 = vmul.f32 %v6194_v30, %v782_v39  ;;  %v744_v61 = vmul.f32 0.5, %v743_v56  ;;  %v699_v19 = vadd.f32 1e-05, %v691_v17 }
 0x132   : > { %v725_v46 = vsub.f32 1.5, %v724_v43 }
 0x133   : > { %v5513_v28 = vpop.eup %5512  ;;  %v804_v48 = vadd.f32 %v6201_v18, %v793_v45  ;;  %v745_v2 = vsub.f32 1.5, %v744_v61  ;;  %5514 = vrsqrt.f32 %v699_v19  ;;  %vm767_vm3 = vweird.f32 %v699_v19 }
 0x134   : > { %v726_v50 = vmul.f32 %v5509_v26, %v725_v46  ;;  %v752_v52 = vmul.f32 %v5513_v28, %v698_v27  ;;  %vm758_vm14 = vweird.f32 %v5513_v28 }
 0x135   : > { %v811_v53 = vpack.c.bf16 %v804_v48, %v803_v47  ;;  %vm759_vm1 = vmor %vm757_vm13, %vm758_vm14  ;;  %v746_v5 = vmul.f32 %v5511_v44, %v745_v2 }
 0x136   : > { %v753_v54 = vmul.f32 %v5513_v28, %v752_v52  ;;  %v730_v55 = vsel %vm729_vm11, %v5509_v26, %v726_v50 }
 0x137   : > { %887 = vmatmul.bf16.vlgmr.msra.gmra.mxu0 %v811_v53  ;;  %v783_v58 = vmul.f32 %v730_v55, %v6128_v34  ;;  %v806_v34 = vadd.f32 %v6201_v18, %v795_v1  ;;  %v750_v7 = vsel %vm749_vm2, %v5511_v44, %v746_v5  ;;  %v5945_v55 = vmov 64.0  }
 0x138   : > { %v754_v59 = vmul.f32 0.5, %v753_v54  ;;  %v785_v9 = vmul.f32 %v750_v7, %v6126_v33 }
 0x139   : > { %v794_v62 = vmul.f32 %v6194_v30, %v783_v58  ;;  %v5515_v20 = vpop.eup %5514 }
 0x13a   : > { %v755_v0 = vsub.f32 1.5, %v754_v59  ;;  %v796_v11 = vmul.f32 %v6194_v30, %v785_v9  ;;  %v762_v21 = vmul.f32 %v5515_v20, %v699_v19  ;;  %vm768_vm4 = vweird.f32 %v5515_v20 }
 0x13b   : > { %v805_v3 = vadd.f32 %v6201_v18, %v794_v62  ;;  %vm769_vm5 = vmor %vm767_vm3, %vm768_vm4 }
 0x13c   : > { %v756_v4 = vmul.f32 %v5513_v28, %v755_v0  ;;  %v807_v14 = vadd.f32 %v6201_v18, %v796_v11 }
 0x13d   : > { %v812_v25 = vpack.c.bf16 %v806_v34, %v805_v3 }
 0x13e   : > { %v760_v6 = vsel %vm759_vm1, %v5513_v28, %v756_v4 }
 0x13f   : > { %v786_v8 = vmul.f32 %v760_v6, %v6140_v41  ;;  %v763_v41 = vmul.f32 %v5515_v20, %v762_v21 }
 0x141   : > { %v797_v10 = vmul.f32 %v6194_v30, %v786_v8  ;;  %v764_v24 = vmul.f32 0.5, %v763_v41 }
 0x143   : > { %v808_v12 = vadd.f32 %v6201_v18, %v797_v10  ;;  %v765_v26 = vsub.f32 1.5, %v764_v24 }
 0x145   : > { %v813_v15 = vpack.c.bf16 %v808_v12, %v807_v14  ;;  %v766_v29 = vmul.f32 %v5515_v20, %v765_v26 }
 0x147   : > { %892 = vmatmul.bf16.gmra.mxu0 %v812_v25  ;;  %v770_v37 = vsel %vm769_vm5, %v5515_v20, %v766_v29 }
 0x148   : > { %v787_v39 = vmul.f32 %v770_v37, %v6131_v36  ;;  %v4904_v37 = vld [vmem:[%s8245_s6 + $0x30] sm:$0xf] }
 0x14a   : > { %v798_v43 = vmul.f32 %v6194_v30, %v787_v39  ;;  %v5327_v39 = vld [vmem:[%s8245_s6 + $0x34] sm:$0xf] }
 0x14c   : > { %v809_v45 = vadd.f32 %v6201_v18, %v798_v43  ;;  %v4896_v43 = vld [vmem:[%s8245_s6 + $0x20] sm:$0xf] }
 0x157   : > { %897 = vmatmul.bf16.gmra.mxu0 %v813_v15 }
 0x192   : > { %v684_v22 = vpop.xlane.xlu0 %683 }
 0x193   : > { %v692_v33 = vmul.f32 %v684_v22, %v6106_v13 }
 0x195   : > { %v700_v23 = vadd.f32 1e-05, %v692_v33 }
 0x197   : > { %5516 = vrsqrt.f32 %v700_v23  ;;  %vm777_vm7 = vweird.f32 %v700_v23 }
 0x198   : > { %5518 = vrcp.f32 %v5945_v55  ;;  %v4890_v55 = vld [vmem:[%s8245_s6 + $0x18] sm:$0xf0] }
 0x19d   : > { %v5517_v27 = vpop.eup %5516 }
 0x19e   : > { %v772_v31 = vmul.f32 %v5517_v27, %v700_v23  ;;  %vm778_vm6 = vweird.f32 %v5517_v27  ;;  %v5519_v56 = vpop.eup %5518 }
 0x19f   : > { %vm779_vm8 = vmor %vm777_vm7, %vm778_vm6  ;;  %v936_v57 = vmul.f32 64.0, %v5519_v56  ;;  %vm940_vm10 = vweird.f32 %v5519_v56 }
 0x1a0   : > { %v773_v32 = vmul.f32 %v5517_v27, %v772_v31 }
 0x1a1   : > { %v937_v58 = vsub.f32 1.0, %v936_v57 }
 0x1a2   : > { %v774_v35 = vmul.f32 0.5, %v773_v32 }
 0x1a3   : > { %v938_v59 = vmul.f32 %v5519_v56, %v937_v58 }
 0x1a4   : > { %v775_v38 = vsub.f32 1.5, %v774_v35 }
 0x1a5   : > { %v939_v60 = vadd.f32 %v5519_v56, %v938_v59 }
 0x1a6   : > { %v776_v40 = vmul.f32 %v5517_v27, %v775_v38  ;;  %v5328_v38 = vld [vmem:[%s8245_s6 + $0x34] sm:$0xf0] }
 0x1a7   : > { %v6256_v61 = vsel %vm940_vm10, %v5519_v56, %v939_v60 }
 0x1a8   : > { %v780_v13 = vsel %vm779_vm8, %v5517_v27, %v776_v40  ;;  %v4905_v40 = vor.u32 %v5328_v38, %v4904_v37 }
 0x1a9   : > { %v788_v42 = vmul.f32 %v780_v13, %v6174_v63  ;;  %v4906_v13 = vld [vmem:[%s8245_s6 + $0x38] sm:$0xf0] }
 0x1aa   : > { %1190 = vmatpush.bf16.msra.mxu1 %v4905_v40 }
 0x1ab   : > { %v799_v44 = vmul.f32 %v6194_v30, %v788_v42  ;;  %v4909_v42 = vor.u32 %v5327_v39, %v4906_v13 }
 0x1ad   : > { %v810_v46 = vadd.f32 %v6201_v18, %v799_v44  ;;  %1219 = vmatpush.bf16.msra.mxu2 %v4909_v42  ;;  %v5326_v44 = vld [vmem:[%s8245_s6 + $0x24] sm:$0xf0] }
 0x1af   : > { %v814_v28 = vpack.c.bf16 %v810_v46, %v809_v45  ;;  %v5325_v45 = vld [vmem:[%s8245_s6 + $0x24] sm:$0xf]  ;;  %v4897_v46 = vor.u32 %v5326_v44, %v4896_v43 }
 0x1b1   : > { %902 = vmatmul.bf16.gmra.mxu0 %v814_v28  ;;  %v4898_v28 = vld [vmem:[%s8245_s6 + $0x28] sm:$0xf0]  ;;  %1191 = vmatpush.bf16.msra.mxu1 %v4897_v46 }
 0x1b4   : > { %v6232_v47 = vpop.f32.mrf.mxu0 }
 0x1b5   : > { %v911_v36 = vsel %vm910_vm9, %v6232_v47, 0.0 }
 0x1b6   : > { %912 = vadd.xlane.f32.xlu1 %v911_v36  ;;  %v4901_v36 = vor.u32 %v5325_v45, %v4898_v28 }
 0x1b8   : > { %1220 = vmatpush.bf16.msra.mxu2 %v4901_v36  ;;  %v6378_v36 = vld [vmem:[%s8285_s4] ss:$0 sm:$0xff] }
 0x1bc   : > { %v6236_v48 = vpop.f32.mrf.mxu0 }
 0x1bd   : > { %v914_v63 = vsel %vm910_vm9, %v6236_v48, 0.0 }
 0x1be   : > { %915 = vadd.xlane.f32.xlu2 %v914_v63  ;;  %v4888_v63 = vld [vmem:[%s8245_s6 + $0x10] sm:$0xf] }
 0x1c4   : > { %v6240_v30 = vpop.f32.mrf.mxu0 }
 0x1c5   : > { %v917_v18 = vsel %vm910_vm9, %v6240_v30, 0.0 }
 0x1c6   : > { %918 = vadd.xlane.f32.xlu0 %v917_v18  ;;  %v5324_v18 = vld [vmem:[%s8245_s6 + $0x14] sm:$0xf0] }
 0x1cc   : > { %v6244_v49 = vpop.f32.mrf.mxu0 }
 0x1cd   : > { %v920_v50 = vsel %vm910_vm9, %v6244_v49, 0.0 }
 0x1ce   : > { %921 = vadd.xlane.f32.xlu1 %v920_v50  ;;  %v5323_v50 = vld [vmem:[%s8245_s6 + $0x14] sm:$0xf] }
 0x1cf   : > { %v4893_v58 = vor.u32 %v5323_v50, %v4890_v55 }
 0x1d1   : > { %1221 = vmatpush.bf16.msra.mxu2 %v4893_v58 }
 0x1d4   : > { %v6248_v51 = vpop.f32.mrf.mxu0 }
 0x1d5   : > { %v923_v52 = vsel %vm910_vm9, %v6248_v51, 0.0 }
 0x1d6   : > { %924 = vadd.xlane.f32.xlu2 %v923_v52 }
 0x1dc   : > { %v6252_v53 = vpop.f32.mrf.mxu0 }
 0x1dd   : > { %v926_v54 = vsel %vm910_vm9, %v6252_v53, 0.0 }
 0x1de   : > { %927 = vadd.xlane.f32.xlu0 %v926_v54  ;;  %v4889_v54 = vor.u32 %v5324_v18, %v4888_v63 }
 0x1e0   : > { %1192 = vmatpush.bf16.msra.mxu1 %v4889_v54 }
 0x229   : > { %v913_v62 = vpop.xlane.xlu1 %912 }
 0x22a   : > { %v942_v0 = vmul.f32 %v6256_v61, %v913_v62  ;;  %v4880_v62 = vld [vmem:[%s8245_s6] sm:$0xf] }
 0x22c   : > { %v6260_v1 = vsub.f32 %v6232_v47, %v942_v0  ;;  %v5322_v0 = vld [vmem:[%s8245_s6 + $0x4] sm:$0xf0] }
 0x22e   : > { %v6262_v2 = vpop.f32.mrf.mxu0  ;;  %v958_v3 = vmul.f32 %v6260_v1, %v6260_v1 }
 0x22f   : > { %v929_v4 = vsel %vm910_vm9, %v6262_v2, 0.0 }
 0x230   : > { %930 = vadd.xlane.f32.xlu0 %v929_v4  ;;  %v966_v34 = vsel %vm910_vm9, %v958_v3, 0.0  ;;  %v5321_v3 = vld [vmem:[%s8245_s6 + $0x4] sm:$0xf] }
 0x231   : > { %v916_v5 = vpop.xlane.xlu2 %915  ;;  %967 = vadd.xlane.f32.xlu1 %v966_v34  ;;  %v4881_v34 = vor.u32 %v5322_v0, %v4880_v62 }
 0x232   : > { %v943_v25 = vmul.f32 %v6256_v61, %v916_v5  ;;  %v4882_v5 = vld [vmem:[%s8245_s6 + $0x8] sm:$0xf0] }
 0x233   : > { %1193 = vmatpush.bf16.msra.mxu1 %v4881_v34 }
 0x234   : > { %v6271_v6 = vsub.f32 %v6236_v48, %v943_v25 }
 0x236   : > { %v6273_v7 = vpop.f32.mrf.mxu0  ;;  %v959_v8 = vmul.f32 %v6271_v6, %v6271_v6 }
 0x237   : > { %v932_v9 = vsel %vm910_vm9, %v6273_v7, 0.0 }
 0x238   : > { %v969_v10 = vsel %vm910_vm9, %v959_v8, 0.0  ;;  %v4885_v8 = vor.u32 %v5321_v3, %v4882_v5 }
 0x239   : > { %970 = vadd.xlane.f32.xlu2 %v969_v10  ;;  %933 = vadd.xlane.f32.xlu1 %v932_v9  ;;  %v919_v11 = vpop.xlane.xlu0 %918 }
 0x23a   : > { %v944_v12 = vmul.f32 %v6256_v61, %v919_v11  ;;  %1222 = vmatpush.bf16.msra.mxu2 %v4885_v8 }
 0x23c   : > { %v6282_v14 = vsub.f32 %v6240_v30, %v944_v12 }
 0x23e   : > { %v960_v15 = vmul.f32 %v6282_v14, %v6282_v14 }
 0x240   : > { %v972_v16 = vsel %vm910_vm9, %v960_v15, 0.0 }
 0x241   : > { %v922_v17 = vpop.xlane.xlu1 %921  ;;  %973 = vadd.xlane.f32.xlu2 %v972_v16 }
 0x242   : > { %v945_v19 = vmul.f32 %v6256_v61, %v922_v17 }
 0x244   : > { %v6289_v20 = vsub.f32 %v6244_v49, %v945_v19 }
 0x246   : > { %v961_v21 = vmul.f32 %v6289_v20, %v6289_v20 }
 0x248   : > { %v975_v41 = vsel %vm910_vm9, %v961_v21, 0.0 }
 0x249   : > { %v925_v22 = vpop.xlane.xlu2 %924  ;;  %976 = vadd.xlane.f32.xlu0 %v975_v41 }
 0x24a   : > { %v946_v33 = vmul.f32 %v6256_v61, %v925_v22 }
 0x24c   : > { %v6296_v23 = vsub.f32 %v6248_v51, %v946_v33 }
 0x24e   : > { %v962_v24 = vmul.f32 %v6296_v23, %v6296_v23 }
 0x250   : > { %v978_v26 = vsel %vm910_vm9, %v962_v24, 0.0 }
 0x251   : > { %979 = vadd.xlane.f32.xlu1 %v978_v26  ;;  %v928_v27 = vpop.xlane.xlu0 %927 }
 0x252   : > { %v947_v29 = vmul.f32 %v6256_v61, %v928_v27 }
 0x254   : > { %v6303_v31 = vsub.f32 %v6252_v53, %v947_v29 }
 0x256   : > { %v963_v32 = vmul.f32 %v6303_v31, %v6303_v31 }
 0x258   : > { %v981_v35 = vsel %vm910_vm9, %v963_v32, 0.0 }
 0x259   : > { %982 = vadd.xlane.f32.xlu2 %v981_v35 }
 0x2a3   : > { %v931_v52 = vpop.xlane.xlu0 %930 }
 0x2a4   : > { %v948_v56 = vmul.f32 %v6256_v61, %v931_v52  ;;  %v968_v57 = vpop.xlane.xlu1 %967 }
 0x2a5   : > { %v990_v59 = vmul.f32 %v968_v57, %v6256_v61 }
 0x2a6   : > { %v6347_v60 = vsub.f32 %v6262_v2, %v948_v56 }
 0x2a7   : > { %v998_v4 = vadd.f32 1e-05, %v990_v59 }
 0x2a8   : > { %v964_v25 = vmul.f32 %v6347_v60, %v6347_v60 }
 0x2a9   : > { %5520 = vrsqrt.f32 %v998_v4  ;;  %vm1012_vm12 = vweird.f32 %v998_v4 }
 0x2aa   : > { %v984_v9 = vsel %vm910_vm9, %v964_v25, 0.0 }
 0x2ab   : > { %985 = vadd.xlane.f32.xlu0 %v984_v9 }
 0x2ac   : > { %v971_v10 = vpop.xlane.xlu2 %970  ;;  %v934_v11 = vpop.xlane.xlu1 %933 }
 0x2ad   : > { %v991_v12 = vmul.f32 %v971_v10, %v6256_v61  ;;  %v949_v15 = vmul.f32 %v6256_v61, %v934_v11 }
 0x2af   : > { %v5521_v16 = vpop.eup %5520  ;;  %v999_v17 = vadd.f32 1e-05, %v991_v12  ;;  %v6367_v19 = vsub.f32 %v6273_v7, %v949_v15 }
 0x2b0   : > { %v1007_v21 = vmul.f32 %v5521_v16, %v998_v4  ;;  %vm1013_vm11 = vweird.f32 %v5521_v16 }
 0x2b1   : > { %5522 = vrsqrt.f32 %v999_v17  ;;  %v965_v41 = vmul.f32 %v6367_v19, %v6367_v19  ;;  %vm1014_vm13 = vmor %vm1012_vm12, %vm1013_vm11  ;;  %vm1022_vm15 = vweird.f32 %v999_v17 }
 0x2b2   : > { %v1008_v22 = vmul.f32 %v5521_v16, %v1007_v21 }
 0x2b3   : > { %v987_v33 = vsel %vm910_vm9, %v965_v41, 0.0 }
 0x2b4   : > { %v1009_v24 = vmul.f32 0.5, %v1008_v22  ;;  %988 = vadd.xlane.f32.xlu1 %v987_v33  ;;  %v974_v26 = vpop.xlane.xlu2 %973 }
 0x2b5   : > { %v992_v27 = vmul.f32 %v974_v26, %v6256_v61 }
 0x2b6   : > { %v1010_v29 = vsub.f32 1.5, %v1009_v24 }
 0x2b7   : > { %v5523_v32 = vpop.eup %5522  ;;  %v1000_v35 = vadd.f32 1e-05, %v992_v27 }
 0x2b8   : > { %v1011_v37 = vmul.f32 %v5521_v16, %v1010_v29  ;;  %v1017_v38 = vmul.f32 %v5523_v32, %v999_v17  ;;  %vm1023_vm14 = vweird.f32 %v5523_v32 }
 0x2b9   : > { %5524 = vrsqrt.f32 %v1000_v35  ;;  %vm1024_vm0 = vmor %vm1022_vm15, %vm1023_vm14  ;;  %vm1032_vm2 = vweird.f32 %v1000_v35 }
 0x2ba   : > { %v1018_v39 = vmul.f32 %v5523_v32, %v1017_v38  ;;  %v1015_v40 = vsel %vm1014_vm13, %v5521_v16, %v1011_v37 }
 0x2bb   : > { %v1086_v28 = vmul.f32 %v1015_v40, %v6260_v1  ;;  %v6385_v1 = vld [vmem:[%s8244_s5] ss:$0 sm:$0xff] }
 0x2bc   : > { %v1019_v13 = vmul.f32 0.5, %v1018_v39  ;;  %v977_v42 = vpop.xlane.xlu0 %976 }
 0x2bd   : > { %v993_v43 = vmul.f32 %v977_v42, %v6256_v61  ;;  %v1097_v55 = vmul.f32 %v6378_v36, %v1086_v28 }
 0x2be   : > { %v1020_v44 = vsub.f32 1.5, %v1019_v13 }
 0x2bf   : > { %v5525_v45 = vpop.eup %5524  ;;  %v1001_v46 = vadd.f32 1e-05, %v993_v43  ;;  %v1108_v4 = vadd.f32 %v6385_v1, %v1097_v55 }
 0x2c0   : > { %v1021_v63 = vmul.f32 %v5523_v32, %v1020_v44  ;;  %v1027_v18 = vmul.f32 %v5525_v45, %v1000_v35  ;;  %vm1033_vm1 = vweird.f32 %v5525_v45 }
 0x2c1   : > { %5526 = vrsqrt.f32 %v1001_v46  ;;  %vm1034_vm3 = vmor %vm1032_vm2, %vm1033_vm1  ;;  %vm1042_vm5 = vweird.f32 %v1001_v46 }
 0x2c2   : > { %v1025_v50 = vsel %vm1024_vm0, %v5523_v32, %v1021_v63  ;;  %v1028_v52 = vmul.f32 %v5525_v45, %v1027_v18 }
 0x2c3   : > { %v1087_v54 = vmul.f32 %v1025_v50, %v6271_v6 }
 0x2c4   : > { %v1029_v56 = vmul.f32 0.5, %v1028_v52  ;;  %v980_v57 = vpop.xlane.xlu1 %979 }
 0x2c5   : > { %v994_v58 = vmul.f32 %v980_v57, %v6256_v61  ;;  %v1098_v59 = vmul.f32 %v6378_v36, %v1087_v54 }
 0x2c6   : > { %v1030_v62 = vsub.f32 1.5, %v1029_v56 }
 0x2c7   : > { %v5527_v0 = vpop.eup %5526  ;;  %v1002_v3 = vadd.f32 1e-05, %v994_v58  ;;  %v1109_v6 = vadd.f32 %v6385_v1, %v1098_v59 }
 0x2c8   : > { %v1031_v34 = vmul.f32 %v5525_v45, %v1030_v62  ;;  %v1037_v5 = vmul.f32 %v5527_v0, %v1001_v46  ;;  %vm1043_vm4 = vweird.f32 %v5527_v0 }
 0x2c9   : > { %5528 = vrsqrt.f32 %v1002_v3  ;;  %v1116_v25 = vpack.c.bf16 %v1109_v6, %v1108_v4  ;;  %vm1044_vm6 = vmor %vm1042_vm5, %vm1043_vm4  ;;  %vm1052_vm8 = vweird.f32 %v1002_v3  ;;  %vm1268_vm4 = vcmask 261120  }
 0x2ca   : > { %v1038_v8 = vmul.f32 %v5527_v0, %v1037_v5  ;;  %v1035_v9 = vsel %vm1034_vm3, %v5525_v45, %v1031_v34 }
 0x2cb   : > { %4910 = vmatmul.msk.bf16.vlgmr.msra.gmra.mxu1 %vm910_vm9, %v1116_v25  ;;  %4914 = vmatmul.msk.bf16.vlgmr.msra.gmra.mxu2 %vm910_vm9, %v1116_v25  ;;  %v1088_v21 = vmul.f32 %v1035_v9, %v6282_v14 }
 0x2cc   : > { %v1039_v10 = vmul.f32 0.5, %v1038_v8  ;;  %v983_v11 = vpop.xlane.xlu2 %982 }
 0x2cd   : > { %v995_v12 = vmul.f32 %v983_v11, %v6256_v61  ;;  %v1099_v27 = vmul.f32 %v6378_v36, %v1088_v21 }
 0x2ce   : > { %v1040_v15 = vsub.f32 1.5, %v1039_v10 }
 0x2cf   : > { %v5529_v16 = vpop.eup %5528  ;;  %v1003_v17 = vadd.f32 1e-05, %v995_v12  ;;  %v1110_v38 = vadd.f32 %v6385_v1, %v1099_v27 }
 0x2d0   : > { %v1041_v41 = vmul.f32 %v5527_v0, %v1040_v15  ;;  %v1047_v22 = vmul.f32 %v5529_v16, %v1002_v3  ;;  %vm1053_vm7 = vweird.f32 %v5529_v16 }
 0x2d1   : > { %5530 = vrsqrt.f32 %v1003_v17  ;;  %vm1054_vm10 = vmor %vm1052_vm8, %vm1053_vm7  ;;  %vm1062_vm12 = vweird.f32 %v1003_v17 }
 0x2d2   : > { %v1045_v33 = vsel %vm1044_vm6, %v5527_v0, %v1041_v41  ;;  %v1048_v24 = vmul.f32 %v5529_v16, %v1047_v22 }
 0x2d3   : > { %v1089_v26 = vmul.f32 %v1045_v33, %v6289_v20 }
 0x2d4   : > { %v1049_v29 = vmul.f32 0.5, %v1048_v24 }
 0x2d5   : > { %v1100_v32 = vmul.f32 %v6378_v36, %v1089_v26  ;;  %v1128_v26 = vld [vmem:[%s8246_s7] sm:$0x3] }
 0x2d6   : > { %v1050_v35 = vsub.f32 1.5, %v1049_v29  ;;  %v1131_v27 = vperm.slane %v1128_v26, 1 }
 0x2d7   : > { %v5531_v37 = vpop.eup %5530  ;;  %v1111_v14 = vadd.f32 %v6385_v1, %v1100_v32 }
 0x2d8   : > { %v1051_v39 = vmul.f32 %v5529_v16, %v1050_v35  ;;  %v1057_v40 = vmul.f32 %v5531_v37, %v1003_v17  ;;  %vm1063_vm11 = vweird.f32 %v5531_v37 }
 0x2d9   : > { %v1117_v13 = vpack.c.bf16 %v1111_v14, %v1110_v38  ;;  %vm1064_vm13 = vmor %vm1062_vm12, %vm1063_vm11 }
 0x2da   : > { %v1058_v42 = vmul.f32 %v5531_v37, %v1057_v40  ;;  %v1055_v20 = vsel %vm1054_vm10, %v5529_v16, %v1051_v39 }
 0x2db   : > { %4911 = vmatmul.msk.bf16.gmra.mxu1 %vm910_vm9, %v1117_v13  ;;  %4915 = vmatmul.msk.bf16.gmra.mxu2 %vm910_vm9, %v1117_v13  ;;  %v1090_v45 = vmul.f32 %v1055_v20, %v6296_v23 }
 0x2dc   : > { %v1059_v43 = vmul.f32 0.5, %v1058_v42 }
 0x2dd   : > { %v1101_v18 = vmul.f32 %v6378_v36, %v1090_v45 }
 0x2de   : > { %v1060_v44 = vsub.f32 1.5, %v1059_v43 }
 0x2df   : > { %v1112_v52 = vadd.f32 %v6385_v1, %v1101_v18 }
 0x2e0   : > { %v1061_v46 = vmul.f32 %v5531_v37, %v1060_v44 }
 0x2e2   : > { %v1065_v28 = vsel %vm1064_vm13, %v5531_v37, %v1061_v46 }
 0x2e3   : > { %v1091_v63 = vmul.f32 %v1065_v28, %v6303_v31 }
 0x2e5   : > { %v1102_v50 = vmul.f32 %v6378_v36, %v1091_v63  ;;  %v6440_v63 = vld [vmem:[%s8247_s8] sm:$0xff] }
 0x2e7   : > { %v1113_v54 = vadd.f32 %v6385_v1, %v1102_v50 }
 0x2e9   : > { %v1118_v55 = vpack.c.bf16 %v1113_v54, %v1112_v52  ;;  %v6455_v52 = vld [vmem:[%s8247_s8 + $0x18] sm:$0xff] }
 0x2eb   : > { %4912 = vmatmul.msk.bf16.gmra.mxu1 %vm910_vm9, %v1118_v55  ;;  %4916 = vmatmul.msk.bf16.gmra.mxu2 %vm910_vm9, %v1118_v55  ;;  %v6462_v55 = vld [vmem:[%s8247_s8 + $0x30] sm:$0xff] }
 0x31e   : > { %v986_v23 = vpop.xlane.xlu0 %985 }
 0x31f   : > { %v996_v56 = vmul.f32 %v986_v23, %v6256_v61 }
 0x321   : > { %v1004_v57 = vadd.f32 1e-05, %v996_v56 }
 0x323   : > { %5532 = vrsqrt.f32 %v1004_v57  ;;  %vm1072_vm15 = vweird.f32 %v1004_v57 }
 0x327   : > { %v989_v58 = vpop.xlane.xlu1 %988 }
 0x328   : > { %v997_v31 = vmul.f32 %v989_v58, %v6256_v61 }
 0x329   : > { %v5533_v59 = vpop.eup %5532 }
 0x32a   : > { %v1067_v62 = vmul.f32 %v5533_v59, %v1004_v57  ;;  %v1005_v0 = vadd.f32 1e-05, %v997_v31  ;;  %vm1073_vm14 = vweird.f32 %v5533_v59 }
 0x32b   : > { %vm1074_vm0 = vmor %vm1072_vm15, %vm1073_vm14 }
 0x32c   : > { %v1068_v3 = vmul.f32 %v5533_v59, %v1067_v62  ;;  %5534 = vrsqrt.f32 %v1005_v0  ;;  %vm1082_vm2 = vweird.f32 %v1005_v0 }
 0x32e   : > { %v1069_v4 = vmul.f32 0.5, %v1068_v3 }
 0x330   : > { %v1070_v6 = vsub.f32 1.5, %v1069_v4 }
 0x332   : > { %v5535_v34 = vpop.eup %5534  ;;  %v1071_v5 = vmul.f32 %v5533_v59, %v1070_v6 }
 0x333   : > { %v1077_v25 = vmul.f32 %v5535_v34, %v1005_v0  ;;  %vm1083_vm1 = vweird.f32 %v5535_v34 }
 0x334   : > { %v1075_v9 = vsel %vm1074_vm0, %v5533_v59, %v1071_v5  ;;  %vm1084_vm3 = vmor %vm1082_vm2, %vm1083_vm1 }
 0x335   : > { %v1078_v8 = vmul.f32 %v5535_v34, %v1077_v25  ;;  %v1092_v12 = vmul.f32 %v1075_v9, %v6347_v60 }
 0x337   : > { %v1079_v10 = vmul.f32 0.5, %v1078_v8  ;;  %v1103_v21 = vmul.f32 %v6378_v36, %v1092_v12 }
 0x339   : > { %v1080_v11 = vsub.f32 1.5, %v1079_v10  ;;  %v1114_v22 = vadd.f32 %v6385_v1, %v1103_v21 }
 0x33b   : > { %v1081_v15 = vmul.f32 %v5535_v34, %v1080_v11 }
 0x33d   : > { %v1085_v16 = vsel %vm1084_vm3, %v5535_v34, %v1081_v15 }
 0x33e   : > { %v1093_v17 = vmul.f32 %v1085_v16, %v6367_v19 }
 0x340   : > { %v1104_v41 = vmul.f32 %v6378_v36, %v1093_v17 }
 0x342   : > { %v1115_v33 = vadd.f32 %v6385_v1, %v1104_v41  ;;  %v1130_v1 = vperm.slane %v1128_v26, 0 }
 0x344   : > { %v1119_v24 = vpack.c.bf16 %v1115_v33, %v1114_v22 }
 0x346   : > { %4913 = vmatmul.msk.bf16.gmra.mxu1 %vm910_vm9, %v1119_v24  ;;  %4917 = vmatmul.msk.bf16.gmra.mxu2 %vm910_vm9, %v1119_v24 }
 0x348   : > { %v1195_v60 = vpop.f32.mrf.mxu1 }
 0x349   : > { %v1196_v28 = vadd.f32 %v1195_v60, %v1130_v1 }
 0x34e   : > { %v1224_v19 = vpop.f32.mrf.mxu2 }
 0x34f   : > { %v1225_v29 = vadd.f32 %v1224_v19, %v1131_v27 }
 0x350   : > { %v1197_v32 = vpop.f32.mrf.mxu1 }
 0x351   : > { %v1198_v46 = vadd.f32 %v1197_v32, %v1130_v1  ;;  %v1245_v32 = vld [vmem:[%s8247_s8 + $0x8] sm:$0xff] }
 0x353   : > { %v6442_v18 = vpack.c.bf16 %v1198_v46, %v1196_v28  ;;  %v6521_v46 = vld [vmem:[%s8247_s8 + $0x38] sm:$0xff]  ;;  %v6526_v28 = vld [vmem:[%s8247_s8 + $0x28] sm:$0xff] }
 0x356   : > { %v1226_v35 = vpop.f32.mrf.mxu2 }
 0x357   : > { %v1227_v36 = vadd.f32 %v1226_v35, %v1131_v27 }
 0x358   : > { %v1200_v37 = vpop.f32.mrf.mxu1 }
 0x359   : > { %v6423_v38 = vpack.c.bf16 %v1227_v36, %v1225_v29  ;;  %v1201_v39 = vadd.f32 %v1200_v37, %v1130_v1 }
 0x35e   : > { %v1229_v50 = vpop.f32.mrf.mxu2 }
 0x35f   : > { %v1230_v10 = vadd.f32 %v1229_v50, %v1131_v27 }
 0x360   : > { %v1202_v14 = vpop.f32.mrf.mxu1 }
 0x361   : > { %v1203_v40 = vadd.f32 %v1202_v14, %v1130_v1 }
 0x363   : > { %v6425_v13 = vpack.c.bf16 %v1203_v40, %v1201_v39 }
 0x365   : > { %1469 = vrot.lane.b32.xlu1 %v6425_v13, %s8267_s24 }
 0x366   : > { %v1231_v54 = vpop.f32.mrf.mxu2 }
 0x367   : > { %v1232_v8 = vadd.f32 %v1231_v54, %v1131_v27 }
 0x368   : > { %v1205_v42 = vpop.f32.mrf.mxu1 }
 0x369   : > { %v1206_v43 = vadd.f32 %v1205_v42, %v1130_v1  ;;  %v6476_v11 = vpack.c.bf16 %v1232_v8, %v1230_v10 }
 0x36d   : > { %1461 = vrot.lane.b32.xlu1 %v6425_v13, %s8263_s25 }
 0x36e   : > { %v1234_v23 = vpop.f32.mrf.mxu2 }
 0x36f   : > { %v1235_v25 = vadd.f32 %v1234_v23, %v1131_v27 }
 0x370   : > { %v1207_v20 = vpop.f32.mrf.mxu1 }
 0x371   : > { %v1208_v44 = vadd.f32 %v1207_v20, %v1130_v1 }
 0x373   : > { %v6431_v45 = vpack.c.bf16 %v1208_v44, %v1206_v43  ;;  %v6507_v43 = vld [vmem:[%s8247_s8 + $0x20] sm:$0xff]  ;;  %v1246_v44 = vld [vmem:[%s8247_s8 + $0x10] sm:$0xff] }
 0x375   : > { %1471 = vrot.lane.b32.xlu0 %v6431_v45, %s8267_s24  ;;  %1463 = vrot.lane.b32.xlu1 %v6431_v45, %s8263_s25 }
 0x376   : > { %v1236_v56 = vpop.f32.mrf.mxu2 }
 0x377   : > { %v1237_v34 = vadd.f32 %v1236_v56, %v1131_v27 }
 0x379   : > { %v6473_v9 = vpack.c.bf16 %v1237_v34, %v1235_v25 }
 0x37d   : > { %1459 = vrot.lane.b32.xlu0 %v6442_v18, %s8263_s25  ;;  %1483 = vrot.lane.b32.xlu1 %v6440_v63, %s8265_s29 }
 0x385   : > { %1264 = vrot.lane.b32.xlu0 %v6431_v45, %s8265_s29  ;;  %1489 = vrot.lane.b32.xlu1 %v6455_v52, %s8265_s29 }
 0x38d   : > { %1260 = vrot.lane.b32.xlu0 %v6442_v18, %s8265_s29  ;;  %1495 = vrot.lane.b32.xlu1 %v6462_v55, %s8265_s29 }
 0x395   : > { %1485 = vrot.lane.b32.xlu0 %v1245_v32, %s8265_s29 }
 0x39d   : > { %1491 = vrot.lane.b32.xlu0 %v6507_v43, %s8265_s29 }
 0x3a5   : > { %1497 = vrot.lane.b32.xlu0 %v6521_v46, %s8265_s29 }
 0x3c3   : > { %v1210_v57 = vpop.f32.mrf.mxu1 }
 0x3c4   : > { %v1211_v59 = vadd.f32 %v1210_v57, %v1130_v1 }
 0x3c9   : > { %v1239_v58 = vpop.f32.mrf.mxu2 }
 0x3ca   : > { %v1240_v4 = vadd.f32 %v1239_v58, %v1131_v27 }
 0x3cb   : > { %v1212_v31 = vpop.f32.mrf.mxu1 }
 0x3cc   : > { %v1213_v62 = vadd.f32 %v1212_v31, %v1130_v1 }
 0x3ce   : > { %v6466_v0 = vpack.c.bf16 %v1213_v62, %v1211_v59 }
 0x3d0   : > { %1473 = vrot.lane.b32.xlu2 %v6466_v0, %s8267_s24 }
 0x3d1   : > { %v1241_v3 = vpop.f32.mrf.mxu2 }
 0x3d2   : > { %v1242_v6 = vadd.f32 %v1241_v3, %v1131_v27 }
 0x3d4   : > { %v1417_v5 = vpack.c.bf16 %v1242_v6, %v1240_v4 }
 0x3d6   : > { %1662 = vrot.lane.b32.xlu1 %v1417_v5, %s8263_s25  ;;  %1434 = vmatpush.bf16.msrb.mxu1 %v1417_v5 }
 0x3d7   : > { %v1470_v12 = vpop.permute.xlu1 %1469 }
 0x3d8   : > { %1467 = vrot.lane.b32.xlu2 %v6442_v18, %s8267_s24  ;;  %v1523_v29 = vsel %vm1268_vm4, %v1470_v12, 0 }
 0x3da   : > { %1435 = vmatpush.bf16.msrb.mxu1 %v6473_v9 }
 0x3de   : > { %1436 = vmatpush.bf16.msrb.mxu1 %v6476_v11 }
 0x3df   : > { %v1462_v15 = vpop.permute.xlu1 %1461 }
 0x3e0   : > { %1266 = vrot.lane.b32.xlu2 %v6466_v0, %s8265_s29 }
 0x3e2   : > { %1437 = vmatpush.bf16.msrb.mxu1 %v6423_v38 }
 0x3e7   : > { %v1464_v16 = vpop.permute.xlu1 %1463  ;;  %v1472_v22 = vpop.permute.xlu0 %1471 }
 0x3e8   : > { %1262 = vrot.lane.b32.xlu2 %v6425_v13, %s8265_s29  ;;  %v1526_v24 = vsel %vm1268_vm4, %v1472_v22, 0 }
 0x3ef   : > { %v1484_v21 = vpop.permute.xlu1 %1483  ;;  %v1460_v26 = vpop.permute.xlu0 %1459 }
 0x3f0   : > { %1465 = vrot.lane.b32.xlu2 %v6466_v0, %s8263_s25 }
 0x3f7   : > { %v1490_v60 = vpop.permute.xlu1 %1489  ;;  %v1265_v36 = vpop.permute.xlu0 %1264 }
 0x3f8   : > { %v1288_v37 = vsel %vm1268_vm4, %v1265_v36, 0  ;;  %1487 = vrot.lane.b32.xlu2 %v1246_v44, %s8265_s29 }
 0x3ff   : > { %v6494_v35 = vpop.permute.xlu1 %1495  ;;  %v1261_v42 = vpop.permute.xlu0 %1260 }
 0x400   : > { %v1282_v20 = vsel %vm1268_vm4, %v1261_v42, 0  ;;  %1493 = vrot.lane.b32.xlu2 %v6526_v28, %s8265_s29 }
 0x407   : > { %v1486_v23 = vpop.permute.xlu0 %1485 }
 0x40f   : > { %v1492_v10 = vpop.permute.xlu0 %1491 }
 0x42a   : > { %v1474_v17 = vpop.permute.xlu2 %1473 }
 0x42b   : > { %v1529_v41 = vsel %vm1268_vm4, %v1474_v17, 0 }
 0x42c   : > { %1535 = vmatpush.bf16.xpose.msrb.mxu2 %v1529_v41 }
 0x432   : > { %v1468_v33 = vpop.permute.xlu2 %1467 }
 0x433   : > { %v1520_v1 = vsel %vm1268_vm4, %v1468_v33, 0 }
 0x434   : > { %1536 = vmatpush.bf16.xpose.msrb.mxu2 %v1526_v24 }
 0x43a   : > { %v1267_v27 = vpop.permute.xlu2 %1266 }
 0x43b   : > { %v1291_v19 = vsel %vm1268_vm4, %v1267_v27, 0 }
 0x43c   : > { %1297 = vmatpush.bf16.xpose.msra.mxu3 %v1291_v19  ;;  %1537 = vmatpush.bf16.xpose.msrb.mxu2 %v1523_v29 }
 0x442   : > { %v1263_v14 = vpop.permute.xlu2 %1262 }
 0x443   : > { %v1285_v40 = vsel %vm1268_vm4, %v1263_v14, 0 }
 0x444   : > { %1298 = vmatpush.bf16.xpose.msra.mxu3 %v1288_v37  ;;  %1538 = vmatpush.bf16.xpose.msrb.mxu2 %v1520_v1 }
 0x448   : > { %v1663_v39 = vpop.permute.xlu1 %1662 }
 0x449   : > { %1684 = vmatpush.bf16.msrb.mxu0 %v1663_v39 }
 0x44b   : > { %4926 = vmatmul.msk.bf16.vlgmr.msrb.gmra.mxu2 %vm1268_vm4, %v1460_v26  ;;  %v1498_v26 = vpop.permute.xlu0 %1497 }
 0x44c   : > { %1299 = vmatpush.bf16.xpose.msra.mxu3 %v1285_v40 }
 0x454   : > { %1300 = vmatpush.bf16.xpose.msra.mxu3 %v1282_v20 }
 0x45b   : > { %4918 = vmatmul.msk.bf16.vlgmr.msra.gmra.mxu3 %vm1268_vm4, %v6442_v18  ;;  %4927 = vmatmul.msk.bf16.gmra.mxu2 %vm1268_vm4, %v1462_v15  ;;  %v1466_v18 = vpop.permute.xlu2 %1465 }
 0x45c   : > { %5393 = vmatpush.bf16.msrb.mxu3 %v1663_v39 }
 0x463   : > { %v1488_v31 = vpop.permute.xlu2 %1487 }
 0x46b   : > { %4919 = vmatmul.msk.bf16.gmra.mxu3 %vm1268_vm4, %v6425_v13  ;;  %4928 = vmatmul.msk.bf16.gmra.mxu2 %vm1268_vm4, %v1464_v16  ;;  %v1494_v17 = vpop.permute.xlu2 %1493 }
 0x47b   : > { %4920 = vmatmul.msk.bf16.gmra.mxu3 %vm1268_vm4, %v6431_v45  ;;  %4929 = vmatmul.msk.bf16.gmra.mxu2 %vm1268_vm4, %v1466_v18 }
 0x48b   : > { %4921 = vmatmul.msk.bf16.gmra.mxu3 %vm1268_vm4, %v6466_v0 }
 0x4ce   : > { %v1540_v13 = vpop.f32.mrf.mxu2 }
 0x4cf   : > { %v1541_v50 = vadd.f32 %v1540_v13, %v1484_v21 }
 0x4d1   : > { %v1560_v54 = vsel %vm910_vm9, %v1541_v50, -inf }
 0x4d2   : > { %1561 = vmax.xlane.f32.xlu2 %v1560_v54 }
 0x4d6   : > { %v1542_v56 = vpop.f32.mrf.mxu2 }
 0x4d7   : > { %v1543_v57 = vadd.f32 %v1542_v56, %v1486_v23 }
 0x4d9   : > { %v1563_v58 = vsel %vm910_vm9, %v1543_v57, -inf }
 0x4da   : > { %1564 = vmax.xlane.f32.xlu1 %v1563_v58 }
 0x4de   : > { %v1302_v59 = vpop.f32.mrf.mxu3  ;;  %v1545_v62 = vpop.f32.mrf.mxu2 }
 0x4df   : > { %v6540_v45 = vadd.f32 %v1302_v59, %v6440_v63  ;;  %v6542_v3 = vadd.f32 %v1545_v62, %v1488_v31 }
 0x4e1   : > { %v1566_v0 = vsel %vm910_vm9, %v6542_v3, -inf  ;;  %v1322_v4 = vsel %vm910_vm9, %v6540_v45, -inf }
 0x4e2   : > { %1567 = vmax.xlane.f32.xlu0 %v1566_v0  ;;  %1323 = vmax.xlane.f32.xlu2 %v1322_v4 }
 0x4e6   : > { %v1304_v6 = vpop.f32.mrf.mxu3  ;;  %v1547_v34 = vpop.f32.mrf.mxu2 }
 0x4e7   : > { %v6548_v5 = vadd.f32 %v1304_v6, %v1245_v32  ;;  %v1548_v25 = vadd.f32 %v1547_v34, %v1490_v60 }
 0x4e9   : > { %v1569_v8 = vsel %vm910_vm9, %v1548_v25, -inf  ;;  %v1325_v63 = vsel %vm910_vm9, %v6548_v5, -inf }
 0x4ea   : > { %1570 = vmax.xlane.f32.xlu2 %v1569_v8  ;;  %1326 = vmax.xlane.f32.xlu1 %v1325_v63 }
 0x4ee   : > { %v1550_v12 = vpop.f32.mrf.mxu2  ;;  %v1307_v29 = vpop.f32.mrf.mxu3 }
 0x4ef   : > { %v1551_v15 = vadd.f32 %v1550_v12, %v1492_v10  ;;  %v6566_v36 = vadd.f32 %v1307_v29, %v1246_v44 }
 0x4f1   : > { %v1572_v16 = vsel %vm910_vm9, %v1551_v15, -inf }
 0x4f2   : > { %1573 = vmax.xlane.f32.xlu1 %v1572_v16 }
 0x4f6   : > { %v1552_v21 = vpop.f32.mrf.mxu2  ;;  %v1309_v37 = vpop.f32.mrf.mxu3 }
 0x4f7   : > { %v6554_v41 = vadd.f32 %v1552_v21, %v1494_v17  ;;  %v6571_v1 = vadd.f32 %v1309_v37, %v6455_v52 }
 0x4f9   : > { %v1575_v22 = vsel %vm910_vm9, %v6554_v41, -inf  ;;  %v1331_v14 = vsel %vm910_vm9, %v6571_v1, -inf }
 0x4fa   : > { %1576 = vmax.xlane.f32.xlu0 %v1575_v22 }
 0x4fe   : > { %v1555_v33 = vpop.f32.mrf.mxu2  ;;  %v1312_v54 = vpop.f32.mrf.mxu3 }
 0x4ff   : > { %v6559_v24 = vadd.f32 %v1555_v33, %v6494_v35  ;;  %v1328_v35 = vsel %vm910_vm9, %v6566_v36, -inf }
 0x501   : > { %v1578_v60 = vsel %vm910_vm9, %v6559_v24, -inf }
 0x502   : > { %1579 = vmax.xlane.f32.xlu0 %v1578_v60 }
 0x506   : > { %v1557_v27 = vpop.f32.mrf.mxu2 }
 0x507   : > { %v1558_v19 = vadd.f32 %v1557_v27, %v1498_v26 }
 0x509   : > { %v1581_v32 = vsel %vm910_vm9, %v1558_v19, -inf }
 0x50a   : > { %1582 = vmax.xlane.f32.xlu2 %v1581_v32 }
 0x50b   : > { %1658 = vrot.lane.b32.xlu1 %v6476_v11, %s8263_s25 }
 0x512   : > { %1329 = vmax.xlane.f32.xlu2 %v1328_v35 }
 0x51a   : > { %1332 = vmax.xlane.f32.xlu2 %v1331_v14 }
 0x545   : > { %v1562_v39 = vpop.xlane.xlu2 %1561 }
 0x546   : > { %v1584_v40 = vsub.f32 %v1541_v50, %v1562_v39  ;;  %v6620_v39 = vadd.f32 %v1312_v54, %v6507_v43 }
 0x548   : > { %v1592_v42 = vmul.f32 1.442695, %v1584_v40 }
 0x54a   : > { %5536 = vpow2.f32 %v1592_v42 }
 0x54d   : > { %v1565_v20 = vpop.xlane.xlu1 %1564 }
 0x54e   : > { %v1585_v11 = vsub.f32 %v1543_v57, %v1565_v20  ;;  %v1314_v57 = vpop.f32.mrf.mxu3 }
 0x54f   : > { %v6617_v37 = vadd.f32 %v1314_v57, %v6526_v28 }
 0x550   : > { %v6575_v44 = vpop.eup %5536  ;;  %v1594_v18 = vmul.f32 1.442695, %v1585_v11 }
 0x551   : > { %v1608_v13 = vsel %vm910_vm9, %v6575_v44, 0.0  ;;  %v1337_v42 = vsel %vm910_vm9, %v6617_v37, -inf }
 0x552   : > { %5538 = vpow2.f32 %v1594_v18  ;;  %1609 = vadd.xlane.f32.xlu0 %v1608_v13 }
 0x555   : > { %v1324_v52 = vpop.xlane.xlu2 %1323 }
 0x556   : > { %v1317_v34 = vpop.f32.mrf.mxu3 }
 0x557   : > { %v6590_v63 = vadd.f32 %v1317_v34, %v6462_v55  ;;  %v1568_v55 = vpop.xlane.xlu0 %1567 }
 0x558   : > { %v6579_v23 = vpop.eup %5538 }
 0x559   : > { %v1611_v56 = vsel %vm910_vm9, %v6579_v23, 0.0  ;;  %v1340_v10 = vsel %vm910_vm9, %v6590_v63, -inf }
 0x55a   : > { %1612 = vadd.xlane.f32.xlu2 %v1611_v56 }
 0x55d   : > { %v1571_v50 = vpop.xlane.xlu2 %1570  ;;  %v1327_v58 = vpop.xlane.xlu1 %1326 }
 0x55e   : > { %v1587_v31 = vsub.f32 %v1548_v25, %v1571_v50  ;;  %v1346_v25 = vsub.f32 %v6540_v45, %v1324_v52  ;;  %v1586_v45 = vsub.f32 %v6542_v3, %v1568_v55  ;;  %v1347_v32 = vsub.f32 %v6548_v5, %v1327_v58  ;;  %v1319_v52 = vpop.f32.mrf.mxu3 }
 0x55f   : > { %v1334_v5 = vsel %vm910_vm9, %v6620_v39, -inf  ;;  %v6637_v56 = vadd.f32 %v1319_v52, %v6521_v46 }
 0x560   : > { %v1598_v59 = vmul.f32 1.442695, %v1587_v31  ;;  %v1356_v14 = vmul.f32 1.442695, %v1347_v32 }
 0x561   : > { %v1343_v31 = vsel %vm910_vm9, %v6637_v56, -inf }
 0x562   : > { %5540 = vpow2.f32 %v1598_v59 }
 0x565   : > { %v1574_v62 = vpop.xlane.xlu1 %1573 }
 0x566   : > { %1660 = vrot.lane.b32.xlu0 %v6473_v9, %s8263_s25  ;;  %v1588_v4 = vsub.f32 %v1551_v15, %v1574_v62  ;;  %v1354_v9 = vmul.f32 1.442695, %v1346_v25 }
 0x568   : > { %v6585_v0 = vpop.eup %5540  ;;  %v1600_v8 = vmul.f32 1.442695, %v1588_v4 }
 0x569   : > { %v1617_v6 = vsel %vm910_vm9, %v6585_v0, 0.0 }
 0x56a   : > { %1618 = vadd.xlane.f32.xlu1 %v1617_v6  ;;  %5542 = vpow2.f32 %v1600_v8 }
 0x56b   : > { %5544 = vpow2.f32 %v1354_v9 }
 0x56d   : > { %v1577_v27 = vpop.xlane.xlu0 %1576 }
 0x56e   : > { %v1589_v3 = vsub.f32 %v6554_v41, %v1577_v27 }
 0x570   : > { %v6597_v12 = vpop.eup %5542  ;;  %v1602_v35 = vmul.f32 1.442695, %v1589_v3 }
 0x571   : > { %v1620_v15 = vsel %vm910_vm9, %v6597_v12, 0.0  ;;  %v6601_v17 = vpop.eup %5544 }
 0x572   : > { %1341 = vmax.xlane.f32.xlu1 %v1340_v10  ;;  %1656 = vrot.lane.b32.xlu2 %v6423_v38, %s8263_s25  ;;  %v1370_v33 = vsel %vm910_vm9, %v6601_v17, 0.0  ;;  %v1596_v38 = vmul.f32 1.442695, %v1586_v45 }
 0x575   : > { %v1580_v20 = vpop.xlane.xlu0 %1579 }
 0x576   : > { %v1590_v43 = vsub.f32 %v6559_v24, %v1580_v20 }
 0x578   : > { %v1604_v54 = vmul.f32 1.442695, %v1590_v43 }
 0x57a   : > { %1621 = vadd.xlane.f32.xlu1 %v1620_v15 }
 0x57d   : > { %v1583_v16 = vpop.xlane.xlu2 %1582  ;;  %v1659_v8 = vpop.permute.xlu1 %1658 }
 0x57e   : > { %v1591_v21 = vsub.f32 %v1558_v19, %v1583_v16 }
 0x580   : > { %v1606_v22 = vmul.f32 1.442695, %v1591_v21 }
 0x582   : > { %5546 = vpow2.f32 %v1606_v22  ;;  %1371 = vadd.xlane.f32.xlu1 %v1370_v33 }
 0x583   : > { %5548 = vpow2.f32 %v1596_v38 }
 0x584   : > { %5550 = vpow2.f32 %v1602_v35 }
 0x585   : > { %v1330_v40 = vpop.xlane.xlu2 %1329  ;;  %5552 = vpow2.f32 %v1356_v14 }
 0x586   : > { %v1348_v41 = vsub.f32 %v6566_v36, %v1330_v40 }
 0x588   : > { %v6606_v60 = vpop.eup %5546  ;;  %v1358_v11 = vmul.f32 1.442695, %v1348_v41 }
 0x589   : > { %v1629_v26 = vsel %vm910_vm9, %v6606_v60, 0.0  ;;  %v6610_v29 = vpop.eup %5548 }
 0x58a   : > { %1630 = vadd.xlane.f32.xlu1 %v1629_v26  ;;  %v1614_v19 = vsel %vm910_vm9, %v6610_v29, 0.0  ;;  %v6627_v28 = vpop.eup %5550  ;;  %5554 = vpow2.f32 %v1358_v11 }
 0x58b   : > { %v6630_v18 = vpop.eup %5552  ;;  %v1623_v13 = vsel %vm910_vm9, %v6627_v28, 0.0  ;;  %5556 = vpow2.f32 %v1604_v54 }
 0x58c   : > { %v1373_v36 = vsel %vm910_vm9, %v6630_v18, 0.0 }
 0x58d   : > { %v1333_v50 = vpop.xlane.xlu2 %1332 }
 0x58e   : > { %v1349_v24 = vsub.f32 %v6571_v1, %v1333_v50 }
 0x590   : > { %1615 = vadd.xlane.f32.xlu0 %v1614_v19  ;;  %v6640_v58 = vpop.eup %5554  ;;  %v1360_v57 = vmul.f32 1.442695, %v1349_v24 }
 0x591   : > { %v1376_v59 = vsel %vm910_vm9, %v6640_v58, 0.0  ;;  %v6646_v62 = vpop.eup %5556 }
 0x592   : > { %5558 = vpow2.f32 %v1360_v57  ;;  %v1626_v46 = vsel %vm910_vm9, %v6646_v62, 0.0 }
 0x598   : > { %1338 = vmax.xlane.f32.xlu0 %v1337_v42  ;;  %v6650_v4 = vpop.eup %5558 }
 0x599   : > { %v1379_v1 = vsel %vm910_vm9, %v6650_v4, 0.0 }
 0x59b   : > { %1335 = vmax.xlane.f32.xlu2 %v1334_v5 }
 0x5a0   : > { %1624 = vadd.xlane.f32.xlu0 %v1623_v13 }
 0x5a3   : > { %1374 = vadd.xlane.f32.xlu2 %v1373_v36 }
 0x5a8   : > { %1344 = vmax.xlane.f32.xlu0 %v1343_v31 }
 0x5ab   : > { %1377 = vadd.xlane.f32.xlu2 %v1376_v59 }
 0x5b0   : > { %1627 = vadd.xlane.f32.xlu0 %v1626_v46 }
 0x5b8   : > { %1380 = vadd.xlane.f32.xlu0 %v1379_v1 }
 0x5c5   : > { %v1610_v6 = vpop.xlane.xlu0 %1609 }
 0x5cd   : > { %v1613_v34 = vpop.xlane.xlu2 %1612 }
 0x5ce   : > { %5560 = vrcp.f32 %v1613_v34 }
 0x5cf   : > { %5562 = vrcp.f32 %v1610_v6 }
 0x5d4   : > { %v5561_v10 = vpop.eup %5560 }
 0x5d5   : > { %v5563_v9 = vpop.eup %5562  ;;  %v1641_v55 = vmul.f32 %v5561_v10, %v6579_v23  ;;  %v1657_v45 = vpop.permute.xlu2 %1656 }
 0x5d6   : > { %v1640_v16 = vmul.f32 %v5563_v9, %v6575_v44 }
 0x5d8   : > { %v1661_v25 = vpop.permute.xlu0 %1660  ;;  %v1648_v21 = vpack.c.bf16 %v1641_v55, %v1640_v16 }
 0x5d9   : > { %1685 = vmatpush.bf16.msrb.mxu0 %v1661_v25  ;;  %5394 = vmatpush.bf16.msrb.mxu3 %v1661_v25 }
 0x5dd   : > { %v1619_v15 = vpop.xlane.xlu1 %1618  ;;  %1686 = vmatpush.bf16.msrb.mxu0 %v1659_v8  ;;  %5395 = vmatpush.bf16.msrb.mxu3 %v1659_v8 }
 0x5e1   : > { %1687 = vmatpush.bf16.msrb.mxu0 %v1657_v45  ;;  %5396 = vmatpush.bf16.msrb.mxu3 %v1657_v45 }
 0x5e4   : > { %4930 = vmatmul.msk.bf16.vlgmr.msrb.gmra.mxu0 %vm910_vm9, %v1648_v21 }
 0x5e5   : > { %v1342_v22 = vpop.xlane.xlu1 %1341 }
 0x5e6   : > { %v1352_v33 = vsub.f32 %v6590_v63, %v1342_v22 }
 0x5e8   : > { %v1366_v38 = vmul.f32 1.442695, %v1352_v33 }
 0x5ea   : > { %5564 = vpow2.f32 %v1366_v38 }
 0x5eb   : > { %5566 = vrcp.f32 %v1619_v15 }
 0x5ed   : > { %v1622_v3 = vpop.xlane.xlu1 %1621 }
 0x5f0   : > { %v6658_v26 = vpop.eup %5564 }
 0x5f1   : > { %v1388_v27 = vsel %vm910_vm9, %v6658_v26, 0.0  ;;  %v5567_v44 = vpop.eup %5566 }
 0x5f2   : > { %1389 = vadd.xlane.f32.xlu0 %v1388_v27  ;;  %v1643_v14 = vmul.f32 %v5567_v44, %v6585_v0 }
 0x5f5   : > { %v1372_v11 = vpop.xlane.xlu1 %1371 }
 0x5fd   : > { %v1631_v8 = vpop.xlane.xlu1 %1630 }
 0x603   : > { %v1616_v23 = vpop.xlane.xlu0 %1615 }
 0x604   : > { %5568 = vrcp.f32 %v1616_v23 }
 0x60a   : > { %v5569_v19 = vpop.eup %5568 }
 0x60b   : > { %v1339_v32 = vpop.xlane.xlu0 %1338  ;;  %v1642_v35 = vmul.f32 %v5569_v19, %v6610_v29 }
 0x60c   : > { %v1351_v63 = vsub.f32 %v6617_v37, %v1339_v32 }
 0x60d   : > { %v1649_v40 = vpack.c.bf16 %v1643_v14, %v1642_v35 }
 0x60e   : > { %v1364_v42 = vmul.f32 1.442695, %v1351_v63  ;;  %v1336_v41 = vpop.xlane.xlu2 %1335 }
 0x60f   : > { %v1350_v5 = vsub.f32 %v6620_v39, %v1336_v41  ;;  %4931 = vmatmul.msk.bf16.gmra.mxu0 %vm910_vm9, %v1649_v40  ;;  %v5332_v41 = vld [vmem:[%s8248_s9 + $0x18] sm:$0xff] }
 0x610   : > { %5570 = vpow2.f32 %v1364_v42  ;;  %1801 = vmatpush.bf16.msra.mxu3 %v5332_v41 }
 0x611   : > { %v1362_v20 = vmul.f32 1.442695, %v1350_v5  ;;  %5572 = vrcp.f32 %v1622_v3  ;;  %v5331_v5 = vld [vmem:[%s8248_s9 + $0x10] sm:$0xff] }
 0x613   : > { %5574 = vpow2.f32 %v1362_v20  ;;  %v1625_v43 = vpop.xlane.xlu0 %1624 }
 0x614   : > { %5576 = vrcp.f32 %v1625_v43  ;;  %1802 = vmatpush.bf16.msra.mxu3 %v5331_v5  ;;  %v5330_v43 = vld [vmem:[%s8248_s9 + $0x8] sm:$0xff] }
 0x615   : > { %5578 = vrcp.f32 %v1372_v11 }
 0x616   : > { %v5571_v29 = vpop.eup %5570  ;;  %v1375_v13 = vpop.xlane.xlu2 %1374 }
 0x617   : > { %5580 = vrcp.f32 %v1375_v13  ;;  %v1385_v0 = vsel %vm910_vm9, %v5571_v29, 0.0  ;;  %v5573_v37 = vpop.eup %5572 }
 0x618   : > { %1386 = vadd.xlane.f32.xlu2 %v1385_v0  ;;  %v1644_v50 = vmul.f32 %v5573_v37, %v6597_v12  ;;  %1803 = vmatpush.bf16.msra.mxu3 %v5330_v43 }
 0x619   : > { %v5575_v52 = vpop.eup %5574 }
 0x61a   : > { %v5577_v54 = vpop.eup %5576  ;;  %v1382_v39 = vsel %vm910_vm9, %v5575_v52, 0.0 }
 0x61b   : > { %v5579_v36 = vpop.eup %5578  ;;  %v1645_v24 = vmul.f32 %v5577_v54, %v6627_v28  ;;  %1383 = vadd.xlane.f32.xlu1 %v1382_v39  ;;  %v1345_v31 = vpop.xlane.xlu0 %1344 }
 0x61c   : > { %v1353_v57 = vsub.f32 %v6637_v56, %v1345_v31  ;;  %v1402_v1 = vmul.f32 %v5579_v36, %v6601_v17 }
 0x61d   : > { %v5581_v59 = vpop.eup %5580  ;;  %v1650_v46 = vpack.c.bf16 %v1645_v24, %v1644_v50 }
 0x61e   : > { %v1403_v6 = vmul.f32 %v5581_v59, %v6630_v18  ;;  %v1368_v34 = vmul.f32 1.442695, %v1353_v57  ;;  %v1378_v10 = vpop.xlane.xlu2 %1377 }
 0x61f   : > { %4932 = vmatmul.msk.bf16.vlgmr.msrb.gmra.mxu3 %vm910_vm9, %v1650_v46 }
 0x620   : > { %5582 = vpow2.f32 %v1368_v34  ;;  %v1410_v25 = vpack.c.bf16 %v1403_v6, %v1402_v1 }
 0x621   : > { %5584 = vrcp.f32 %v1631_v8 }
 0x622   : > { %4922 = vmatmul.msk.bf16.vlgmr.msrb.gmra.mxu1 %vm910_vm9, %v1410_v25 }
 0x623   : > { %v1628_v12 = vpop.xlane.xlu0 %1627 }
 0x624   : > { %5586 = vrcp.f32 %v1628_v12 }
 0x625   : > { %5588 = vrcp.f32 %v1378_v10 }
 0x626   : > { %v5583_v28 = vpop.eup %5582 }
 0x627   : > { %v1391_v56 = vsel %vm910_vm9, %v5583_v28, 0.0  ;;  %v5585_v9 = vpop.eup %5584 }
 0x628   : > { %1392 = vadd.xlane.f32.xlu1 %v1391_v56  ;;  %v1647_v55 = vmul.f32 %v5585_v9, %v6606_v60 }
 0x62a   : > { %v5587_v17 = vpop.eup %5586 }
 0x62b   : > { %v1381_v18 = vpop.xlane.xlu0 %1380  ;;  %v1646_v15 = vmul.f32 %v5587_v17, %v6646_v62  ;;  %v5589_v45 = vpop.eup %5588 }
 0x62c   : > { %5590 = vrcp.f32 %v1381_v18  ;;  %v1404_v22 = vmul.f32 %v5589_v45, %v6640_v58 }
 0x62d   : > { %v1651_v16 = vpack.c.bf16 %v1647_v55, %v1646_v15 }
 0x62f   : > { %4933 = vmatmul.msk.bf16.gmra.mxu3 %vm910_vm9, %v1651_v16 }
 0x632   : > { %v5591_v21 = vpop.eup %5590 }
 0x633   : > { %v1405_v33 = vmul.f32 %v5591_v21, %v6650_v4 }
 0x635   : > { %v1411_v38 = vpack.c.bf16 %v1405_v33, %v1404_v22 }
 0x637   : > { %4923 = vmatmul.msk.bf16.gmra.mxu1 %vm910_vm9, %v1411_v38 }
 0x661   : > { %v1689_v27 = vpop.f32.mrf.mxu0 }
 0x665   : > { %v1390_v40 = vpop.xlane.xlu0 %1389 }
 0x669   : > { %v1691_v23 = vpop.f32.mrf.mxu0 }
 0x66a   : > { %v5446_v44 = vpack.i.bf16 %v1691_v23, %v1689_v27 }
 0x66c   : > { %5447 = vrot.lane.b32.xlu2 %v5446_v44, %s8267_s24 }
 0x68b   : > { %v1387_v62 = vpop.xlane.xlu2 %1386 }
 0x68c   : > { %v1694_v60 = vpop.f32.mrf.mxu0  ;;  %5592 = vrcp.f32 %v1387_v62 }
 0x68e   : > { %v1384_v3 = vpop.xlane.xlu1 %1383 }
 0x68f   : > { %5594 = vrcp.f32 %v1384_v3 }
 0x692   : > { %v5593_v19 = vpop.eup %5592 }
 0x693   : > { %v1407_v63 = vmul.f32 %v5593_v19, %v5571_v29 }
 0x694   : > { %v1696_v32 = vpop.f32.mrf.mxu0 }
 0x695   : > { %v5595_v35 = vpop.eup %5594  ;;  %v5451_v14 = vpack.i.bf16 %v1696_v32, %v1694_v60  ;;  %v5490_v32 = vld [vmem:[%s8249_s10] ss:$0 sm:$0xff] }
 0x696   : > { %v1406_v58 = vmul.f32 %v5595_v35, %v5575_v52  ;;  %v5329_v52 = vld [vmem:[%s8248_s9] sm:$0xff] }
 0x697   : > { %5452 = vrot.lane.b32.xlu0 %v5451_v14, %s8267_s24  ;;  %1804 = vmatpush.bf16.msra.mxu3 %v5329_v52 }
 0x698   : > { %v1412_v4 = vpack.c.bf16 %v1407_v63, %v1406_v58 }
 0x69a   : > { %4924 = vmatmul.msk.bf16.gmra.mxu1 %vm910_vm9, %v1412_v4 }
 0x69b   : > { %v1393_v42 = vpop.xlane.xlu1 %1392 }
 0x69c   : > { %5596 = vrcp.f32 %v1393_v42 }
 0x69d   : > { %5598 = vrcp.f32 %v1390_v40 }
 0x69f   : > { %v1439_v31 = vpop.f32.mrf.mxu1 }
 0x6a2   : > { %v5597_v20 = vpop.eup %5596  ;;  %v1699_v11 = vpop.f32.mrf.mxu3 }
 0x6a3   : > { %v5599_v29 = vpop.eup %5598  ;;  %v1409_v13 = vmul.f32 %v5597_v20, %v5583_v28 }
 0x6a4   : > { %v1408_v0 = vmul.f32 %v5599_v29, %v6658_v26 }
 0x6a6   : > { %v1413_v37 = vpack.c.bf16 %v1409_v13, %v1408_v0 }
 0x6a7   : > { %v1441_v46 = vpop.f32.mrf.mxu1 }
 0x6aa   : > { %4925 = vmatmul.msk.bf16.gmra.mxu1 %vm910_vm9, %v1413_v37  ;;  %v1701_v54 = vpop.f32.mrf.mxu3 }
 0x6ab   : > { %v5456_v39 = vpack.i.bf16 %v1701_v54, %v1699_v11 }
 0x6ad   : > { %5457 = vrot.lane.b32.xlu1 %v5456_v39, %s8267_s24 }
 0x6b2   : > { %v1704_v36 = vpop.f32.mrf.mxu3 }
 0x6b4   : > { %v1444_v8 = vpop.f32.mrf.mxu1 }
 0x6ba   : > { %v1706_v50 = vpop.f32.mrf.mxu3 }
 0x6bb   : > { %v5461_v24 = vpack.i.bf16 %v1706_v50, %v1704_v36 }
 0x6bc   : > { %v1446_v10 = vpop.f32.mrf.mxu1 }
 0x6bd   : > { %5462 = vrot.lane.b32.xlu0 %v5461_v24, %s8267_s24  ;;  %s4740_s24 = scalar_lea.hbm %s8256_s17, %s6065_s0 }
 0x6be   : > { %s8182_s1 = sshll.u32 %s4740_s24, 4  ;;  %s4745_s1 = int_to_ptr.hbm [resolvable:$true] %s8182_s1 }
 0x6bf   : > { %s5862_s27 = sshra.s32 %s4745_s1, 4  ;;  %s5863_s27 = int_to_ptr.hbm [resolvable:$true] %s5862_s27 }
 0x6c0   : > { %s5864_s25 = scalar_lea.hbm %s5863_s27, 1  ;;  %p5869_p0 = scmp.lt.s32.totalorder %s5863_s27, %s8256_s17 }
 0x6c1   : > { %p5865_p11 = scmp.ne.s32.totalorder %s5863_s27, %s5864_s25 }
 0x6c3   : > { %p5866_p12 = pnand %p5865_p11, %p6082_p5 }
 0x6c5   : > { %p5867_p13 = pneg %p5866_p12 }
 0x6c6   : > { %v5448_v26 = vpop.permute.xlu2 %5447 }
 0x6c7   : > { %v5450_v57 = vunpack.i.h.bf16 %v5448_v26  ;;  %v5449_v59 = vunpack.i.l.bf16 %v5448_v26 }
 0x6c9   : > { %v1742_v1 = vsel %vm1268_vm4, %v1441_v46, %v5450_v57  ;;  %v1741_v6 = vsel %vm1268_vm4, %v1439_v31, %v5449_v59 }
 0x6ca   : > { %v1749_v34 = vpack.c.bf16 %v1742_v1, %v1741_v6 }
 0x6cc   : > { %4950 = vmatmul.msk.bf16.vlgmr.msra.gmra.mxu3 %vm910_vm9, %v1749_v34 }
 0x709   : > { %v5453_v25 = vpop.permute.xlu0 %5452 }
 0x70a   : > { %v5455_v12 = vunpack.i.h.bf16 %v5453_v25  ;;  %v5454_v28 = vunpack.i.l.bf16 %v5453_v25 }
 0x70c   : > { %v1743_v56 = vsel %vm1268_vm4, %v1444_v8, %v5454_v28  ;;  %v1744_v9 = vsel %vm1268_vm4, %v1446_v10, %v5455_v12 }
 0x70d   : > { %v1750_v17 = vpack.c.bf16 %v1744_v9, %v1743_v56 }
 0x70f   : > { %4951 = vmatmul.msk.bf16.gmra.mxu3 %vm910_vm9, %v1750_v17 }
 0x717   : > { %v1449_v18 = vpop.f32.mrf.mxu1 }
 0x71f   : > { %v5458_v15 = vpop.permute.xlu1 %5457  ;;  %v1451_v55 = vpop.f32.mrf.mxu1 }
 0x720   : > { %v5460_v16 = vunpack.i.h.bf16 %v5458_v15  ;;  %v5459_v45 = vunpack.i.l.bf16 %v5458_v15 }
 0x722   : > { %v1745_v21 = vsel %vm1268_vm4, %v1449_v18, %v5459_v45  ;;  %v1746_v22 = vsel %vm1268_vm4, %v1451_v55, %v5460_v16 }
 0x723   : > { %v1751_v33 = vpack.c.bf16 %v1746_v22, %v1745_v21 }
 0x725   : > { %4952 = vmatmul.msk.bf16.gmra.mxu3 %vm910_vm9, %v1751_v33 }
 0x727   : > { %v1454_v38 = vpop.f32.mrf.mxu1 }
 0x72f   : > { %v5463_v27 = vpop.permute.xlu0 %5462  ;;  %v1456_v62 = vpop.f32.mrf.mxu1 }
 0x730   : > { %v5465_v23 = vunpack.i.h.bf16 %v5463_v27  ;;  %v5464_v44 = vunpack.i.l.bf16 %v5463_v27 }
 0x732   : > { %v1747_v60 = vsel %vm1268_vm4, %v1454_v38, %v5464_v44  ;;  %v1748_v3 = vsel %vm1268_vm4, %v1456_v62, %v5465_v23 }
 0x733   : > { %v1752_v19 = vpack.c.bf16 %v1748_v3, %v1747_v60 }
 0x735   : > { %4953 = vmatmul.msk.bf16.gmra.mxu3 %vm910_vm9, %v1752_v19 }
 0x74f   : > { %v1806_v35 = vpop.f32.mrf.mxu3 }
 0x750   : > { %v1826_v14 = vadd.f32 %v1806_v35, %v6232_v47 }
 0x752   : > { %v6718_v58 = vadd.f32 %v5490_v32, %v1826_v14 }
 0x754   : > { %v1848_v63 = vsel %vm910_vm9, %v6718_v58, 0.0 }
 0x755   : > { %1849 = vadd.xlane.f32.xlu2 %v1848_v63 }
 0x757   : > { %v1808_v4 = vpop.f32.mrf.mxu3 }
 0x758   : > { %v1827_v40 = vadd.f32 %v1808_v4, %v6236_v48 }
 0x75a   : > { %v6723_v42 = vadd.f32 %v5490_v32, %v1827_v40  ;;  %v5339_v40 = vld [vmem:[%s8252_s13 + $0x34] sm:$0xf] }
 0x75c   : > { %v1851_v41 = vsel %vm910_vm9, %v6723_v42, 0.0 }
 0x75d   : > { %1852 = vadd.xlane.f32.xlu1 %v1851_v41  ;;  %v4982_v41 = vld [vmem:[%s8252_s13 + $0x38] sm:$0xf0] }
 0x792   : > { %v1811_v5 = vpop.f32.mrf.mxu3 }
 0x793   : > { %v1828_v20 = vadd.f32 %v1811_v5, %v6240_v30  ;;  %v4980_v5 = vld [vmem:[%s8252_s13 + $0x30] sm:$0xf] }
 0x795   : > { %v6728_v11 = vadd.f32 %v5490_v32, %v1828_v20  ;;  %v4985_v20 = vor.u32 %v5339_v40, %v4982_v41 }
 0x797   : > { %v1854_v47 = vsel %vm910_vm9, %v6728_v11, 0.0  ;;  %2149 = vmatpush.bf16.msra.mxu2 %v4985_v20  ;;  %v6872_v20 = vld [vmem:[%s8251_s12] ss:$0 sm:$0xff] }
 0x798   : > { %1855 = vadd.xlane.f32.xlu0 %v1854_v47  ;;  %v5340_v47 = vld [vmem:[%s8252_s13 + $0x34] sm:$0xf0] }
 0x79a   : > { %v1813_v43 = vpop.f32.mrf.mxu3 }
 0x79b   : > { %v1829_v29 = vadd.f32 %v1813_v43, %v6244_v49  ;;  %v4981_v43 = vor.u32 %v5340_v47, %v4980_v5 }
 0x79d   : > { %v6733_v13 = vadd.f32 %v5490_v32, %v1829_v29  ;;  %2120 = vmatpush.bf16.msra.mxu1 %v4981_v43  ;;  %v4972_v29 = vld [vmem:[%s8252_s13 + $0x20] sm:$0xf] }
 0x79f   : > { %v1857_v48 = vsel %vm910_vm9, %v6733_v13, 0.0 }
 0x7a0   : > { %1858 = vadd.xlane.f32.xlu2 %v1857_v48  ;;  %v5338_v48 = vld [vmem:[%s8252_s13 + $0x24] sm:$0xf0] }
 0x7a8   : > { %v1816_v0 = vpop.f32.mrf.mxu3 }
 0x7a9   : > { %v1830_v37 = vadd.f32 %v1816_v0, %v6248_v51  ;;  %v5337_v0 = vld [vmem:[%s8252_s13 + $0x24] sm:$0xf] }
 0x7ab   : > { %v6738_v52 = vadd.f32 %v5490_v32, %v1830_v37  ;;  %v4973_v37 = vor.u32 %v5338_v48, %v4972_v29 }
 0x7ad   : > { %v1860_v30 = vsel %vm910_vm9, %v6738_v52, 0.0  ;;  %2121 = vmatpush.bf16.msra.mxu1 %v4973_v37 }
 0x7ae   : > { %1861 = vadd.xlane.f32.xlu1 %v1860_v30  ;;  %v4974_v30 = vld [vmem:[%s8252_s13 + $0x28] sm:$0xf0] }
 0x7b0   : > { %v1818_v54 = vpop.f32.mrf.mxu3 }
 0x7b1   : > { %v1831_v39 = vadd.f32 %v1818_v54, %v6252_v53  ;;  %v4977_v54 = vor.u32 %v5337_v0, %v4974_v30 }
 0x7b3   : > { %v6743_v36 = vadd.f32 %v5490_v32, %v1831_v39  ;;  %2150 = vmatpush.bf16.msra.mxu2 %v4977_v54  ;;  %v4964_v39 = vld [vmem:[%s8252_s13 + $0x10] sm:$0xf] }
 0x7b5   : > { %v1863_v49 = vsel %vm910_vm9, %v6743_v36, 0.0 }
 0x7b6   : > { %1864 = vadd.xlane.f32.xlu0 %v1863_v49  ;;  %v5336_v49 = vld [vmem:[%s8252_s13 + $0x14] sm:$0xf0] }
 0x7b8   : > { %v1821_v50 = vpop.f32.mrf.mxu3 }
 0x7b9   : > { %v1832_v24 = vadd.f32 %v1821_v50, %v6262_v2  ;;  %v5335_v50 = vld [vmem:[%s8252_s13 + $0x14] sm:$0xf] }
 0x7bb   : > { %v6748_v31 = vadd.f32 %v5490_v32, %v1832_v24  ;;  %v4965_v24 = vor.u32 %v5336_v49, %v4964_v39 }
 0x7bd   : > { %v1866_v51 = vsel %vm910_vm9, %v6748_v31, 0.0  ;;  %2122 = vmatpush.bf16.msra.mxu1 %v4965_v24 }
 0x7be   : > { %1867 = vadd.xlane.f32.xlu0 %v1866_v51  ;;  %v4966_v51 = vld [vmem:[%s8252_s13 + $0x18] sm:$0xf0] }
 0x7c0   : > { %v1823_v59 = vpop.f32.mrf.mxu3 }
 0x7c1   : > { %v1833_v1 = vadd.f32 %v1823_v59, %v6273_v7 }
 0x7c3   : > { %v6761_v8 = vadd.f32 %v5490_v32, %v1833_v1  ;;  %v5334_v1 = vld [vmem:[%s8252_s13 + $0x4] sm:$0xf0] }
 0x7c5   : > { %v1869_v10 = vsel %vm910_vm9, %v6761_v8, 0.0 }
 0x7c8   : > { %v1850_v26 = vpop.xlane.xlu2 %1849 }
 0x7c9   : > { %v1872_v57 = vmul.f32 %v1850_v26, %v6256_v61 }
 0x7cb   : > { %v6754_v53 = vsub.f32 %v6718_v58, %v1872_v57  ;;  %v4969_v57 = vor.u32 %v5335_v50, %v4966_v51 }
 0x7cd   : > { %v1888_v46 = vmul.f32 %v6754_v53, %v6754_v53  ;;  %2151 = vmatpush.bf16.msra.mxu2 %v4969_v57 }
 0x7cf   : > { %v1896_v2 = vsel %vm910_vm9, %v1888_v46, 0.0  ;;  %v4956_v46 = vld [vmem:[%s8252_s13] sm:$0xf] }
 0x7d0   : > { %v1853_v6 = vpop.xlane.xlu1 %1852  ;;  %1897 = vadd.xlane.f32.xlu2 %v1896_v2  ;;  %v5333_v2 = vld [vmem:[%s8252_s13 + $0x4] sm:$0xf] }
 0x7d1   : > { %v1873_v34 = vmul.f32 %v1853_v6, %v6256_v61 }
 0x7d3   : > { %v6764_v25 = vsub.f32 %v6723_v42, %v1873_v34  ;;  %v4957_v34 = vor.u32 %v5334_v1, %v4956_v46 }
 0x7d5   : > { %v1889_v12 = vmul.f32 %v6764_v25, %v6764_v25  ;;  %2123 = vmatpush.bf16.msra.mxu1 %v4957_v34 }
 0x7d7   : > { %v1899_v28 = vsel %vm910_vm9, %v1889_v12, 0.0  ;;  %v4958_v12 = vld [vmem:[%s8252_s13 + $0x8] sm:$0xf0] }
 0x7d8   : > { %1900 = vadd.xlane.f32.xlu1 %v1899_v28  ;;  %1870 = vadd.xlane.f32.xlu2 %v1869_v10  ;;  %v4961_v28 = vor.u32 %v5333_v2, %v4958_v12 }
 0x7da   : > { %2152 = vmatpush.bf16.msra.mxu2 %v4961_v28 }
 0x80b   : > { %v1856_v7 = vpop.xlane.xlu0 %1855 }
 0x80c   : > { %v1874_v56 = vmul.f32 %v1856_v7, %v6256_v61 }
 0x80e   : > { %v6773_v9 = vsub.f32 %v6728_v11, %v1874_v56 }
 0x810   : > { %v1890_v17 = vmul.f32 %v6773_v9, %v6773_v9 }
 0x812   : > { %v1902_v18 = vsel %vm910_vm9, %v1890_v17, 0.0 }
 0x813   : > { %v1859_v15 = vpop.xlane.xlu2 %1858  ;;  %1903 = vadd.xlane.f32.xlu1 %v1902_v18 }
 0x814   : > { %v1875_v55 = vmul.f32 %v1859_v15, %v6256_v61 }
 0x816   : > { %v6780_v16 = vsub.f32 %v6733_v13, %v1875_v55 }
 0x818   : > { %v1891_v45 = vmul.f32 %v6780_v16, %v6780_v16 }
 0x81a   : > { %v1905_v21 = vsel %vm910_vm9, %v1891_v45, 0.0 }
 0x81b   : > { %1906 = vadd.xlane.f32.xlu0 %v1905_v21 }
 0x821   : > { %v1862_v22 = vpop.xlane.xlu1 %1861 }
 0x822   : > { %v1876_v33 = vmul.f32 %v1862_v22, %v6256_v61 }
 0x824   : > { %v6787_v38 = vsub.f32 %v6738_v52, %v1876_v33 }
 0x826   : > { %v1892_v27 = vmul.f32 %v6787_v38, %v6787_v38 }
 0x828   : > { %v1908_v23 = vsel %vm910_vm9, %v1892_v27, 0.0 }
 0x829   : > { %v1865_v44 = vpop.xlane.xlu0 %1864  ;;  %1909 = vadd.xlane.f32.xlu2 %v1908_v23 }
 0x82a   : > { %v1877_v62 = vmul.f32 %v1865_v44, %v6256_v61 }
 0x82c   : > { %v6794_v60 = vsub.f32 %v6743_v36, %v1877_v62 }
 0x82e   : > { %v1893_v3 = vmul.f32 %v6794_v60, %v6794_v60 }
 0x830   : > { %v1911_v19 = vsel %vm910_vm9, %v1893_v3, 0.0 }
 0x831   : > { %1912 = vadd.xlane.f32.xlu1 %v1911_v19  ;;  %v1868_v32 = vpop.xlane.xlu0 %1867 }
 0x832   : > { %v1878_v35 = vmul.f32 %v1868_v32, %v6256_v61 }
 0x834   : > { %v6801_v14 = vsub.f32 %v6748_v31, %v1878_v35 }
 0x836   : > { %v1894_v63 = vmul.f32 %v6801_v14, %v6801_v14 }
 0x838   : > { %v1914_v4 = vsel %vm910_vm9, %v1894_v63, 0.0 }
 0x839   : > { %1915 = vadd.xlane.f32.xlu0 %v1914_v4  ;;  %v6866_v4 = vld [vmem:[%s8250_s11] ss:$0 sm:$0xff] }
 0x843   : > { %v1898_v26 = vpop.xlane.xlu2 %1897 }
 0x844   : > { %v1920_v59 = vmul.f32 %v1898_v26, %v6256_v61 }
 0x846   : > { %v1928_v6 = vadd.f32 1e-05, %v1920_v59 }
 0x848   : > { %5600 = vrsqrt.f32 %v1928_v6  ;;  %vm1942_vm6 = vweird.f32 %v1928_v6 }
 0x84b   : > { %v1901_v10 = vpop.xlane.xlu1 %1900  ;;  %v1871_v7 = vpop.xlane.xlu2 %1870 }
 0x84c   : > { %v1921_v56 = vmul.f32 %v1901_v10, %v6256_v61  ;;  %v1879_v17 = vmul.f32 %v1871_v7, %v6256_v61 }
 0x84e   : > { %v5601_v18 = vpop.eup %5600  ;;  %v1929_v15 = vadd.f32 1e-05, %v1921_v56  ;;  %v6858_v55 = vsub.f32 %v6761_v8, %v1879_v17 }
 0x84f   : > { %v1937_v45 = vmul.f32 %v5601_v18, %v1928_v6  ;;  %vm1943_vm5 = vweird.f32 %v5601_v18 }
 0x850   : > { %5602 = vrsqrt.f32 %v1929_v15  ;;  %v1895_v21 = vmul.f32 %v6858_v55, %v6858_v55  ;;  %vm1944_vm7 = vmor %vm1942_vm6, %vm1943_vm5  ;;  %vm1952_vm10 = vweird.f32 %v1929_v15 }
 0x851   : > { %v1938_v22 = vmul.f32 %v5601_v18, %v1937_v45 }
 0x852   : > { %v1917_v33 = vsel %vm910_vm9, %v1895_v21, 0.0 }
 0x853   : > { %v1939_v27 = vmul.f32 0.5, %v1938_v22  ;;  %1918 = vadd.xlane.f32.xlu2 %v1917_v33 }
 0x855   : > { %v1940_v23 = vsub.f32 1.5, %v1939_v27 }
 0x856   : > { %v5603_v44 = vpop.eup %5602 }
 0x857   : > { %v1941_v62 = vmul.f32 %v5601_v18, %v1940_v23  ;;  %v1947_v3 = vmul.f32 %v5603_v44, %v1929_v15  ;;  %vm1953_vm8 = vweird.f32 %v5603_v44 }
 0x858   : > { %vm1954_vm11 = vmor %vm1952_vm10, %vm1953_vm8 }
 0x859   : > { %v1948_v19 = vmul.f32 %v5603_v44, %v1947_v3  ;;  %v1945_v32 = vsel %vm1944_vm7, %v5601_v18, %v1941_v62 }
 0x85a   : > { %v2016_v40 = vmul.f32 %v1945_v32, %v6754_v53 }
 0x85b   : > { %v1949_v35 = vmul.f32 0.5, %v1948_v19 }
 0x85c   : > { %v2027_v47 = vmul.f32 %v6866_v4, %v2016_v40 }
 0x85d   : > { %v1950_v63 = vsub.f32 1.5, %v1949_v35 }
 0x85e   : > { %v2038_v48 = vadd.f32 %v6872_v20, %v2027_v47 }
 0x85f   : > { %v1951_v41 = vmul.f32 %v5603_v44, %v1950_v63 }
 0x861   : > { %v1955_v5 = vsel %vm1954_vm11, %v5603_v44, %v1951_v41 }
 0x862   : > { %v2017_v43 = vmul.f32 %v1955_v5, %v6764_v25 }
 0x864   : > { %v2028_v29 = vmul.f32 %v6866_v4, %v2017_v43 }
 0x866   : > { %v2039_v0 = vadd.f32 %v6872_v20, %v2028_v29 }
 0x868   : > { %v2046_v53 = vpack.c.bf16 %v2039_v0, %v2038_v48 }
 0x86a   : > { %4986 = vmatmul.msk.bf16.vlgmr.msra.gmra.mxu1 %vm910_vm9, %v2046_v53  ;;  %4990 = vmatmul.msk.bf16.vlgmr.msra.gmra.mxu2 %vm910_vm9, %v2046_v53 }
 0x886   : > { %v1904_v37 = vpop.xlane.xlu1 %1903 }
 0x887   : > { %v1922_v30 = vmul.f32 %v1904_v37, %v6256_v61 }
 0x889   : > { %v1930_v54 = vadd.f32 1e-05, %v1922_v30 }
 0x88b   : > { %5604 = vrsqrt.f32 %v1930_v54  ;;  %vm1962_vm13 = vweird.f32 %v1930_v54 }
 0x88e   : > { %v1907_v39 = vpop.xlane.xlu0 %1906 }
 0x88f   : > { %v1923_v49 = vmul.f32 %v1907_v39, %v6256_v61 }
 0x891   : > { %v5605_v25 = vpop.eup %5604  ;;  %v1931_v50 = vadd.f32 1e-05, %v1923_v49 }
 0x892   : > { %v1957_v24 = vmul.f32 %v5605_v25, %v1930_v54  ;;  %vm1963_vm12 = vweird.f32 %v5605_v25 }
 0x893   : > { %5606 = vrsqrt.f32 %v1931_v50  ;;  %vm1964_vm14 = vmor %vm1962_vm13, %vm1963_vm12  ;;  %vm1972_vm0 = vweird.f32 %v1931_v50 }
 0x894   : > { %v1958_v51 = vmul.f32 %v5605_v25, %v1957_v24 }
 0x896   : > { %v1959_v26 = vmul.f32 0.5, %v1958_v51 }
 0x898   : > { %v1960_v57 = vsub.f32 1.5, %v1959_v26 }
 0x899   : > { %v5607_v59 = vpop.eup %5606 }
 0x89a   : > { %v1961_v46 = vmul.f32 %v5605_v25, %v1960_v57  ;;  %v1967_v1 = vmul.f32 %v5607_v59, %v1931_v50  ;;  %vm1973_vm15 = vweird.f32 %v5607_v59 }
 0x89b   : > { %vm1974_vm1 = vmor %vm1972_vm0, %vm1973_vm15 }
 0x89c   : > { %v1968_v2 = vmul.f32 %v5607_v59, %v1967_v1  ;;  %v1910_v6 = vpop.xlane.xlu2 %1909  ;;  %v1965_v12 = vsel %vm1964_vm14, %v5605_v25, %v1961_v46 }
 0x89d   : > { %v1924_v34 = vmul.f32 %v1910_v6, %v6256_v61  ;;  %v2018_v56 = vmul.f32 %v1965_v12, %v6773_v9 }
 0x89e   : > { %v1969_v28 = vmul.f32 0.5, %v1968_v2 }
 0x89f   : > { %v1932_v10 = vadd.f32 1e-05, %v1924_v34  ;;  %v2029_v22 = vmul.f32 %v6866_v4, %v2018_v56 }
 0x8a0   : > { %v1970_v7 = vsub.f32 1.5, %v1969_v28 }
 0x8a1   : > { %5608 = vrsqrt.f32 %v1932_v10  ;;  %v2040_v9 = vadd.f32 %v6872_v20, %v2029_v22  ;;  %vm1982_vm3 = vweird.f32 %v1932_v10  ;;  %v5348_v22 = vld [vmem:[%s8254_s15 + $0x38] sm:$0xff] }
 0x8a2   : > { %v1971_v17 = vmul.f32 %v5607_v59, %v1970_v7  ;;  %2726 = vmatpush.bf16.msra.mxu0 %v5348_v22 }
 0x8a4   : > { %v1975_v18 = vsel %vm1974_vm1, %v5607_v59, %v1971_v17  ;;  %v1913_v15 = vpop.xlane.xlu1 %1912 }
 0x8a5   : > { %v2019_v45 = vmul.f32 %v1975_v18, %v6780_v16  ;;  %v1925_v21 = vmul.f32 %v1913_v15, %v6256_v61 }
 0x8a7   : > { %v5609_v33 = vpop.eup %5608  ;;  %v1933_v27 = vadd.f32 1e-05, %v1925_v21  ;;  %v2030_v23 = vmul.f32 %v6866_v4, %v2019_v45 }
 0x8a8   : > { %v1977_v44 = vmul.f32 %v5609_v33, %v1932_v10  ;;  %vm1983_vm2 = vweird.f32 %v5609_v33 }
 0x8a9   : > { %5610 = vrsqrt.f32 %v1933_v27  ;;  %v2041_v62 = vadd.f32 %v6872_v20, %v2030_v23  ;;  %vm1984_vm5 = vmor %vm1982_vm3, %vm1983_vm2  ;;  %vm1992_vm7 = vweird.f32 %v1933_v27 }
 0x8aa   : > { %v1978_v3 = vmul.f32 %v5609_v33, %v1977_v44 }
 0x8ab   : > { %v2047_v19 = vpack.c.bf16 %v2041_v62, %v2040_v9  ;;  %v5346_v62 = vld [vmem:[%s8254_s15 + $0x28] sm:$0xff] }
 0x8ac   : > { %v1979_v32 = vmul.f32 0.5, %v1978_v3  ;;  %v1916_v35 = vpop.xlane.xlu0 %1915 }
 0x8ad   : > { %4987 = vmatmul.msk.bf16.gmra.mxu1 %vm910_vm9, %v2047_v19  ;;  %4991 = vmatmul.msk.bf16.gmra.mxu2 %vm910_vm9, %v2047_v19  ;;  %v1926_v5 = vmul.f32 %v1916_v35, %v6256_v61  ;;  %v5345_v35 = vld [vmem:[%s8254_s15 + $0x20] sm:$0xff] }
 0x8ae   : > { %v1980_v16 = vsub.f32 1.5, %v1979_v32  ;;  %v5355_v32 = vld [vmem:[%s8254_s15 + $0x70] sm:$0xff] }
 0x8af   : > { %v5611_v63 = vpop.eup %5610  ;;  %v1934_v48 = vadd.f32 1e-05, %v1926_v5  ;;  %v5354_v5 = vld [vmem:[%s8254_s15 + $0x68] sm:$0xff] }
 0x8b0   : > { %v1981_v40 = vmul.f32 %v5609_v33, %v1980_v16  ;;  %v1987_v41 = vmul.f32 %v5611_v63, %v1933_v27  ;;  %vm1993_vm6 = vweird.f32 %v5611_v63 }
 0x8b1   : > { %vm1994_vm8 = vmor %vm1992_vm7, %vm1993_vm6  ;;  %5612 = vrsqrt.f32 %v1934_v48  ;;  %vm2002_vm11 = vweird.f32 %v1934_v48 }
 0x8b2   : > { %v1988_v47 = vmul.f32 %v5611_v63, %v1987_v41  ;;  %v1985_v43 = vsel %vm1984_vm5, %v5609_v33, %v1981_v40 }
 0x8b3   : > { %v2020_v53 = vmul.f32 %v1985_v43, %v6787_v38 }
 0x8b4   : > { %v1989_v29 = vmul.f32 0.5, %v1988_v47 }
 0x8b5   : > { %v2031_v39 = vmul.f32 %v6866_v4, %v2020_v53 }
 0x8b6   : > { %v1990_v0 = vsub.f32 1.5, %v1989_v29 }
 0x8b7   : > { %v5613_v25 = vpop.eup %5612  ;;  %v2042_v50 = vadd.f32 %v6872_v20, %v2031_v39  ;;  %v5343_v39 = vld [vmem:[%s8254_s15 + $0x10] sm:$0xff] }
 0x8b8   : > { %v1991_v37 = vmul.f32 %v5611_v63, %v1990_v0  ;;  %v1997_v26 = vmul.f32 %v5613_v25, %v1934_v48  ;;  %vm2003_vm10 = vweird.f32 %v5613_v25  ;;  %v5344_v48 = vld [vmem:[%s8254_s15 + $0x18] sm:$0xff] }
 0x8b9   : > { %vm2004_vm12 = vmor %vm2002_vm11, %vm2003_vm10 }
 0x8ba   : > { %v1995_v30 = vsel %vm1994_vm8, %v5611_v63, %v1991_v37  ;;  %v1998_v38 = vmul.f32 %v5613_v25, %v1997_v26  ;;  %v5353_v37 = vld [vmem:[%s8254_s15 + $0x60] sm:$0xff] }
 0x8bb   : > { %v2021_v54 = vmul.f32 %v1995_v30, %v6794_v60 }
 0x8bc   : > { %v1999_v46 = vmul.f32 0.5, %v1998_v38 }
 0x8bd   : > { %v2032_v49 = vmul.f32 %v6866_v4, %v2021_v54 }
 0x8be   : > { %v2000_v1 = vsub.f32 1.5, %v1999_v46 }
 0x8bf   : > { %v2043_v24 = vadd.f32 %v6872_v20, %v2032_v49 }
 0x8c0   : > { %v2001_v6 = vmul.f32 %v5613_v25, %v2000_v1 }
 0x8c1   : > { %v2048_v51 = vpack.c.bf16 %v2043_v24, %v2042_v50 }
 0x8c2   : > { %v2005_v28 = vsel %vm2004_vm12, %v5613_v25, %v2001_v6  ;;  %v5351_v6 = vld [vmem:[%s8254_s15 + $0x50] sm:$0xff] }
 0x8c3   : > { %4988 = vmatmul.msk.bf16.gmra.mxu1 %vm910_vm9, %v2048_v51  ;;  %4992 = vmatmul.msk.bf16.gmra.mxu2 %vm910_vm9, %v2048_v51  ;;  %v2022_v56 = vmul.f32 %v2005_v28, %v6801_v14  ;;  %v2058_v14 = vld [vmem:[%s8253_s14] sm:$0x3]  ;;  %v5352_v51 = vld [vmem:[%s8254_s15 + $0x58] sm:$0xff] }
 0x8c4   : > { %v6915_v44 = vperm.slane %v2058_v14, 0  ;;  %v6934_v19 = vperm.slane %v2058_v14, 1 }
 0x8c5   : > { %v2033_v45 = vmul.f32 %v6866_v4, %v2022_v56 }
 0x8c6   : > { %v1919_v57 = vpop.xlane.xlu2 %1918 }
 0x8c7   : > { %v1927_v59 = vmul.f32 %v1919_v57, %v6256_v61  ;;  %v2044_v33 = vadd.f32 %v6872_v20, %v2033_v45 }
 0x8c9   : > { %v1935_v60 = vadd.f32 1e-05, %v1927_v59 }
 0x8cb   : > { %5614 = vrsqrt.f32 %v1935_v60  ;;  %vm2012_vm14 = vweird.f32 %v1935_v60 }
 0x8d1   : > { %v5615_v2 = vpop.eup %5614 }
 0x8d2   : > { %v2007_v34 = vmul.f32 %v5615_v2, %v1935_v60  ;;  %vm2013_vm13 = vweird.f32 %v5615_v2  ;;  %v5342_v60 = vld [vmem:[%s8254_s15 + $0x8] sm:$0xff] }
 0x8d3   : > { %vm2014_vm15 = vmor %vm2012_vm14, %vm2013_vm13 }
 0x8d4   : > { %v2008_v12 = vmul.f32 %v5615_v2, %v2007_v34 }
 0x8d6   : > { %v2009_v10 = vmul.f32 0.5, %v2008_v12 }
 0x8d8   : > { %v2010_v7 = vsub.f32 1.5, %v2009_v10  ;;  %v5341_v10 = vld [vmem:[%s8254_s15] sm:$0xff] }
 0x8da   : > { %v2011_v17 = vmul.f32 %v5615_v2, %v2010_v7 }
 0x8dc   : > { %v2015_v18 = vsel %vm2014_vm15, %v5615_v2, %v2011_v17 }
 0x8dd   : > { %v2023_v15 = vmul.f32 %v2015_v18, %v6858_v55  ;;  %v5347_v55 = vld [vmem:[%s8254_s15 + $0x30] sm:$0xff] }
 0x8de   : > { %2727 = vmatpush.bf16.msra.mxu0 %v5347_v55 }
 0x8df   : > { %v2034_v21 = vmul.f32 %v6866_v4, %v2023_v15  ;;  %v5356_v4 = vld [vmem:[%s8254_s15 + $0x78] sm:$0xff]  ;;  %v5350_v15 = vld [vmem:[%s8254_s15 + $0x48] sm:$0xff] }
 0x8e0   : > { %2755 = vmatpush.bf16.msrb.mxu3 %v5356_v4 }
 0x8e1   : > { %v2045_v27 = vadd.f32 %v6872_v20, %v2034_v21 }
 0x8e2   : > { %2728 = vmatpush.bf16.msra.mxu0 %v5346_v62 }
 0x8e3   : > { %v2049_v23 = vpack.c.bf16 %v2045_v27, %v2044_v33 }
 0x8e4   : > { %2756 = vmatpush.bf16.msrb.mxu3 %v5355_v32 }
 0x8e5   : > { %4989 = vmatmul.msk.bf16.gmra.mxu1 %vm910_vm9, %v2049_v23  ;;  %4993 = vmatmul.msk.bf16.gmra.mxu2 %vm910_vm9, %v2049_v23 }
 0x8e6   : > { %2729 = vmatpush.bf16.msra.mxu0 %v5345_v35 }
 0x8e7   : > { %v2125_v20 = vpop.f32.mrf.mxu1 }
 0x8e8   : > { %v6926_v9 = vadd.f32 %v2125_v20, %v6915_v44  ;;  %2757 = vmatpush.bf16.msrb.mxu3 %v5354_v5  ;;  %v5349_v20 = vld [vmem:[%s8254_s15 + $0x40] sm:$0xff] }
 0x8ea   : > { %v6932_v3 = vmul.f32 0.70710677, %v6926_v9  ;;  %2730 = vmatpush.bf16.msra.mxu0 %v5344_v48 }
 0x8ec   : > { %v2206_v16 = vand.u32 2147483647, %v6932_v3  ;;  %2758 = vmatpush.bf16.msrb.mxu3 %v5353_v37  ;;  %vm2510_vm0 = vcmp.lt.f32.partialorder %v6932_v3, 0.0 }
 0x8ed   : > { %v2154_v63 = vpop.f32.mrf.mxu2 }
 0x8ee   : > { %v2222_v40 = vmul.f32 0.3275911, %v2206_v16  ;;  %v6944_v41 = vadd.f32 %v2154_v63, %v6934_v19  ;;  %2731 = vmatpush.bf16.msra.mxu0 %v5343_v39  ;;  %v2414_v57 = vmul.f32 %v2206_v16, %v2206_v16 }
 0x8ef   : > { %v2127_v47 = vpop.f32.mrf.mxu1 }
 0x8f0   : > { %v2238_v43 = vadd.f32 1.0, %v2222_v40  ;;  %v6950_v29 = vmul.f32 0.70710677, %v6944_v41  ;;  %v6956_v0 = vadd.f32 %v2127_v47, %v6915_v44  ;;  %2759 = vmatpush.bf16.msrb.mxu3 %v5352_v51  ;;  %v2430_v12 = vsub.f32 0.0, %v2414_v57 }
 0x8f2   : > { %5616 = vrcp.f32 %v2238_v43  ;;  %v2207_v53 = vand.u32 2147483647, %v6950_v29  ;;  %v6963_v30 = vmul.f32 0.70710677, %v6956_v0  ;;  %2732 = vmatpush.bf16.msra.mxu0 %v5342_v60  ;;  %v2446_v22 = vmul.f32 1.442695, %v2430_v12 }
 0x8f3   : > { %vm2511_vm2 = vcmp.lt.f32.partialorder %v6950_v29, 0.0 }
 0x8f4   : > { %v2223_v54 = vmul.f32 0.3275911, %v2207_v53  ;;  %v2208_v49 = vand.u32 2147483647, %v6963_v30  ;;  %2760 = vmatpush.bf16.msrb.mxu3 %v5351_v6  ;;  %v2415_v17 = vmul.f32 %v2207_v53, %v2207_v53  ;;  %vm2512_vm1 = vcmp.lt.f32.partialorder %v6963_v30, 0.0 }
 0x8f5   : > { %v2156_v25 = vpop.f32.mrf.mxu2  ;;  %v2175_v30 = vmul.f32 0.5, %v6944_v41 }
 0x8f6   : > { %v2239_v50 = vadd.f32 1.0, %v2223_v54  ;;  %v6970_v24 = vadd.f32 %v2156_v25, %v6934_v19  ;;  %v2224_v26 = vmul.f32 0.3275911, %v2208_v49  ;;  %2733 = vmatpush.bf16.msra.mxu0 %v5341_v10  ;;  %v2416_v23 = vmul.f32 %v2208_v49, %v2208_v49 }
 0x8f7   : > { %v2431_v55 = vsub.f32 0.0, %v2415_v17 }
 0x8f8   : > { %v5617_v38 = vpop.eup %5616  ;;  %5618 = vrcp.f32 %v2239_v50  ;;  %v6976_v59 = vmul.f32 0.70710677, %v6970_v24  ;;  %v2240_v1 = vadd.f32 1.0, %v2224_v26  ;;  %2761 = vmatpush.bf16.msrb.mxu3 %v5350_v15  ;;  %v2432_v40 = vsub.f32 0.0, %v2416_v23 }
 0x8f9   : > { %v2270_v46 = vmul.f32 1.0614054, %v5617_v38  ;;  %v2448_v47 = vmul.f32 1.442695, %v2431_v55 }
 0x8fa   : > { %v2209_v2 = vand.u32 2147483647, %v6976_v59  ;;  %5620 = vrcp.f32 %v2240_v1  ;;  %v2450_v50 = vmul.f32 1.442695, %v2432_v40  ;;  %vm2513_vm3 = vcmp.lt.f32.partialorder %v6976_v59, 0.0 }
 0x8fb   : > { %v2286_v34 = vadd.f32 -1.4531521, %v2270_v46 }
 0x8fc   : > { %v2225_v28 = vmul.f32 0.3275911, %v2209_v2  ;;  %2762 = vmatpush.bf16.msrb.mxu3 %v5349_v20  ;;  %v2417_v48 = vmul.f32 %v2209_v2, %v2209_v2 }
 0x8fd   : > { %v2302_v7 = vmul.f32 %v5617_v38, %v2286_v34 }
 0x8fe   : > { %v5619_v56 = vpop.eup %5618  ;;  %v2241_v18 = vadd.f32 1.0, %v2225_v28  ;;  %v2433_v60 = vsub.f32 0.0, %v2417_v48 }
 0x8ff   : > { %v2318_v45 = vadd.f32 1.4214138, %v2302_v7  ;;  %v2271_v21 = vmul.f32 1.0614054, %v5619_v56 }
 0x900   : > { %5622 = vrcp.f32 %v2241_v18  ;;  %v5621_v33 = vpop.eup %5620  ;;  %v2452_v7 = vmul.f32 1.442695, %v2433_v60 }
 0x901   : > { %v2334_v27 = vmul.f32 %v5617_v38, %v2318_v45  ;;  %v2287_v14 = vadd.f32 -1.4531521, %v2271_v21  ;;  %v2272_v4 = vmul.f32 1.0614054, %v5621_v33  ;;  %5624 = vpow2.f32 %v2446_v22 }
 0x902   : > { %5626 = vpow2.f32 %v2448_v47 }
 0x903   : > { %v2350_v62 = vadd.f32 -0.28449672, %v2334_v27  ;;  %v2303_v32 = vmul.f32 %v5619_v56, %v2287_v14  ;;  %v2288_v16 = vadd.f32 -1.4531521, %v2272_v4  ;;  %5628 = vpow2.f32 %v2450_v50 }
 0x904   : > { %5630 = vpow2.f32 %v2452_v7 }
 0x905   : > { %v2366_v35 = vmul.f32 %v5617_v38, %v2350_v62  ;;  %v2319_v63 = vadd.f32 1.4214138, %v2303_v32  ;;  %v2304_v43 = vmul.f32 %v5621_v33, %v2288_v16 }
 0x906   : > { %v5623_v5 = vpop.eup %5622 }
 0x907   : > { %v2382_v53 = vadd.f32 0.2548296, %v2366_v35  ;;  %v2335_v37 = vmul.f32 %v5619_v56, %v2319_v63  ;;  %v2273_v54 = vmul.f32 1.0614054, %v5623_v5  ;;  %v2320_v39 = vadd.f32 1.4214138, %v2304_v43  ;;  %v5625_v26 = vpop.eup %5624 }
 0x909   : > { %v2398_v49 = vmul.f32 %v5617_v38, %v2382_v53  ;;  %v2351_v25 = vadd.f32 -0.28449672, %v2335_v37  ;;  %v2289_v51 = vadd.f32 -1.4531521, %v2273_v54  ;;  %v2336_v57 = vmul.f32 %v5621_v33, %v2320_v39  ;;  %v5627_v38 = vpop.eup %5626 }
 0x90a   : > { %v5629_v14 = vpop.eup %5628  ;;  %v2176_v53 = vmul.f32 0.5, %v6956_v0 }
 0x90b   : > { %v2478_v46 = vmul.f32 %v5625_v26, %v2398_v49  ;;  %v2367_v1 = vmul.f32 %v5619_v56, %v2351_v25  ;;  %v2305_v6 = vmul.f32 %v5623_v5, %v2289_v51  ;;  %v2352_v34 = vadd.f32 -0.28449672, %v2336_v57 }
 0x90d   : > { %v2383_v12 = vadd.f32 0.2548296, %v2367_v1  ;;  %v2321_v28 = vadd.f32 1.4214138, %v2305_v6  ;;  %v2494_v2 = vsub.f32 1.0, %v2478_v46  ;;  %v2368_v10 = vmul.f32 %v5621_v33, %v2352_v34 }
 0x90f   : > { %v2399_v17 = vmul.f32 %v5619_v56, %v2383_v12  ;;  %v2337_v18 = vmul.f32 %v5623_v5, %v2321_v28  ;;  %v2384_v15 = vadd.f32 0.2548296, %v2368_v10  ;;  %v2526_v22 = vsub.f32 0.0, %v2494_v2  ;;  %v5631_v56 = vpop.eup %5630 }
 0x911   : > { %v2479_v45 = vmul.f32 %v5627_v38, %v2399_v17  ;;  %v2353_v21 = vadd.f32 -0.28449672, %v2337_v18  ;;  %v2400_v27 = vmul.f32 %v5621_v33, %v2384_v15  ;;  %v2542_v62 = vsel %vm2510_vm0, %v2526_v22, %v2494_v2 }
 0x912   : > { %v2558_v40 = vadd.f32 1.0, %v2542_v62  ;;  %v2174_v33 = vmul.f32 0.5, %v6926_v9  ;;  %v2177_v9 = vmul.f32 0.5, %v6970_v24 }
 0x913   : > { %v2495_v23 = vsub.f32 1.0, %v2479_v45  ;;  %v2369_v55 = vmul.f32 %v5623_v5, %v2353_v21  ;;  %v2480_v4 = vmul.f32 %v5629_v14, %v2400_v27 }
 0x914   : > { %v2574_v54 = vmul.f32 %v2558_v40, %v2174_v33 }
 0x915   : > { %v2385_v20 = vadd.f32 0.2548296, %v2369_v55  ;;  %v2496_v32 = vsub.f32 1.0, %v2480_v4  ;;  %v2527_v16 = vsub.f32 0.0, %v2495_v23 }
 0x917   : > { %v2401_v35 = vmul.f32 %v5623_v5, %v2385_v20  ;;  %v2528_v63 = vsub.f32 0.0, %v2496_v32  ;;  %v2543_v48 = vsel %vm2511_vm2, %v2527_v16, %v2495_v23 }
 0x918   : > { %v2559_v5 = vadd.f32 1.0, %v2543_v48 }
 0x919   : > { %v2481_v47 = vmul.f32 %v5631_v56, %v2401_v35  ;;  %v2544_v43 = vsel %vm2512_vm1, %v2528_v63, %v2496_v32 }
 0x91a   : > { %v2560_v3 = vadd.f32 1.0, %v2544_v43  ;;  %v2575_v29 = vmul.f32 %v2559_v5, %v2175_v30 }
 0x91b   : > { %v2497_v37 = vsub.f32 1.0, %v2481_v47 }
 0x91c   : > { %v2576_v39 = vmul.f32 %v2560_v3, %v2176_v53 }
 0x91d   : > { %v2529_v49 = vsub.f32 0.0, %v2497_v37 }
 0x91e   : > { %v2590_v50 = vpack.c.bf16 %v2576_v39, %v2574_v54 }
 0x91f   : > { %v2545_v25 = vsel %vm2513_vm3, %v2529_v49, %v2497_v37 }
 0x920   : > { %v2561_v51 = vadd.f32 1.0, %v2545_v25  ;;  %2734 = vmatmul.bf16.vlgmr.msra.gmra.mxu0 %v2590_v50 }
 0x922   : > { %v2577_v26 = vmul.f32 %v2561_v51, %v2177_v9 }
 0x924   : > { %v2591_v57 = vpack.c.bf16 %v2577_v26, %v2575_v29 }
 0x926   : > { %2763 = vmatmul.bf16.vlgmr.msrb.gmra.mxu3 %v2591_v57 }
 0x92a   : > { %v2130_v0 = vpop.f32.mrf.mxu1 }
 0x92b   : > { %v7003_v60 = vadd.f32 %v2130_v0, %v6915_v44 }
 0x92d   : > { %v7006_v46 = vmul.f32 0.70710677, %v7003_v60 }
 0x92f   : > { %v2210_v59 = vand.u32 2147483647, %v7006_v46  ;;  %vm2514_vm5 = vcmp.lt.f32.partialorder %v7006_v46, 0.0 }
 0x930   : > { %v2159_v1 = vpop.f32.mrf.mxu2 }
 0x931   : > { %v2226_v6 = vmul.f32 0.3275911, %v2210_v59  ;;  %v7010_v41 = vadd.f32 %v2159_v1, %v6934_v19  ;;  %v2418_v45 = vmul.f32 %v2210_v59, %v2210_v59 }
 0x932   : > { %v2132_v24 = vpop.f32.mrf.mxu1 }
 0x933   : > { %v2242_v34 = vadd.f32 1.0, %v2226_v6  ;;  %v7013_v12 = vmul.f32 0.70710677, %v7010_v41  ;;  %v7016_v28 = vadd.f32 %v2132_v24, %v6915_v44  ;;  %v2434_v4 = vsub.f32 0.0, %v2418_v45 }
 0x935   : > { %5632 = vrcp.f32 %v2242_v34  ;;  %v2211_v2 = vand.u32 2147483647, %v7013_v12  ;;  %v7020_v10 = vmul.f32 0.70710677, %v7016_v28  ;;  %v2454_v40 = vmul.f32 1.442695, %v2434_v4 }
 0x936   : > { %vm2515_vm7 = vcmp.lt.f32.partialorder %v7013_v12, 0.0 }
 0x937   : > { %v2227_v7 = vmul.f32 0.3275911, %v2211_v2  ;;  %v2212_v17 = vand.u32 2147483647, %v7020_v10  ;;  %v2419_v33 = vmul.f32 %v2211_v2, %v2211_v2  ;;  %vm2516_vm6 = vcmp.lt.f32.partialorder %v7020_v10, 0.0 }
 0x938   : > { %v2161_v18 = vpop.f32.mrf.mxu2 }
 0x939   : > { %v2243_v38 = vadd.f32 1.0, %v2227_v7  ;;  %v7024_v15 = vadd.f32 %v2161_v18, %v6934_v19  ;;  %v2228_v21 = vmul.f32 0.3275911, %v2212_v17  ;;  %v2420_v53 = vmul.f32 %v2212_v17, %v2212_v17 }
 0x93a   : > { %v2435_v25 = vsub.f32 0.0, %v2419_v33 }
 0x93b   : > { %v5633_v22 = vpop.eup %5632  ;;  %v7027_v27 = vmul.f32 0.70710677, %v7024_v15  ;;  %5634 = vrcp.f32 %v2243_v38  ;;  %v2244_v14 = vadd.f32 1.0, %v2228_v21  ;;  %v2436_v51 = vsub.f32 0.0, %v2420_v53 }
 0x93c   : > { %v2274_v23 = vmul.f32 1.0614054, %v5633_v22  ;;  %v2456_v17 = vmul.f32 1.442695, %v2435_v25 }
 0x93d   : > { %v2213_v55 = vand.u32 2147483647, %v7027_v27  ;;  %5636 = vrcp.f32 %v2244_v14  ;;  %v2458_v45 = vmul.f32 1.442695, %v2436_v51  ;;  %vm2517_vm8 = vcmp.lt.f32.partialorder %v7027_v27, 0.0 }
 0x93e   : > { %v2290_v20 = vadd.f32 -1.4531521, %v2274_v23 }
 0x93f   : > { %v2229_v62 = vmul.f32 0.3275911, %v2213_v55  ;;  %v2421_v0 = vmul.f32 %v2213_v55, %v2213_v55 }
 0x940   : > { %v2135_v32 = vpop.f32.mrf.mxu1  ;;  %v2306_v16 = vmul.f32 %v5633_v22, %v2290_v20 }
 0x941   : > { %v2245_v35 = vadd.f32 1.0, %v2229_v62  ;;  %v7031_v56 = vadd.f32 %v2135_v32, %v6915_v44  ;;  %v7033_v63 = vpop.eup %5634  ;;  %v2437_v62 = vsub.f32 0.0, %v2421_v0 }
 0x942   : > { %v2322_v47 = vadd.f32 1.4214138, %v2306_v16  ;;  %v2275_v39 = vmul.f32 1.0614054, %v7033_v63 }
 0x943   : > { %5638 = vrcp.f32 %v2245_v35  ;;  %v7036_v43 = vmul.f32 0.70710677, %v7031_v56  ;;  %v7038_v48 = vpop.eup %5636 }
 0x944   : > { %v2338_v3 = vmul.f32 %v5633_v22, %v2322_v47  ;;  %v2276_v54 = vmul.f32 1.0614054, %v7038_v48  ;;  %5640 = vpow2.f32 %v2454_v40  ;;  %v2291_v6 = vadd.f32 -1.4531521, %v2275_v39 }
 0x945   : > { %v2214_v37 = vand.u32 2147483647, %v7036_v43  ;;  %vm2518_vm10 = vcmp.lt.f32.partialorder %v7036_v43, 0.0 }
 0x946   : > { %v2164_v49 = vpop.f32.mrf.mxu2  ;;  %v2354_v5 = vadd.f32 -0.28449672, %v2338_v3  ;;  %v2292_v9 = vadd.f32 -1.4531521, %v2276_v54  ;;  %v2307_v20 = vmul.f32 %v7033_v63, %v2291_v6 }
 0x947   : > { %v2230_v50 = vmul.f32 0.3275911, %v2214_v37  ;;  %v7044_v30 = vadd.f32 %v2164_v49, %v6934_v19  ;;  %v2422_v47 = vmul.f32 %v2214_v37, %v2214_v37  ;;  %v2460_v37 = vmul.f32 1.442695, %v2437_v62 }
 0x948   : > { %v2137_v29 = vpop.f32.mrf.mxu1  ;;  %v2370_v26 = vmul.f32 %v5633_v22, %v2354_v5  ;;  %v2308_v34 = vmul.f32 %v7038_v48, %v2292_v9  ;;  %v2323_v25 = vadd.f32 1.4214138, %v2307_v20 }
 0x949   : > { %v7046_v57 = vpop.eup %5638  ;;  %v2246_v59 = vadd.f32 1.0, %v2230_v50  ;;  %v7049_v1 = vmul.f32 0.70710677, %v7044_v30  ;;  %v7052_v24 = vadd.f32 %v2137_v29, %v6915_v44  ;;  %v7071_v50 = vmul.f32 0.5, %v7003_v60 }
 0x94a   : > { %v2386_v2 = vadd.f32 0.2548296, %v2370_v26  ;;  %v2277_v7 = vmul.f32 1.0614054, %v7046_v57  ;;  %v5641_v38 = vpop.eup %5640  ;;  %v2324_v14 = vadd.f32 1.4214138, %v2308_v34 }
 0x94b   : > { %v2215_v18 = vand.u32 2147483647, %v7049_v1  ;;  %v7058_v21 = vmul.f32 0.70710677, %v7052_v24  ;;  %5642 = vrcp.f32 %v2246_v59  ;;  %v2438_v26 = vsub.f32 0.0, %v2422_v47 }
 0x94c   : > { %v2402_v23 = vmul.f32 %v5633_v22, %v2386_v2  ;;  %v2293_v4 = vadd.f32 -1.4531521, %v2277_v7  ;;  %v2340_v35 = vmul.f32 %v7038_v48, %v2324_v14  ;;  %5644 = vpow2.f32 %v2458_v45 }
 0x94d   : > { %v2231_v55 = vmul.f32 0.3275911, %v2215_v18  ;;  %v2216_v32 = vand.u32 2147483647, %v7058_v21  ;;  %v2423_v49 = vmul.f32 %v2215_v18, %v2215_v18  ;;  %v2180_v34 = vmul.f32 0.5, %v7016_v28 }
 0x94e   : > { %v2166_v16 = vpop.f32.mrf.mxu2  ;;  %v2482_v40 = vmul.f32 %v5641_v38, %v2402_v23  ;;  %v2309_v3 = vmul.f32 %v7046_v57, %v2293_v4  ;;  %v2356_v54 = vadd.f32 -0.28449672, %v2340_v35  ;;  %v2339_v18 = vmul.f32 %v7033_v63, %v2323_v25 }
 0x94f   : > { %v2247_v33 = vadd.f32 1.0, %v2231_v55  ;;  %v7064_v53 = vadd.f32 %v2166_v16, %v6934_v19  ;;  %v2232_v22 = vmul.f32 0.3275911, %v2216_v32  ;;  %v2439_v60 = vsub.f32 0.0, %v2423_v49 }
 0x950   : > { %v2498_v39 = vsub.f32 1.0, %v2482_v40  ;;  %v2372_v51 = vmul.f32 %v7038_v48, %v2356_v54  ;;  %v2325_v6 = vadd.f32 1.4214138, %v2309_v3  ;;  %v7086_v28 = vmul.f32 1.442695, %v2438_v26 }
 0x951   : > { %5646 = vrcp.f32 %v2247_v33  ;;  %v7068_v5 = vmul.f32 0.70710677, %v7064_v53  ;;  %v2248_v9 = vadd.f32 1.0, %v2232_v22  ;;  %v7074_v29 = vpop.eup %5642  ;;  %v2355_v20 = vadd.f32 -0.28449672, %v2339_v18 }
 0x952   : > { %v2530_v59 = vsub.f32 0.0, %v2498_v39  ;;  %v2388_v2 = vadd.f32 0.2548296, %v2372_v51  ;;  %v5645_v38 = vpop.eup %5644  ;;  %v2341_v14 = vmul.f32 %v7046_v57, %v2325_v6  ;;  %v2278_v23 = vmul.f32 1.0614054, %v7074_v29 }
 0x953   : > { %v2217_v0 = vand.u32 2147483647, %v7068_v5  ;;  %5648 = vrcp.f32 %v2248_v9  ;;  %v2464_v47 = vmul.f32 1.442695, %v2439_v60  ;;  %v2371_v33 = vmul.f32 %v7033_v63, %v2355_v20 }
 0x954   : > { %5650 = vpow2.f32 %v2456_v17  ;;  %v2404_v45 = vmul.f32 %v7038_v48, %v2388_v2  ;;  %v2546_v17 = vsel %vm2514_vm5, %v2530_v59, %v2498_v39  ;;  %v2357_v35 = vadd.f32 -0.28449672, %v2341_v14 }
 0x955   : > { %v2233_v7 = vmul.f32 0.3275911, %v2217_v0  ;;  %5652 = vpow2.f32 %v2460_v37  ;;  %v2294_v40 = vadd.f32 -1.4531521, %v2278_v23  ;;  %v2424_v48 = vmul.f32 %v2216_v32, %v2216_v32 }
 0x956   : > { %v2484_v16 = vmul.f32 %v5645_v38, %v2404_v45  ;;  %v2373_v49 = vmul.f32 %v7046_v57, %v2357_v35  ;;  %v7097_v25 = vmul.f32 0.5, %v7024_v15  ;;  %v2562_v37 = vadd.f32 1.0, %v2546_v17 }
 0x957   : > { %v7084_v55 = vpop.eup %5646  ;;  %v2249_v4 = vadd.f32 1.0, %v2233_v7  ;;  %v2310_v46 = vmul.f32 %v7074_v29, %v2294_v40  ;;  %v2387_v9 = vadd.f32 0.2548296, %v2371_v33  ;;  %v2440_v60 = vsub.f32 0.0, %v2424_v48 }
 0x958   : > { %v2279_v62 = vmul.f32 1.0614054, %v7084_v55  ;;  %v2500_v54 = vsub.f32 1.0, %v2484_v16  ;;  %v2389_v6 = vadd.f32 0.2548296, %v2373_v49  ;;  %v2425_v7 = vmul.f32 %v2217_v0, %v2217_v0 }
 0x959   : > { %5654 = vrcp.f32 %v2249_v4  ;;  %v7092_v3 = vpop.eup %5648  ;;  %v2326_v2 = vadd.f32 1.4214138, %v2310_v46  ;;  %v2403_v18 = vmul.f32 %v7033_v63, %v2387_v9  ;;  %v2578_v16 = vmul.f32 %v2562_v37, %v7071_v50 }
 0x95a   : > { %v2295_v22 = vadd.f32 -1.4531521, %v2279_v62  ;;  %v5651_v39 = vpop.eup %5650  ;;  %v2280_v51 = vmul.f32 1.0614054, %v7092_v3  ;;  %v2532_v59 = vsub.f32 0.0, %v2500_v54  ;;  %v2405_v14 = vmul.f32 %v7046_v57, %v2389_v6 }
 0x95b   : > { %v5653_v32 = vpop.eup %5652  ;;  %v2342_v23 = vmul.f32 %v7074_v29, %v2326_v2  ;;  %5656 = vpow2.f32 %v2464_v47  ;;  %v2483_v20 = vmul.f32 %v5651_v39, %v2403_v18  ;;  %v2466_v50 = vmul.f32 1.442695, %v2440_v60 }
 0x95c   : > { %v2311_v26 = vmul.f32 %v7084_v55, %v2295_v22  ;;  %v2296_v15 = vadd.f32 -1.4531521, %v2280_v51  ;;  %v2548_v45 = vsel %vm2516_vm6, %v2532_v59, %v2500_v54  ;;  %v2485_v35 = vmul.f32 %v5653_v32, %v2405_v14 }
 0x95d   : > { %v2564_v17 = vadd.f32 1.0, %v2548_v45  ;;  %v2499_v40 = vsub.f32 1.0, %v2483_v20  ;;  %v2358_v57 = vadd.f32 -0.28449672, %v2342_v23  ;;  %v2441_v54 = vsub.f32 0.0, %v2425_v7 }
 0x95e   : > { %v2327_v38 = vadd.f32 1.4214138, %v2311_v26  ;;  %v2312_v62 = vmul.f32 %v7092_v3, %v2296_v15  ;;  %v2501_v47 = vsub.f32 1.0, %v2485_v35  ;;  %v2179_v20 = vmul.f32 0.5, %v7010_v41 }
 0x95f   : > { %v7108_v4 = vpop.eup %5654  ;;  %v2580_v10 = vmul.f32 %v2564_v17, %v2180_v34  ;;  %v2531_v9 = vsub.f32 0.0, %v2499_v40  ;;  %v2374_v7 = vmul.f32 %v7074_v29, %v2358_v57  ;;  %v2468_v45 = vmul.f32 1.442695, %v2441_v54 }
 0x960   : > { %v2343_v0 = vmul.f32 %v7084_v55, %v2327_v38  ;;  %v2281_v63 = vmul.f32 1.0614054, %v7108_v4  ;;  %v2328_v48 = vadd.f32 1.4214138, %v2312_v62  ;;  %v2533_v37 = vsub.f32 0.0, %v2501_v47 }
 0x961   : > { %v2592_v39 = vpack.c.bf16 %v2580_v10, %v2578_v16  ;;  %v5657_v32 = vpop.eup %5656  ;;  %v2547_v6 = vsel %vm2515_vm7, %v2531_v9, %v2499_v40  ;;  %5658 = vpow2.f32 %v7086_v28  ;;  %v2390_v35 = vadd.f32 0.2548296, %v2374_v7 }
 0x962   : > { %v2359_v33 = vadd.f32 -0.28449672, %v2343_v0  ;;  %v2297_v22 = vadd.f32 -1.4531521, %v2281_v63  ;;  %v2140_v49 = vpop.f32.mrf.mxu1  ;;  %v2344_v51 = vmul.f32 %v7092_v3, %v2328_v48  ;;  %v2549_v38 = vsel %vm2517_vm8, %v2533_v37, %v2501_v47 }
 0x963   : > { %v7115_v46 = vadd.f32 %v2140_v49, %v6915_v44  ;;  %2739 = vmatmul.bf16.gmra.mxu0 %v2592_v39  ;;  %v2563_v60 = vadd.f32 1.0, %v2547_v6  ;;  %v2565_v23 = vadd.f32 1.0, %v2549_v38  ;;  %5660 = vpow2.f32 %v2466_v50 }
 0x964   : > { %v2375_v26 = vmul.f32 %v7084_v55, %v2359_v33  ;;  %v2313_v34 = vmul.f32 %v7108_v4, %v2297_v22  ;;  %v2360_v2 = vadd.f32 -0.28449672, %v2344_v51  ;;  %5662 = vpow2.f32 %v2468_v45 }
 0x965   : > { %v7121_v59 = vmul.f32 0.70710677, %v7115_v46  ;;  %v2581_v16 = vmul.f32 %v2565_v23, %v7097_v25  ;;  %v2579_v48 = vmul.f32 %v2563_v60, %v2179_v20  ;;  %v2406_v47 = vmul.f32 %v7074_v29, %v2390_v35 }
 0x966   : > { %v2391_v18 = vadd.f32 0.2548296, %v2375_v26  ;;  %v2329_v15 = vadd.f32 1.4214138, %v2313_v34  ;;  %v2376_v17 = vmul.f32 %v7092_v3, %v2360_v2  ;;  %v2182_v26 = vmul.f32 0.5, %v7031_v56 }
 0x967   : > { %v2218_v14 = vand.u32 2147483647, %v7121_v59  ;;  %v2593_v54 = vpack.c.bf16 %v2581_v16, %v2579_v48  ;;  %v5659_v39 = vpop.eup %5658  ;;  %vm2519_vm11 = vcmp.lt.f32.partialorder %v7049_v1, 0.0  ;;  %vm2520_vm12 = vcmp.lt.f32.partialorder %v7058_v21, 0.0 }
 0x968   : > { %v2407_v12 = vmul.f32 %v7084_v55, %v2391_v18  ;;  %v2345_v62 = vmul.f32 %v7108_v4, %v2329_v15  ;;  %v2169_v0 = vpop.f32.mrf.mxu2  ;;  %v2392_v55 = vadd.f32 0.2548296, %v2376_v17  ;;  %v2183_v18 = vmul.f32 0.5, %v7044_v30 }
 0x969   : > { %v2234_v63 = vmul.f32 0.3275911, %v2218_v14  ;;  %v7135_v27 = vadd.f32 %v2169_v0, %v6934_v19  ;;  %2768 = vmatmul.bf16.gmra.mxu3 %v2593_v54  ;;  %v2426_v50 = vmul.f32 %v2218_v14, %v2218_v14  ;;  %v2486_v56 = vmul.f32 %v5659_v39, %v2406_v47 }
 0x96a   : > { %v2487_v10 = vmul.f32 %v5657_v32, %v2407_v12  ;;  %v2361_v40 = vadd.f32 -0.28449672, %v2345_v62  ;;  %v2142_v57 = vpop.f32.mrf.mxu1  ;;  %v2408_v37 = vmul.f32 %v7092_v3, %v2392_v55  ;;  %v5661_v32 = vpop.eup %5660  ;;  %vm2521_vm13 = vcmp.lt.f32.partialorder %v7068_v5, 0.0 }
 0x96b   : > { %v2250_v41 = vadd.f32 1.0, %v2234_v63  ;;  %v7139_v28 = vmul.f32 0.70710677, %v7135_v27  ;;  %v7143_v49 = vadd.f32 %v2142_v57, %v6915_v44  ;;  %v5663_v7 = vpop.eup %5662  ;;  %v2442_v23 = vsub.f32 0.0, %v2426_v50 }
 0x96c   : > { %v2503_v33 = vsub.f32 1.0, %v2487_v10  ;;  %v2377_v22 = vmul.f32 %v7108_v4, %v2361_v40  ;;  %v2488_v45 = vmul.f32 %v5661_v32, %v2408_v37  ;;  %v2502_v1 = vsub.f32 1.0, %v2486_v56 }
 0x96d   : > { %5664 = vrcp.f32 %v2250_v41  ;;  %v2219_v25 = vand.u32 2147483647, %v7139_v28  ;;  %v7148_v51 = vmul.f32 0.70710677, %v7143_v49  ;;  %v2185_v48 = vmul.f32 0.5, %v7064_v53 }
 0x96e   : > { %v2393_v9 = vadd.f32 0.2548296, %v2377_v22  ;;  %v2535_v44 = vsub.f32 0.0, %v2503_v33  ;;  %v2504_v12 = vsub.f32 1.0, %v2488_v45  ;;  %v2534_v35 = vsub.f32 0.0, %v2502_v1 }
 0x96f   : > { %v2235_v34 = vmul.f32 0.3275911, %v2219_v25  ;;  %v2220_v29 = vand.u32 2147483647, %v7148_v51  ;;  %v2427_v63 = vmul.f32 %v2219_v25, %v2219_v25  ;;  %v2470_v41 = vmul.f32 1.442695, %v2442_v23 }
 0x970   : > { %v2409_v6 = vmul.f32 %v7108_v4, %v2393_v9  ;;  %v2171_v2 = vpop.f32.mrf.mxu2  ;;  %v2184_v4 = vmul.f32 0.5, %v7052_v24  ;;  %v2551_v17 = vsel %vm2519_vm11, %v2535_v44, %v2503_v33  ;;  %v2536_v10 = vsub.f32 0.0, %v2504_v12 }
 0x971   : > { %v2251_v15 = vadd.f32 1.0, %v2235_v34  ;;  %v7157_v38 = vadd.f32 %v2171_v2, %v6934_v19  ;;  %v2236_v60 = vmul.f32 0.3275911, %v2220_v29  ;;  %v2567_v16 = vadd.f32 1.0, %v2551_v17 }
 0x972   : > { %v2489_v3 = vmul.f32 %v5663_v7, %v2409_v6  ;;  %v2550_v22 = vsel %vm2518_vm10, %v2534_v35, %v2502_v1  ;;  %v2552_v54 = vsel %vm2520_vm12, %v2536_v10, %v2504_v12  ;;  %v2443_v39 = vsub.f32 0.0, %v2427_v63 }
 0x973   : > { %v7160_v14 = vpop.eup %5664  ;;  %5666 = vrcp.f32 %v2251_v15  ;;  %v2252_v20 = vadd.f32 1.0, %v2236_v60  ;;  %v7165_v19 = vmul.f32 0.70710677, %v7157_v38  ;;  %v2566_v50 = vadd.f32 1.0, %v2550_v22 }
 0x974   : > { %v2505_v30 = vsub.f32 1.0, %v2489_v3  ;;  %v2282_v62 = vmul.f32 1.0614054, %v7160_v14  ;;  %v2583_v34 = vmul.f32 %v2567_v16, %v2183_v18  ;;  %v2568_v53 = vadd.f32 1.0, %v2552_v54 }
 0x975   : > { %5668 = vrcp.f32 %v2252_v20  ;;  %v2221_v24 = vand.u32 2147483647, %v7165_v19  ;;  %v2428_v2 = vmul.f32 %v2220_v29, %v2220_v29  ;;  %v2582_v7 = vmul.f32 %v2566_v50, %v2182_v26 }
 0x976   : > { %v2537_v0 = vsub.f32 0.0, %v2505_v30  ;;  %v2298_v40 = vadd.f32 -1.4531521, %v2282_v62  ;;  %v2584_v43 = vmul.f32 %v2568_v53, %v2184_v4  ;;  %vm2522_vm14 = vcmp.lt.f32.partialorder %v7121_v59, 0.0 }
 0x977   : > { %v2237_v55 = vmul.f32 0.3275911, %v2221_v24  ;;  %v2444_v17 = vsub.f32 0.0, %v2428_v2  ;;  %v2429_v4 = vmul.f32 %v2221_v24, %v2221_v24  ;;  %vm2524_vm15 = vcmp.lt.f32.partialorder %v7148_v51, 0.0 }
 0x978   : > { %v2553_v57 = vsel %vm2521_vm13, %v2537_v0, %v2505_v30  ;;  %v2314_v25 = vmul.f32 %v7160_v14, %v2298_v40  ;;  %v2594_v60 = vpack.c.bf16 %v2584_v43, %v2582_v7  ;;  %v2472_v30 = vmul.f32 1.442695, %v2443_v39 }
 0x979   : > { %v5667_v33 = vpop.eup %5666  ;;  %v2569_v5 = vadd.f32 1.0, %v2553_v57  ;;  %v2253_v9 = vadd.f32 1.0, %v2237_v55  ;;  %v2474_v16 = vmul.f32 1.442695, %v2444_v17  ;;  %vm2523_vm0 = vcmp.lt.f32.partialorder %v7139_v28, 0.0 }
 0x97a   : > { %v2283_v47 = vmul.f32 1.0614054, %v5667_v33  ;;  %v2330_v32 = vadd.f32 1.4214138, %v2314_v25  ;;  %2744 = vmatmul.bf16.gmra.mxu0 %v2594_v60  ;;  %vm2525_vm1 = vcmp.lt.f32.partialorder %v7165_v19, 0.0 }
 0x97b   : > { %v2585_v37 = vmul.f32 %v2569_v5, %v2185_v48  ;;  %v5669_v44 = vpop.eup %5668  ;;  %5670 = vrcp.f32 %v2253_v9 }
 0x97c   : > { %v2299_v6 = vadd.f32 -1.4531521, %v2283_v47  ;;  %v2284_v56 = vmul.f32 1.0614054, %v5669_v44  ;;  %v2346_v21 = vmul.f32 %v7160_v14, %v2330_v32  ;;  %5672 = vpow2.f32 %v2470_v41 }
 0x97d   : > { %v2595_v15 = vpack.c.bf16 %v2585_v37, %v2583_v34  ;;  %5674 = vpow2.f32 %v2472_v30  ;;  %v2445_v41 = vsub.f32 0.0, %v2429_v4  ;;  %v2186_v30 = vmul.f32 0.5, %v7115_v46 }
 0x97e   : > { %v2315_v3 = vmul.f32 %v5667_v33, %v2299_v6  ;;  %v2300_v45 = vadd.f32 -1.4531521, %v2284_v56  ;;  %v2362_v23 = vadd.f32 -0.28449672, %v2346_v21  ;;  %5676 = vpow2.f32 %v2474_v16 }
 0x97f   : > { %2773 = vmatmul.bf16.gmra.mxu3 %v2595_v15  ;;  %v2476_v9 = vmul.f32 1.442695, %v2445_v41  ;;  %v2189_v16 = vmul.f32 0.5, %v7157_v38 }
 0x980   : > { %v2331_v18 = vadd.f32 1.4214138, %v2315_v3  ;;  %v2316_v20 = vmul.f32 %v5669_v44, %v2300_v45  ;;  %v2378_v29 = vmul.f32 %v7160_v14, %v2362_v23 }
 0x981   : > { %v5671_v1 = vpop.eup %5670  ;;  %5678 = vpow2.f32 %v2476_v9 }
 0x982   : > { %v2347_v26 = vmul.f32 %v5667_v33, %v2331_v18  ;;  %v2285_v12 = vmul.f32 1.0614054, %v5671_v1  ;;  %v2332_v62 = vadd.f32 1.4214138, %v2316_v20  ;;  %v2394_v0 = vadd.f32 0.2548296, %v2378_v29  ;;  %v5673_v48 = vpop.eup %5672 }
 0x983   : > { %v5675_v50 = vpop.eup %5674  ;;  %v2188_v20 = vmul.f32 0.5, %v7143_v49 }
 0x984   : > { %v2363_v63 = vadd.f32 -0.28449672, %v2347_v26  ;;  %v2301_v35 = vadd.f32 -1.4531521, %v2285_v12  ;;  %v2348_v10 = vmul.f32 %v5669_v44, %v2332_v62  ;;  %v2410_v40 = vmul.f32 %v7160_v14, %v2394_v0  ;;  %v5677_v2 = vpop.eup %5676 }
 0x986   : > { %v2379_v57 = vmul.f32 %v5667_v33, %v2363_v63  ;;  %v2317_v55 = vmul.f32 %v5671_v1, %v2301_v35  ;;  %v2364_v5 = vadd.f32 -0.28449672, %v2348_v10  ;;  %v2490_v22 = vmul.f32 %v5673_v48, %v2410_v40 }
 0x987   : > { %v5679_v23 = vpop.eup %5678  ;;  %v2187_v63 = vmul.f32 0.5, %v7135_v27 }
 0x988   : > { %v2395_v54 = vadd.f32 0.2548296, %v2379_v57  ;;  %v2333_v25 = vadd.f32 1.4214138, %v2317_v55  ;;  %v2380_v24 = vmul.f32 %v5669_v44, %v2364_v5  ;;  %v2506_v47 = vsub.f32 1.0, %v2490_v22 }
 0x989   : > { %v5493_v57 = vld [vmem:[%s8255_s16] ss:$0 sm:$0xff] }
 0x98a   : > { %v2411_v39 = vmul.f32 %v5667_v33, %v2395_v54  ;;  %v2349_v34 = vmul.f32 %v5671_v1, %v2333_v25  ;;  %v2396_v37 = vadd.f32 0.2548296, %v2380_v24  ;;  %v2538_v14 = vsub.f32 0.0, %v2506_v47 }
 0x98c   : > { %v2491_v53 = vmul.f32 %v5675_v50, %v2411_v39  ;;  %v2365_v32 = vadd.f32 -0.28449672, %v2349_v34  ;;  %v2412_v6 = vmul.f32 %v5669_v44, %v2396_v37  ;;  %v2554_v3 = vsel %vm2522_vm14, %v2538_v14, %v2506_v47 }
 0x98d   : > { %v2570_v18 = vadd.f32 1.0, %v2554_v3 }
 0x98e   : > { %v2507_v7 = vsub.f32 1.0, %v2491_v53  ;;  %v2381_v43 = vmul.f32 %v5671_v1, %v2365_v32  ;;  %v2492_v15 = vmul.f32 %v5677_v2, %v2412_v6 }
 0x98f   : > { %v2586_v4 = vmul.f32 %v2570_v18, %v2186_v30 }
 0x990   : > { %v2397_v56 = vadd.f32 0.2548296, %v2381_v43  ;;  %v2508_v21 = vsub.f32 1.0, %v2492_v15  ;;  %v2539_v60 = vsub.f32 0.0, %v2507_v7 }
 0x992   : > { %v2413_v33 = vmul.f32 %v5671_v1, %v2397_v56  ;;  %v2540_v45 = vsub.f32 0.0, %v2508_v21  ;;  %v2555_v59 = vsel %vm2523_vm0, %v2539_v60, %v2507_v7 }
 0x993   : > { %v2571_v1 = vadd.f32 1.0, %v2555_v59 }
 0x994   : > { %v2493_v17 = vmul.f32 %v5679_v23, %v2413_v33  ;;  %v2556_v44 = vsel %vm2524_vm15, %v2540_v45, %v2508_v21 }
 0x995   : > { %v2572_v29 = vadd.f32 1.0, %v2556_v44  ;;  %v2587_v28 = vmul.f32 %v2571_v1, %v2187_v63 }
 0x996   : > { %v2509_v26 = vsub.f32 1.0, %v2493_v17 }
 0x997   : > { %v2588_v12 = vmul.f32 %v2572_v29, %v2188_v20 }
 0x998   : > { %v2541_v62 = vsub.f32 0.0, %v2509_v26 }
 0x999   : > { %v2596_v0 = vpack.c.bf16 %v2588_v12, %v2586_v4 }
 0x99a   : > { %v2557_v51 = vsel %vm2525_vm1, %v2541_v62, %v2509_v26 }
 0x99b   : > { %v2573_v46 = vadd.f32 1.0, %v2557_v51  ;;  %2749 = vmatmul.bf16.gmra.mxu0 %v2596_v0 }
 0x99d   : > { %v2589_v35 = vmul.f32 %v2573_v46, %v2189_v16  ;;  %v2735_v10 = vpop.f32.mrf.mxu0 }
 0x99f   : > { %v2597_v49 = vpack.c.bf16 %v2589_v35, %v2587_v28 }
 0x9a1   : > { %2778 = vmatmul.bf16.gmra.mxu3 %v2597_v49 }
 0x9a5   : > { %v2737_v38 = vpop.f32.mrf.mxu0 }
 0x9a9   : > { %v2764_v40 = vpop.f32.mrf.mxu3 }
 0x9aa   : > { %v2765_v48 = vadd.f32 %v2764_v40, %v2735_v10 }
 0x9ac   : > { %v2784_v19 = vadd.f32 %v2765_v48, %v6718_v58 }
 0x9ae   : > { %v7191_v41 = vadd.f32 %v5493_v57, %v2784_v19 }
 0x9b0   : > { %v2808_v27 = vsel %vm910_vm9, %v7191_v41, 0.0 }
 0x9b1   : > { %v2766_v55 = vpop.f32.mrf.mxu3  ;;  %2809 = vadd.xlane.f32.xlu1 %v2808_v27 }
 0x9b2   : > { %v2767_v5 = vadd.f32 %v2766_v55, %v2737_v38 }
 0x9b4   : > { %v2785_v22 = vadd.f32 %v2767_v5, %v6723_v42 }
 0x9b6   : > { %v7196_v54 = vadd.f32 %v5493_v57, %v2785_v22 }
 0x9b8   : > { %v2811_v25 = vsel %vm910_vm9, %v7196_v54, 0.0 }
 0x9b9   : > { %2812 = vadd.xlane.f32.xlu0 %v2811_v25 }
 0x9e0   : > { %v2740_v24 = vpop.f32.mrf.mxu0 }
 0x9e8   : > { %v2742_v50 = vpop.f32.mrf.mxu0 }
 0x9ec   : > { %v2769_v47 = vpop.f32.mrf.mxu3 }
 0x9ed   : > { %v2770_v58 = vadd.f32 %v2769_v47, %v2740_v24 }
 0x9ef   : > { %v2786_v39 = vadd.f32 %v2770_v58, %v6728_v11 }
 0x9f1   : > { %v7201_v9 = vadd.f32 %v5493_v57, %v2786_v39 }
 0x9f3   : > { %v2814_v34 = vsel %vm910_vm9, %v7201_v9, 0.0 }
 0x9f4   : > { %v2771_v37 = vpop.f32.mrf.mxu3  ;;  %2815 = vadd.xlane.f32.xlu2 %v2814_v34 }
 0x9f5   : > { %v2772_v42 = vadd.f32 %v2771_v37, %v2742_v50 }
 0x9f7   : > { %v2787_v53 = vadd.f32 %v2772_v42, %v6733_v13  ;;  %v2745_v6 = vpop.f32.mrf.mxu0 }
 0x9f9   : > { %v7206_v32 = vadd.f32 %v5493_v57, %v2787_v53 }
 0x9fb   : > { %v2817_v14 = vsel %vm910_vm9, %v7206_v32, 0.0 }
 0x9fc   : > { %2818 = vadd.xlane.f32.xlu1 %v2817_v14 }
 0x9ff   : > { %v2747_v56 = vpop.f32.mrf.mxu0 }
 0xa02   : > { %v2774_v2 = vpop.f32.mrf.mxu3 }
 0xa03   : > { %v2775_v11 = vadd.f32 %v2774_v2, %v2745_v6  ;;  %v5095_v2 = vld [vmem:[%s8245_s6 + $0x70] sm:$0xf] }
 0xa05   : > { %v2788_v7 = vadd.f32 %v2775_v11, %v6738_v52  ;;  %v5364_v11 = vld [vmem:[%s8245_s6 + $0x74] sm:$0xf0] }
 0xa07   : > { %v7211_v43 = vadd.f32 %v5493_v57, %v2788_v7  ;;  %v5363_v7 = vld [vmem:[%s8245_s6 + $0x74] sm:$0xf] }
 0xa09   : > { %v2820_v15 = vsel %vm910_vm9, %v7211_v43, 0.0 }
 0xa0a   : > { %v2776_v21 = vpop.f32.mrf.mxu3  ;;  %2821 = vadd.xlane.f32.xlu0 %v2820_v15  ;;  %v5096_v15 = vor.u32 %v5364_v11, %v5095_v2 }
 0xa0b   : > { %v2777_v13 = vadd.f32 %v2776_v21, %v2747_v56  ;;  %v5097_v56 = vld [vmem:[%s8245_s6 + $0x78] sm:$0xf0]  ;;  %v5087_v21 = vld [vmem:[%s8245_s6 + $0x60] sm:$0xf] }
 0xa0c   : > { %3082 = vmatpush.bf16.msrb.mxu1 %v5096_v15 }
 0xa0d   : > { %v2789_v3 = vadd.f32 %v2777_v13, %v6743_v36  ;;  %v5362_v13 = vld [vmem:[%s8245_s6 + $0x64] sm:$0xf0] }
 0xa0f   : > { %v7216_v60 = vadd.f32 %v5493_v57, %v2789_v3 }
 0xa11   : > { %v2823_v33 = vsel %vm910_vm9, %v7216_v60, 0.0 }
 0xa12   : > { %2824 = vadd.xlane.f32.xlu2 %v2823_v33  ;;  %v5100_v33 = vor.u32 %v5363_v7, %v5097_v56 }
 0xa14   : > { %3111 = vmatpush.bf16.msrb.mxu2 %v5100_v33 }
 0xa18   : > { %v2750_v45 = vpop.f32.mrf.mxu0 }
 0xa20   : > { %v2752_v4 = vpop.f32.mrf.mxu0 }
 0xa24   : > { %v2810_v23 = vpop.xlane.xlu1 %2809  ;;  %v2779_v18 = vpop.f32.mrf.mxu3 }
 0xa25   : > { %v2832_v52 = vmul.f32 %v2810_v23, %v6256_v61  ;;  %v2780_v17 = vadd.f32 %v2779_v18, %v2750_v45  ;;  %v5361_v45 = vld [vmem:[%s8245_s6 + $0x64] sm:$0xf]  ;;  %v5089_v23 = vld [vmem:[%s8245_s6 + $0x68] sm:$0xf0] }
 0xa27   : > { %v7222_v44 = vsub.f32 %v7191_v41, %v2832_v52  ;;  %v2790_v30 = vadd.f32 %v2780_v17, %v6748_v31  ;;  %v5088_v52 = vor.u32 %v5362_v13, %v5087_v21 }
 0xa29   : > { %v2848_v36 = vmul.f32 %v7222_v44, %v7222_v44  ;;  %v7227_v20 = vadd.f32 %v5493_v57, %v2790_v30  ;;  %v5092_v30 = vor.u32 %v5361_v45, %v5089_v23  ;;  %3083 = vmatpush.bf16.msrb.mxu1 %v5088_v52 }
 0xa2b   : > { %v2856_v29 = vsel %vm910_vm9, %v2848_v36, 0.0  ;;  %v2826_v26 = vsel %vm910_vm9, %v7227_v20, 0.0  ;;  %v5079_v36 = vld [vmem:[%s8245_s6 + $0x50] sm:$0xf]  ;;  %3112 = vmatpush.bf16.msrb.mxu2 %v5092_v30 }
 0xa2c   : > { %v2813_v59 = vpop.xlane.xlu0 %2812  ;;  %2857 = vadd.xlane.f32.xlu1 %v2856_v29  ;;  %v2781_v62 = vpop.f32.mrf.mxu3  ;;  %2827 = vadd.xlane.f32.xlu2 %v2826_v26  ;;  %v5360_v29 = vld [vmem:[%s8245_s6 + $0x54] sm:$0xf0] }
 0xa2d   : > { %v2833_v12 = vmul.f32 %v2813_v59, %v6256_v61  ;;  %v2782_v1 = vadd.f32 %v2781_v62, %v2752_v4  ;;  %v5359_v4 = vld [vmem:[%s8245_s6 + $0x54] sm:$0xf] }
 0xa2f   : > { %v7234_v31 = vsub.f32 %v7196_v54, %v2833_v12  ;;  %v2791_v0 = vadd.f32 %v2782_v1, %v6761_v8  ;;  %v5081_v12 = vld [vmem:[%s8245_s6 + $0x58] sm:$0xf0] }
 0xa31   : > { %v2849_v51 = vmul.f32 %v7234_v31, %v7234_v31  ;;  %v7239_v63 = vadd.f32 %v5493_v57, %v2791_v0 }
 0xa33   : > { %v2859_v16 = vsel %vm910_vm9, %v2849_v51, 0.0  ;;  %v2829_v46 = vsel %vm910_vm9, %v7239_v63, 0.0  ;;  %v5080_v51 = vor.u32 %v5360_v29, %v5079_v36 }
 0xa34   : > { %2860 = vadd.xlane.f32.xlu0 %v2859_v16  ;;  %2830 = vadd.xlane.f32.xlu1 %v2829_v46 }
 0xa35   : > { %3084 = vmatpush.bf16.msrb.mxu1 %v5080_v51 }
 0xa67   : > { %v2816_v28 = vpop.xlane.xlu2 %2815 }
 0xa68   : > { %v2834_v35 = vmul.f32 %v2816_v28, %v6256_v61  ;;  %v5084_v28 = vor.u32 %v5359_v4, %v5081_v12 }
 0xa6a   : > { %v7246_v49 = vsub.f32 %v7201_v9, %v2834_v35  ;;  %v5071_v35 = vld [vmem:[%s8245_s6 + $0x40] sm:$0xf]  ;;  %3113 = vmatpush.bf16.msrb.mxu2 %v5084_v28 }
 0xa6c   : > { %v2850_v8 = vmul.f32 %v7246_v49, %v7246_v49 }
 0xa6e   : > { %v2862_v10 = vsel %vm910_vm9, %v2850_v8, 0.0  ;;  %v5358_v8 = vld [vmem:[%s8245_s6 + $0x44] sm:$0xf0] }
 0xa6f   : > { %v2819_v40 = vpop.xlane.xlu1 %2818  ;;  %2863 = vadd.xlane.f32.xlu0 %v2862_v10  ;;  %v5357_v10 = vld [vmem:[%s8245_s6 + $0x44] sm:$0xf] }
 0xa70   : > { %v2835_v48 = vmul.f32 %v2819_v40, %v6256_v61  ;;  %v5073_v40 = vld [vmem:[%s8245_s6 + $0x48] sm:$0xf0] }
 0xa72   : > { %v7253_v57 = vsub.f32 %v7206_v32, %v2835_v48 }
 0xa74   : > { %v2851_v19 = vmul.f32 %v7253_v57, %v7253_v57 }
 0xa76   : > { %v2865_v27 = vsel %vm910_vm9, %v2851_v19, 0.0 }
 0xa77   : > { %2866 = vadd.xlane.f32.xlu2 %v2865_v27  ;;  %v5072_v27 = vor.u32 %v5358_v8, %v5071_v35 }
 0xa79   : > { %3085 = vmatpush.bf16.msrb.mxu1 %v5072_v27 }
 0xa7d   : > { %v2822_v38 = vpop.xlane.xlu0 %2821 }
 0xa7e   : > { %v2836_v55 = vmul.f32 %v2822_v38, %v6256_v61 }
 0xa80   : > { %v7260_v5 = vsub.f32 %v7211_v43, %v2836_v55 }
 0xa82   : > { %v2852_v22 = vmul.f32 %v7260_v5, %v7260_v5 }
 0xa84   : > { %v2868_v25 = vsel %vm910_vm9, %v2852_v22, 0.0  ;;  %v5076_v22 = vor.u32 %v5357_v10, %v5073_v40 }
 0xa85   : > { %2869 = vadd.xlane.f32.xlu1 %v2868_v25  ;;  %v2825_v24 = vpop.xlane.xlu2 %2824 }
 0xa86   : > { %v2837_v47 = vmul.f32 %v2825_v24, %v6256_v61  ;;  %3114 = vmatpush.bf16.msrb.mxu2 %v5076_v22 }
 0xa88   : > { %v7267_v58 = vsub.f32 %v7216_v60, %v2837_v47 }
 0xa8a   : > { %v2853_v39 = vmul.f32 %v7267_v58, %v7267_v58 }
 0xa8c   : > { %v2871_v50 = vsel %vm910_vm9, %v2853_v39, 0.0 }
 0xa8d   : > { %2872 = vadd.xlane.f32.xlu0 %v2871_v50 }
 0xa9f   : > { %v2858_v34 = vpop.xlane.xlu1 %2857  ;;  %v2828_v42 = vpop.xlane.xlu2 %2827 }
 0xaa0   : > { %v2880_v37 = vmul.f32 %v2858_v34, %v6256_v61  ;;  %v2838_v53 = vmul.f32 %v2828_v42, %v6256_v61 }
 0xaa2   : > { %v2888_v6 = vadd.f32 1e-05, %v2880_v37  ;;  %v7275_v14 = vsub.f32 %v7227_v20, %v2838_v53  ;;  %v7339_v53 = vld [vmem:[%s8285_s4 + $0x1] ss:$0 sm:$0xff] }
 0xaa4   : > { %5680 = vrsqrt.f32 %v2888_v6  ;;  %v2854_v3 = vmul.f32 %v7275_v14, %v7275_v14  ;;  %vm2902_vm3 = vweird.f32 %v2888_v6 }
 0xaa6   : > { %v2874_v17 = vsel %vm910_vm9, %v2854_v3, 0.0 }
 0xaa7   : > { %v2861_v18 = vpop.xlane.xlu0 %2860  ;;  %v2831_v26 = vpop.xlane.xlu1 %2830  ;;  %2875 = vadd.xlane.f32.xlu2 %v2874_v17 }
 0xaa8   : > { %v2881_v59 = vmul.f32 %v2861_v18, %v6256_v61  ;;  %v2839_v62 = vmul.f32 %v2831_v26, %v6256_v61 }
 0xaaa   : > { %v5681_v1 = vpop.eup %5680  ;;  %v2889_v0 = vadd.f32 1e-05, %v2881_v59  ;;  %v7319_v46 = vsub.f32 %v7239_v63, %v2839_v62 }
 0xaab   : > { %v2897_v16 = vmul.f32 %v5681_v1, %v2888_v6  ;;  %vm2903_vm2 = vweird.f32 %v5681_v1  ;;  %v7345_v6 = vld [vmem:[%s8244_s5 + $0x1] ss:$0 sm:$0xff] }
 0xaac   : > { %5682 = vrsqrt.f32 %v2889_v0  ;;  %v2855_v19 = vmul.f32 %v7319_v46, %v7319_v46  ;;  %vm2904_vm5 = vmor %vm2902_vm3, %vm2903_vm2  ;;  %vm2912_vm7 = vweird.f32 %v2889_v0 }
 0xaad   : > { %v2898_v48 = vmul.f32 %v5681_v1, %v2897_v16 }
 0xaae   : > { %v2877_v55 = vsel %vm910_vm9, %v2855_v19, 0.0 }
 0xaaf   : > { %v2899_v38 = vmul.f32 0.5, %v2898_v48  ;;  %2878 = vadd.xlane.f32.xlu1 %v2877_v55 }
 0xab1   : > { %v2900_v25 = vsub.f32 1.5, %v2899_v38 }
 0xab2   : > { %v5683_v24 = vpop.eup %5682 }
 0xab3   : > { %v2901_v47 = vmul.f32 %v5681_v1, %v2900_v25  ;;  %v2907_v39 = vmul.f32 %v5683_v24, %v2889_v0  ;;  %vm2913_vm6 = vweird.f32 %v5683_v24 }
 0xab4   : > { %vm2914_vm8 = vmor %vm2912_vm7, %vm2913_vm6 }
 0xab5   : > { %v2908_v50 = vmul.f32 %v5683_v24, %v2907_v39  ;;  %v2905_v34 = vsel %vm2904_vm5, %v5681_v1, %v2901_v47 }
 0xab6   : > { %v2976_v2 = vmul.f32 %v2905_v34, %v7222_v44 }
 0xab7   : > { %v2909_v37 = vmul.f32 0.5, %v2908_v50 }
 0xab8   : > { %v2987_v15 = vmul.f32 %v7339_v53, %v2976_v2 }
 0xab9   : > { %v2910_v42 = vsub.f32 1.5, %v2909_v37 }
 0xaba   : > { %v2998_v13 = vadd.f32 %v7345_v6, %v2987_v15 }
 0xabb   : > { %v2911_v11 = vmul.f32 %v5683_v24, %v2910_v42 }
 0xabd   : > { %v2915_v7 = vsel %vm2914_vm8, %v5683_v24, %v2911_v11 }
 0xabe   : > { %v2977_v56 = vmul.f32 %v2915_v7, %v7234_v31 }
 0xac0   : > { %v2988_v21 = vmul.f32 %v7339_v53, %v2977_v56 }
 0xac2   : > { %v2999_v3 = vadd.f32 %v7345_v6, %v2988_v21 }
 0xac4   : > { %v3006_v44 = vpack.c.bf16 %v2999_v3, %v2998_v13 }
 0xac6   : > { %5101 = vmatmul.msk.bf16.vlgmr.msrb.gmra.mxu1 %vm910_vm9, %v3006_v44  ;;  %5105 = vmatmul.msk.bf16.vlgmr.msrb.gmra.mxu2 %vm910_vm9, %v3006_v44 }
 0xae2   : > { %v2864_v33 = vpop.xlane.xlu0 %2863 }
 0xae3   : > { %v2882_v45 = vmul.f32 %v2864_v33, %v6256_v61 }
 0xae5   : > { %v2890_v23 = vadd.f32 1e-05, %v2882_v45 }
 0xae7   : > { %5684 = vrsqrt.f32 %v2890_v23  ;;  %vm2922_vm11 = vweird.f32 %v2890_v23 }
 0xaea   : > { %v2867_v52 = vpop.xlane.xlu2 %2866 }
 0xaeb   : > { %v2883_v18 = vmul.f32 %v2867_v52, %v6256_v61 }
 0xaed   : > { %v5685_v31 = vpop.eup %5684  ;;  %v2891_v17 = vadd.f32 1e-05, %v2883_v18 }
 0xaee   : > { %v2917_v30 = vmul.f32 %v5685_v31, %v2890_v23  ;;  %vm2923_vm10 = vweird.f32 %v5685_v31 }
 0xaef   : > { %5686 = vrsqrt.f32 %v2891_v17  ;;  %vm2924_vm12 = vmor %vm2922_vm11, %vm2923_vm10  ;;  %vm2932_vm14 = vweird.f32 %v2891_v17 }
 0xaf0   : > { %v2918_v36 = vmul.f32 %v5685_v31, %v2917_v30 }
 0xaf2   : > { %v2919_v29 = vmul.f32 0.5, %v2918_v36 }
 0xaf4   : > { %v2920_v26 = vsub.f32 1.5, %v2919_v29 }
 0xaf5   : > { %v5687_v12 = vpop.eup %5686 }
 0xaf6   : > { %v2921_v62 = vmul.f32 %v5685_v31, %v2920_v26  ;;  %v2927_v1 = vmul.f32 %v5687_v12, %v2891_v17  ;;  %vm2933_vm13 = vweird.f32 %v5687_v12 }
 0xaf7   : > { %vm2934_vm15 = vmor %vm2932_vm14, %vm2933_vm13 }
 0xaf8   : > { %v2870_v59 = vpop.xlane.xlu1 %2869  ;;  %v2928_v51 = vmul.f32 %v5687_v12, %v2927_v1  ;;  %v2925_v16 = vsel %vm2924_vm12, %v5685_v31, %v2921_v62 }
 0xaf9   : > { %v2884_v4 = vmul.f32 %v2870_v59, %v6256_v61  ;;  %v2978_v40 = vmul.f32 %v2925_v16, %v7246_v49 }
 0xafa   : > { %v2929_v28 = vmul.f32 0.5, %v2928_v51 }
 0xafb   : > { %v2892_v0 = vadd.f32 1e-05, %v2884_v4  ;;  %v2989_v24 = vmul.f32 %v7339_v53, %v2978_v40 }
 0xafc   : > { %v2930_v8 = vsub.f32 1.5, %v2929_v28 }
 0xafd   : > { %5688 = vrsqrt.f32 %v2892_v0  ;;  %v3000_v34 = vadd.f32 %v7345_v6, %v2989_v24  ;;  %vm2942_vm1 = vweird.f32 %v2892_v0 }
 0xafe   : > { %v2931_v19 = vmul.f32 %v5687_v12, %v2930_v8 }
 0xb00   : > { %v2873_v35 = vpop.xlane.xlu0 %2872  ;;  %v2935_v55 = vsel %vm2934_vm15, %v5687_v12, %v2931_v19 }
 0xb01   : > { %v2885_v10 = vmul.f32 %v2873_v35, %v6256_v61  ;;  %v2979_v22 = vmul.f32 %v2935_v55, %v7253_v57 }
 0xb03   : > { %v5689_v48 = vpop.eup %5688  ;;  %v2893_v27 = vadd.f32 1e-05, %v2885_v10  ;;  %v2990_v39 = vmul.f32 %v7339_v53, %v2979_v22 }
 0xb04   : > { %v2937_v38 = vmul.f32 %v5689_v48, %v2892_v0  ;;  %vm2943_vm0 = vweird.f32 %v5689_v48 }
 0xb05   : > { %5690 = vrsqrt.f32 %v2893_v27  ;;  %v3001_v49 = vadd.f32 %v7345_v6, %v2990_v39  ;;  %vm2944_vm2 = vmor %vm2942_vm1, %vm2943_vm0  ;;  %vm2952_vm5 = vweird.f32 %v2893_v27 }
 0xb06   : > { %v2938_v25 = vmul.f32 %v5689_v48, %v2937_v38 }
 0xb07   : > { %v3007_v11 = vpack.c.bf16 %v3001_v49, %v3000_v34 }
 0xb08   : > { %v2939_v47 = vmul.f32 0.5, %v2938_v25 }
 0xb09   : > { %5102 = vmatmul.msk.bf16.gmra.mxu1 %vm910_vm9, %v3007_v11  ;;  %5106 = vmatmul.msk.bf16.gmra.mxu2 %vm910_vm9, %v3007_v11 }
 0xb0a   : > { %v2940_v50 = vsub.f32 1.5, %v2939_v47 }
 0xb0b   : > { %v5691_v37 = vpop.eup %5690 }
 0xb0c   : > { %v2941_v42 = vmul.f32 %v5689_v48, %v2940_v50  ;;  %v2947_v2 = vmul.f32 %v5691_v37, %v2893_v27  ;;  %vm2953_vm3 = vweird.f32 %v5691_v37 }
 0xb0d   : > { %vm2954_vm6 = vmor %vm2952_vm5, %vm2953_vm3 }
 0xb0e   : > { %v2948_v7 = vmul.f32 %v5691_v37, %v2947_v2  ;;  %v2945_v57 = vsel %vm2944_vm2, %v5689_v48, %v2941_v42 }
 0xb0f   : > { %v2980_v21 = vmul.f32 %v2945_v57, %v7260_v5 }
 0xb10   : > { %v2949_v15 = vmul.f32 0.5, %v2948_v7 }
 0xb11   : > { %v2991_v33 = vmul.f32 %v7339_v53, %v2980_v21 }
 0xb12   : > { %v2950_v56 = vsub.f32 1.5, %v2949_v15 }
 0xb13   : > { %v3002_v52 = vadd.f32 %v7345_v6, %v2991_v33 }
 0xb14   : > { %v2951_v13 = vmul.f32 %v5691_v37, %v2950_v56 }
 0xb16   : > { %v2955_v3 = vsel %vm2954_vm6, %v5691_v37, %v2951_v13 }
 0xb17   : > { %v2981_v44 = vmul.f32 %v2955_v3, %v7267_v58 }
 0xb19   : > { %v2992_v45 = vmul.f32 %v7339_v53, %v2981_v44  ;;  %v7406_v44 = vld [vmem:[%s8247_s8 + $0x40] sm:$0xff] }
 0xb1a   : > { %v2876_v23 = vpop.xlane.xlu2 %2875 }
 0xb1b   : > { %v3003_v18 = vadd.f32 %v7345_v6, %v2992_v45  ;;  %v2886_v31 = vmul.f32 %v2876_v23, %v6256_v61  ;;  %v7415_v45 = vld [vmem:[%s8247_s8 + $0x58] sm:$0xff] }
 0xb1d   : > { %v3008_v17 = vpack.c.bf16 %v3003_v18, %v3002_v52  ;;  %v2894_v30 = vadd.f32 1e-05, %v2886_v31 }
 0xb1f   : > { %5103 = vmatmul.msk.bf16.gmra.mxu1 %vm910_vm9, %v3008_v17  ;;  %5107 = vmatmul.msk.bf16.gmra.mxu2 %vm910_vm9, %v3008_v17  ;;  %5692 = vrsqrt.f32 %v2894_v30  ;;  %vm2962_vm8 = vweird.f32 %v2894_v30 }
 0xb22   : > { %v2879_v5 = vpop.xlane.xlu1 %2878 }
 0xb23   : > { %v2887_v58 = vmul.f32 %v2879_v5, %v6256_v61 }
 0xb25   : > { %v5693_v36 = vpop.eup %5692  ;;  %v2895_v29 = vadd.f32 1e-05, %v2887_v58 }
 0xb26   : > { %v2957_v59 = vmul.f32 %v5693_v36, %v2894_v30  ;;  %vm2963_vm7 = vweird.f32 %v5693_v36 }
 0xb27   : > { %5694 = vrsqrt.f32 %v2895_v29  ;;  %vm2964_vm10 = vmor %vm2962_vm8, %vm2963_vm7  ;;  %vm2972_vm12 = vweird.f32 %v2895_v29 }
 0xb28   : > { %v2958_v26 = vmul.f32 %v5693_v36, %v2957_v59 }
 0xb2a   : > { %v2959_v4 = vmul.f32 0.5, %v2958_v26 }
 0xb2c   : > { %v2960_v12 = vsub.f32 1.5, %v2959_v4 }
 0xb2d   : > { %v5695_v62 = vpop.eup %5694 }
 0xb2e   : > { %v2961_v1 = vmul.f32 %v5693_v36, %v2960_v12  ;;  %v2967_v0 = vmul.f32 %v5695_v62, %v2895_v29  ;;  %vm2973_vm11 = vweird.f32 %v5695_v62 }
 0xb2f   : > { %vm2974_vm13 = vmor %vm2972_vm12, %vm2973_vm11 }
 0xb30   : > { %v2968_v51 = vmul.f32 %v5695_v62, %v2967_v0  ;;  %v2965_v16 = vsel %vm2964_vm10, %v5693_v36, %v2961_v1 }
 0xb31   : > { %v2982_v8 = vmul.f32 %v2965_v16, %v7275_v14 }
 0xb32   : > { %v2969_v28 = vmul.f32 0.5, %v2968_v51 }
 0xb33   : > { %v2993_v19 = vmul.f32 %v7339_v53, %v2982_v8 }
 0xb34   : > { %v2970_v35 = vsub.f32 1.5, %v2969_v28 }
 0xb35   : > { %v3004_v38 = vadd.f32 %v7345_v6, %v2993_v19 }
 0xb36   : > { %v2971_v10 = vmul.f32 %v5695_v62, %v2970_v35 }
 0xb38   : > { %v2975_v40 = vsel %vm2974_vm13, %v5695_v62, %v2971_v10 }
 0xb39   : > { %v2983_v48 = vmul.f32 %v2975_v40, %v7319_v46  ;;  %v5068_v46 = vld [vmem:[%s8246_s7 + $0x2] sm:$0x3] }
 0xb3a   : > { %v3022_v39 = vperm.slane %v5068_v46, 0  ;;  %v3023_v5 = vperm.slane %v5068_v46, 1 }
 0xb3b   : > { %v2994_v27 = vmul.f32 %v7339_v53, %v2983_v48 }
 0xb3d   : > { %v3005_v55 = vadd.f32 %v7345_v6, %v2994_v27 }
 0xb3f   : > { %v3009_v22 = vpack.c.bf16 %v3005_v55, %v3004_v38 }
 0xb41   : > { %5104 = vmatmul.msk.bf16.gmra.mxu1 %vm910_vm9, %v3009_v22  ;;  %5108 = vmatmul.msk.bf16.gmra.mxu2 %vm910_vm9, %v3009_v22 }
 0xb43   : > { %v3087_v14 = vpop.f32.mrf.mxu1 }
 0xb44   : > { %v3088_v21 = vadd.f32 %v3087_v14, %v3022_v39 }
 0xb49   : > { %v3116_v47 = vpop.f32.mrf.mxu2 }
 0xb4a   : > { %v3117_v16 = vadd.f32 %v3116_v47, %v3023_v5  ;;  %v7452_v47 = vld [vmem:[%s8247_s8 + $0x50] sm:$0xff] }
 0xb4b   : > { %v3089_v25 = vpop.f32.mrf.mxu1 }
 0xb4c   : > { %v3090_v15 = vadd.f32 %v3089_v25, %v3022_v39 }
 0xb4e   : > { %v7397_v13 = vpack.c.bf16 %v3090_v15, %v3088_v21  ;;  %v7493_v21 = vld [vmem:[%s8247_s8 + $0x78] sm:$0xff] }
 0xb51   : > { %v3118_v6 = vpop.f32.mrf.mxu2 }
 0xb52   : > { %v3119_v0 = vadd.f32 %v3118_v6, %v3023_v5 }
 0xb54   : > { %v7434_v28 = vpack.c.bf16 %v3119_v0, %v3117_v16 }
 0xb86   : > { %v3092_v24 = vpop.f32.mrf.mxu1 }
 0xb87   : > { %v3093_v53 = vadd.f32 %v3092_v24, %v3022_v39 }
 0xb8c   : > { %v3121_v42 = vpop.f32.mrf.mxu2 }
 0xb8d   : > { %v3122_v1 = vadd.f32 %v3121_v42, %v3023_v5 }
 0xb8e   : > { %v3094_v50 = vpop.f32.mrf.mxu1 }
 0xb8f   : > { %v3095_v34 = vadd.f32 %v3094_v50, %v3022_v39 }
 0xb91   : > { %v7387_v49 = vpack.c.bf16 %v3095_v34, %v3093_v53 }
 0xb93   : > { %3361 = vrot.lane.b32.xlu1 %v7387_v49, %s8286_s23 }
 0xb94   : > { %v3123_v56 = vpop.f32.mrf.mxu2 }
 0xb95   : > { %v3124_v12 = vadd.f32 %v3123_v56, %v3023_v5  ;;  %v7488_v56 = vld [vmem:[%s8247_s8 + $0x60] sm:$0xff] }
 0xb97   : > { %v7431_v51 = vpack.c.bf16 %v3124_v12, %v3122_v1 }
 0xb9c   : > { %v3097_v37 = vpop.f32.mrf.mxu1 }
 0xb9d   : > { %v3098_v11 = vadd.f32 %v3097_v37, %v3022_v39  ;;  %v5110_v37 = vld [vmem:[%s8247_s8 + $0x48] sm:$0xff] }
 0xba2   : > { %v3126_v3 = vpop.f32.mrf.mxu2 }
 0xba3   : > { %v3127_v4 = vadd.f32 %v3126_v3, %v3023_v5 }
 0xba4   : > { %v3099_v2 = vpop.f32.mrf.mxu1 }
 0xba5   : > { %v3100_v7 = vadd.f32 %v3099_v2, %v3022_v39 }
 0xba7   : > { %v7391_v57 = vpack.c.bf16 %v3100_v7, %v3098_v11  ;;  %v7471_v11 = vld [vmem:[%s8247_s8 + $0x68] sm:$0xff]  ;;  %v7478_v7 = vld [vmem:[%s8247_s8 + $0x70] sm:$0xff] }
 0xba9   : > { %3363 = vrot.lane.b32.xlu2 %v7391_v57, %s8286_s23  ;;  %3157 = vrot.lane.b32.xlu1 %v7391_v57, %s8287_s20 }
 0xbaa   : > { %v3128_v33 = vpop.f32.mrf.mxu2 }
 0xbab   : > { %v3129_v59 = vadd.f32 %v3128_v33, %v3023_v5 }
 0xbad   : > { %v7426_v62 = vpack.c.bf16 %v3129_v59, %v3127_v4 }
 0xbb1   : > { %3351 = vrot.lane.b32.xlu2 %v7397_v13, %s8288_s26  ;;  %3153 = vrot.lane.b32.xlu1 %v7397_v13, %s8287_s20 }
 0xbb9   : > { %3353 = vrot.lane.b32.xlu2 %v7387_v49, %s8288_s26  ;;  %3375 = vrot.lane.b32.xlu1 %v7406_v44, %s8287_s20 }
 0xbbe   : > { %v3102_v23 = vpop.f32.mrf.mxu1 }
 0xbbf   : > { %v3103_v31 = vadd.f32 %v3102_v23, %v3022_v39 }
 0xbc1   : > { %3355 = vrot.lane.b32.xlu2 %v7391_v57, %s8288_s26  ;;  %3381 = vrot.lane.b32.xlu1 %v7415_v45, %s8287_s20 }
 0xbc4   : > { %v3131_v52 = vpop.f32.mrf.mxu2 }
 0xbc5   : > { %v3132_v36 = vadd.f32 %v3131_v52, %v3023_v5 }
 0xbc6   : > { %v3104_v18 = vpop.f32.mrf.mxu1 }
 0xbc7   : > { %v3105_v17 = vadd.f32 %v3104_v18, %v3022_v39 }
 0xbc9   : > { %v7421_v30 = vpack.c.bf16 %v3105_v17, %v3103_v31  ;;  %3377 = vrot.lane.b32.xlu2 %v5110_v37, %s8287_s20 }
 0xbcb   : > { %3365 = vrot.lane.b32.xlu0 %v7421_v30, %s8286_s23 }
 0xbcc   : > { %v3133_v58 = vpop.f32.mrf.mxu2 }
 0xbcd   : > { %v3134_v29 = vadd.f32 %v3133_v58, %v3023_v5 }
 0xbcf   : > { %v3309_v26 = vpack.c.bf16 %v3134_v29, %v3132_v36 }
 0xbd1   : > { %3554 = vrot.lane.b32.xlu1 %v3309_v26, %s8288_s26  ;;  %3326 = vmatpush.bf16.msra.mxu3 %v3309_v26 }
 0xbd2   : > { %3383 = vrot.lane.b32.xlu2 %v7488_v56, %s8287_s20 }
 0xbd3   : > { %3359 = vrot.lane.b32.xlu0 %v7397_v13, %s8286_s23 }
 0xbd5   : > { %3327 = vmatpush.bf16.msra.mxu3 %v7426_v62 }
 0xbd9   : > { %3328 = vmatpush.bf16.msra.mxu3 %v7431_v51 }
 0xbdb   : > { %3159 = vrot.lane.b32.xlu0 %v7421_v30, %s8287_s20 }
 0xbdd   : > { %3329 = vmatpush.bf16.msra.mxu3 %v7434_v28 }
 0xbe3   : > { %3155 = vrot.lane.b32.xlu0 %v7387_v49, %s8287_s20 }
 0xbeb   : > { %3357 = vrot.lane.b32.xlu0 %v7421_v30, %s8288_s26 }
 0xbf3   : > { %3379 = vrot.lane.b32.xlu0 %v7452_v47, %s8287_s20 }
 0xbfb   : > { %3385 = vrot.lane.b32.xlu0 %v7471_v11, %s8287_s20 }
 0xc03   : > { %v3364_v38 = vpop.permute.xlu2 %3363  ;;  %3387 = vrot.lane.b32.xlu0 %v7478_v7, %s8287_s20 }
 0xc04   : > { %v3418_v14 = vsel %vm1268_vm4, %v3364_v38, 0 }
 0xc05   : > { %v3362_v35 = vpop.permute.xlu1 %3361 }
 0xc06   : > { %v3415_v24 = vsel %vm1268_vm4, %v3362_v35, 0 }
 0xc0b   : > { %v3352_v34 = vpop.permute.xlu2 %3351  ;;  %3389 = vrot.lane.b32.xlu0 %v7493_v21, %s8287_s20 }
 0xc13   : > { %v3354_v2 = vpop.permute.xlu2 %3353 }
 0xc1b   : > { %v3158_v8 = vpop.permute.xlu1 %3157  ;;  %v3356_v15 = vpop.permute.xlu2 %3355 }
 0xc1c   : > { %v3180_v39 = vsel %vm1268_vm4, %v3158_v8, 0 }
 0xc23   : > { %v3154_v10 = vpop.permute.xlu1 %3153  ;;  %v3378_v58 = vpop.permute.xlu2 %3377 }
 0xc24   : > { %v3174_v42 = vsel %vm1268_vm4, %v3154_v10, 0 }
 0xc2b   : > { %v3376_v40 = vpop.permute.xlu1 %3375 }
 0xc2c   : > { %v3384_v12 = vpop.permute.xlu2 %3383 }
 0xc33   : > { %v7443_v48 = vpop.permute.xlu1 %3381 }
 0xc3d   : > { %v3366_v19 = vpop.permute.xlu0 %3365 }
 0xc3e   : > { %v3421_v27 = vsel %vm1268_vm4, %v3366_v19, 0 }
 0xc3f   : > { %3427 = vmatpush.bf16.xpose.msra.mxu1 %v3421_v27 }
 0xc43   : > { %v3555_v55 = vpop.permute.xlu1 %3554 }
 0xc44   : > { %3576 = vmatpush.bf16.msra.mxu2 %v3555_v55 }
 0xc45   : > { %v3360_v22 = vpop.permute.xlu0 %3359 }
 0xc46   : > { %v3412_v50 = vsel %vm1268_vm4, %v3360_v22, 0 }
 0xc47   : > { %3428 = vmatpush.bf16.xpose.msra.mxu1 %v3418_v14 }
 0xc4d   : > { %v3160_v25 = vpop.permute.xlu0 %3159 }
 0xc4e   : > { %v3183_v46 = vsel %vm1268_vm4, %v3160_v25, 0 }
 0xc4f   : > { %3189 = vmatpush.bf16.xpose.msrb.mxu0 %v3183_v46  ;;  %3429 = vmatpush.bf16.xpose.msra.mxu1 %v3415_v24 }
 0xc55   : > { %v3156_v53 = vpop.permute.xlu0 %3155 }
 0xc56   : > { %v3177_v6 = vsel %vm1268_vm4, %v3156_v53, 0 }
 0xc57   : > { %3190 = vmatpush.bf16.xpose.msrb.mxu0 %v3180_v39  ;;  %3430 = vmatpush.bf16.xpose.msra.mxu1 %v3412_v50 }
 0xc5e   : > { %5125 = vmatmul.msk.bf16.vlgmr.msra.gmra.mxu1 %vm1268_vm4, %v3352_v34 }
 0xc5f   : > { %3191 = vmatpush.bf16.xpose.msrb.mxu0 %v3177_v6 }
 0xc67   : > { %3192 = vmatpush.bf16.xpose.msrb.mxu0 %v3174_v42 }
 0xc6e   : > { %5117 = vmatmul.msk.bf16.vlgmr.msrb.gmra.mxu0 %vm1268_vm4, %v7397_v13  ;;  %5126 = vmatmul.msk.bf16.gmra.mxu1 %vm1268_vm4, %v3354_v2  ;;  %v3358_v13 = vpop.permute.xlu0 %3357 }
 0xc76   : > { %v3380_v52 = vpop.permute.xlu0 %3379 }
 0xc7e   : > { %5118 = vmatmul.msk.bf16.gmra.mxu0 %vm1268_vm4, %v7387_v49  ;;  %5127 = vmatmul.msk.bf16.gmra.mxu1 %vm1268_vm4, %v3356_v15  ;;  %v3386_v35 = vpop.permute.xlu0 %3385 }
 0xc86   : > { %v3388_v38 = vpop.permute.xlu0 %3387 }
 0xc8e   : > { %5119 = vmatmul.msk.bf16.gmra.mxu0 %vm1268_vm4, %v7391_v57  ;;  %5128 = vmatmul.msk.bf16.gmra.mxu1 %vm1268_vm4, %v3358_v13  ;;  %v3390_v14 = vpop.permute.xlu0 %3389 }
 0xc9e   : > { %5120 = vmatmul.msk.bf16.gmra.mxu0 %vm1268_vm4, %v7421_v30 }
 0xcdb   : > { %v3432_v49 = vpop.f32.mrf.mxu1 }
 0xcdc   : > { %v3433_v3 = vadd.f32 %v3432_v49, %v3376_v40 }
 0xcde   : > { %v3452_v33 = vsel %vm910_vm9, %v3433_v3, -inf }
 0xcdf   : > { %3453 = vmax.xlane.f32.xlu1 %v3452_v33 }
 0xce3   : > { %v3434_v23 = vpop.f32.mrf.mxu1 }
 0xce4   : > { %v3435_v36 = vadd.f32 %v3434_v23, %v3378_v58 }
 0xce6   : > { %v3455_v4 = vsel %vm910_vm9, %v3435_v36, -inf }
 0xceb   : > { %v3194_v18 = vpop.f32.mrf.mxu0  ;;  %v3437_v31 = vpop.f32.mrf.mxu1 }
 0xcec   : > { %v7506_v17 = vadd.f32 %v7406_v44, %v3194_v18  ;;  %v7508_v5 = vadd.f32 %v3437_v31, %v3380_v52 }
 0xcee   : > { %v3214_v57 = vsel %vm910_vm9, %v7506_v17, -inf  ;;  %v3458_v30 = vsel %vm910_vm9, %v7508_v5, -inf }
 0xcef   : > { %3215 = vmax.xlane.f32.xlu2 %v3214_v57  ;;  %3459 = vmax.xlane.f32.xlu0 %v3458_v30 }
 0xcf3   : > { %v3196_v29 = vpop.f32.mrf.mxu0  ;;  %v3439_v59 = vpop.f32.mrf.mxu1 }
 0xcf4   : > { %v7514_v26 = vadd.f32 %v5110_v37, %v3196_v29  ;;  %v3440_v1 = vadd.f32 %v3439_v59, %v7443_v48 }
 0xcf6   : > { %v3217_v44 = vsel %vm910_vm9, %v7514_v26, -inf  ;;  %v3461_v8 = vsel %vm910_vm9, %v3440_v1, -inf }
 0xcf7   : > { %3218 = vmax.xlane.f32.xlu1 %v3217_v44  ;;  %3456 = vmax.xlane.f32.xlu2 %v3455_v4 }
 0xcfb   : > { %v3442_v0 = vpop.f32.mrf.mxu1  ;;  %v3199_v46 = vpop.f32.mrf.mxu0 }
 0xcfc   : > { %v3443_v16 = vadd.f32 %v3442_v0, %v3384_v12  ;;  %v3200_v50 = vadd.f32 %v7452_v47, %v3199_v46 }
 0xcfe   : > { %v3464_v10 = vsel %vm910_vm9, %v3443_v16, -inf  ;;  %v3220_v53 = vsel %vm910_vm9, %v3200_v50, -inf }
 0xcff   : > { %3462 = vmax.xlane.f32.xlu1 %v3461_v8  ;;  %3465 = vmax.xlane.f32.xlu2 %v3464_v10 }
 0xd03   : > { %v3444_v40 = vpop.f32.mrf.mxu1  ;;  %v3201_v34 = vpop.f32.mrf.mxu0 }
 0xd04   : > { %v7522_v19 = vadd.f32 %v3444_v40, %v3386_v35  ;;  %v7539_v6 = vadd.f32 %v7415_v45, %v3201_v34 }
 0xd06   : > { %v3467_v27 = vsel %vm910_vm9, %v7522_v19, -inf  ;;  %v3223_v37 = vsel %vm910_vm9, %v7539_v6, -inf }
 0xd07   : > { %3468 = vmax.xlane.f32.xlu1 %v3467_v27 }
 0xd0b   : > { %v3447_v55 = vpop.f32.mrf.mxu1  ;;  %v7549_v45 = vpop.f32.mrf.mxu0 }
 0xd0c   : > { %v7526_v22 = vadd.f32 %v3447_v55, %v3388_v38 }
 0xd0e   : > { %v3470_v48 = vsel %vm910_vm9, %v7526_v22, -inf }
 0xd0f   : > { %3471 = vmax.xlane.f32.xlu2 %v3470_v48 }
 0xd13   : > { %v3449_v25 = vpop.f32.mrf.mxu1 }
 0xd14   : > { %v7530_v24 = vadd.f32 %v3449_v25, %v3390_v14 }
 0xd16   : > { %v3473_v39 = vsel %vm910_vm9, %v7530_v24, -inf }
 0xd17   : > { %3474 = vmax.xlane.f32.xlu0 %v3473_v39 }
 0xd1f   : > { %3221 = vmax.xlane.f32.xlu0 %v3220_v53 }
 0xd20   : > { %3550 = vrot.lane.b32.xlu1 %v7431_v51, %s8288_s26 }
 0xd27   : > { %3224 = vmax.xlane.f32.xlu0 %v3223_v37 }
 0xd52   : > { %v3454_v42 = vpop.xlane.xlu1 %3453 }
 0xd53   : > { %v3476_v2 = vsub.f32 %v3433_v3, %v3454_v42  ;;  %v3206_v3 = vpop.f32.mrf.mxu0 }
 0xd54   : > { %v7588_v34 = vadd.f32 %v7471_v11, %v3206_v3  ;;  %v7601_v11 = vadd.f32 %v7488_v56, %v7549_v45 }
 0xd55   : > { %v3484_v15 = vmul.f32 1.442695, %v3476_v2 }
 0xd56   : > { %v3229_v37 = vsel %vm910_vm9, %v7588_v34, -inf }
 0xd57   : > { %5696 = vpow2.f32 %v3484_v15 }
 0xd5b   : > { %v3209_v4 = vpop.f32.mrf.mxu0 }
 0xd5d   : > { %v7543_v13 = vpop.eup %5696 }
 0xd5e   : > { %v3500_v47 = vsel %vm910_vm9, %v7543_v13, 0.0 }
 0xd5f   : > { %3501 = vadd.xlane.f32.xlu2 %v3500_v47 }
 0xd62   : > { %v7547_v49 = vpop.xlane.xlu2 %3215  ;;  %v3460_v0 = vpop.xlane.xlu0 %3459 }
 0xd63   : > { %v3478_v40 = vsub.f32 %v7508_v5, %v3460_v0 }
 0xd6a   : > { %v3219_v51 = vpop.xlane.xlu1 %3218  ;;  %v3457_v33 = vpop.xlane.xlu2 %3456 }
 0xd6b   : > { %v3477_v23 = vsub.f32 %v3435_v36, %v3457_v33 }
 0xd6d   : > { %v3486_v52 = vmul.f32 1.442695, %v3477_v23 }
 0xd6f   : > { %5698 = vpow2.f32 %v3486_v52 }
 0xd72   : > { %v3463_v18 = vpop.xlane.xlu1 %3462  ;;  %v3466_v29 = vpop.xlane.xlu2 %3465 }
 0xd73   : > { %v3479_v31 = vsub.f32 %v3440_v1, %v3463_v18  ;;  %v3480_v36 = vsub.f32 %v3443_v16, %v3466_v29  ;;  %v7562_v1 = vadd.f32 %v7478_v7, %v3209_v4 }
 0xd75   : > { %v3490_v57 = vmul.f32 1.442695, %v3479_v31  ;;  %v7551_v30 = vpop.eup %5698  ;;  %v3492_v12 = vmul.f32 1.442695, %v3480_v36  ;;  %v3232_v35 = vsel %vm910_vm9, %v7562_v1, -inf }
 0xd76   : > { %v3503_v58 = vsel %vm910_vm9, %v7551_v30, 0.0 }
 0xd77   : > { %5700 = vpow2.f32 %v3490_v57  ;;  %3552 = vrot.lane.b32.xlu2 %v7426_v62, %s8288_s26  ;;  %3504 = vadd.xlane.f32.xlu0 %v3503_v58  ;;  %v3239_v62 = vsub.f32 %v7514_v26, %v3219_v51  ;;  %v3488_v26 = vmul.f32 1.442695, %v3478_v40  ;;  %v3211_v51 = vpop.f32.mrf.mxu0 }
 0xd78   : > { %5702 = vpow2.f32 %v3492_v12  ;;  %v7604_v52 = vadd.f32 %v7493_v21, %v3211_v51 }
 0xd79   : > { %v3248_v8 = vmul.f32 1.442695, %v3239_v62 }
 0xd7a   : > { %v3235_v31 = vsel %vm910_vm9, %v7604_v52, -inf }
 0xd7b   : > { %5704 = vpow2.f32 %v3248_v8 }
 0xd7c   : > { %5706 = vpow2.f32 %v3488_v26 }
 0xd7d   : > { %v7557_v59 = vpop.eup %5700 }
 0xd7e   : > { %v3509_v44 = vsel %vm910_vm9, %v7557_v59, 0.0  ;;  %v7567_v16 = vpop.eup %5702 }
 0xd7f   : > { %3510 = vadd.xlane.f32.xlu1 %v3509_v44  ;;  %v3512_v7 = vsel %vm910_vm9, %v7567_v16, 0.0 }
 0xd81   : > { %v7574_v38 = vpop.eup %5704 }
 0xd82   : > { %v3265_v14 = vsel %vm910_vm9, %v7574_v38, 0.0  ;;  %v7578_v25 = vpop.eup %5706  ;;  %v3472_v42 = vpop.xlane.xlu2 %3471 }
 0xd83   : > { %v3482_v15 = vsub.f32 %v7526_v22, %v3472_v42  ;;  %v3226_v22 = vsel %vm910_vm9, %v7601_v11, -inf }
 0xd85   : > { %v3496_v23 = vmul.f32 1.442695, %v3482_v15 }
 0xd87   : > { %3233 = vmax.xlane.f32.xlu1 %v3232_v35 }
 0xd8a   : > { %v3475_v10 = vpop.xlane.xlu0 %3474 }
 0xd8b   : > { %3548 = vrot.lane.b32.xlu0 %v7434_v28, %s8288_s26  ;;  %v3469_v28 = vpop.xlane.xlu1 %3468 }
 0xd8c   : > { %v3481_v46 = vsub.f32 %v7522_v19, %v3469_v28  ;;  %v3238_v19 = vsub.f32 %v7506_v17, %v7547_v49  ;;  %v3483_v17 = vsub.f32 %v7530_v24, %v3475_v10 }
 0xd8e   : > { %v3494_v53 = vmul.f32 1.442695, %v3481_v46  ;;  %v3246_v33 = vmul.f32 1.442695, %v3238_v19  ;;  %v3498_v56 = vmul.f32 1.442695, %v3483_v17 }
 0xd8f   : > { %3513 = vadd.xlane.f32.xlu1 %v3512_v7 }
 0xd92   : > { %v3222_v27 = vpop.xlane.xlu0 %3221 }
 0xd93   : > { %v3240_v55 = vsub.f32 %v3200_v50, %v3222_v27  ;;  %v3506_v50 = vsel %vm910_vm9, %v7578_v25, 0.0  ;;  %v3551_v12 = vpop.permute.xlu1 %3550 }
 0xd95   : > { %v3250_v48 = vmul.f32 1.442695, %v3240_v55 }
 0xd97   : > { %5708 = vpow2.f32 %v3250_v48  ;;  %3266 = vadd.xlane.f32.xlu1 %v3265_v14 }
 0xd98   : > { %5710 = vpow2.f32 %v3494_v53 }
 0xd99   : > { %5712 = vpow2.f32 %v3246_v33 }
 0xd9a   : > { %v3225_v18 = vpop.xlane.xlu0 %3224  ;;  %5714 = vpow2.f32 %v3496_v23 }
 0xd9b   : > { %v3241_v49 = vsub.f32 %v7539_v6, %v3225_v18  ;;  %5716 = vpow2.f32 %v3498_v56 }
 0xd9d   : > { %v7580_v5 = vpop.eup %5708  ;;  %v3252_v21 = vmul.f32 1.442695, %v3241_v49 }
 0xd9e   : > { %v3268_v39 = vsel %vm910_vm9, %v7580_v5, 0.0  ;;  %v7592_v2 = vpop.eup %5710 }
 0xd9f   : > { %3269 = vadd.xlane.f32.xlu1 %v3268_v39  ;;  %v3515_v47 = vsel %vm910_vm9, %v7592_v2, 0.0  ;;  %v7612_v45 = vpop.eup %5712  ;;  %5718 = vpow2.f32 %v3252_v21 }
 0xda0   : > { %3507 = vadd.xlane.f32.xlu2 %v3506_v50  ;;  %v7614_v3 = vpop.eup %5714  ;;  %v3262_v24 = vsel %vm910_vm9, %v7612_v45, 0.0 }
 0xda1   : > { %v3518_v6 = vsel %vm910_vm9, %v7614_v3, 0.0  ;;  %v7620_v57 = vpop.eup %5716 }
 0xda2   : > { %v3521_v29 = vsel %vm910_vm9, %v7620_v57, 0.0 }
 0xda5   : > { %v7622_v58 = vpop.eup %5718 }
 0xda6   : > { %v3271_v36 = vsel %vm910_vm9, %v7622_v58, 0.0 }
 0xda8   : > { %3230 = vmax.xlane.f32.xlu2 %v3229_v37 }
 0xdb0   : > { %3516 = vadd.xlane.f32.xlu2 %v3515_v47 }
 0xdb5   : > { %3227 = vmax.xlane.f32.xlu0 %v3226_v22 }
 0xdb8   : > { %3236 = vmax.xlane.f32.xlu2 %v3235_v31 }
 0xdbd   : > { %3263 = vadd.xlane.f32.xlu0 %v3262_v24 }
 0xdc0   : > { %3519 = vadd.xlane.f32.xlu2 %v3518_v6 }
 0xdc5   : > { %3522 = vadd.xlane.f32.xlu0 %v3521_v29 }
 0xdc8   : > { %3272 = vadd.xlane.f32.xlu2 %v3271_v36 }
 0xdd2   : > { %v3502_v44 = vpop.xlane.xlu2 %3501 }
 0xdda   : > { %v3553_v4 = vpop.permute.xlu2 %3552 }
 0xddb   : > { %3577 = vmatpush.bf16.msra.mxu2 %v3553_v4 }
 0xddf   : > { %3578 = vmatpush.bf16.msra.mxu2 %v3551_v12 }
 0xdea   : > { %v3505_v0 = vpop.xlane.xlu0 %3504 }
 0xdeb   : > { %5720 = vrcp.f32 %v3505_v0 }
 0xdec   : > { %5722 = vrcp.f32 %v3502_v44 }
 0xdf1   : > { %v5721_v35 = vpop.eup %5720 }
 0xdf2   : > { %v3511_v62 = vpop.xlane.xlu1 %3510  ;;  %v5723_v10 = vpop.eup %5722  ;;  %v3533_v7 = vmul.f32 %v5721_v35, %v7551_v30 }
 0xdf3   : > { %v3532_v27 = vmul.f32 %v5723_v10, %v7543_v13 }
 0xdf5   : > { %v3540_v48 = vpack.c.bf16 %v3533_v7, %v3532_v27 }
 0xdfa   : > { %v3234_v8 = vpop.xlane.xlu1 %3233 }
 0xdfb   : > { %v3244_v40 = vsub.f32 %v7562_v1, %v3234_v8 }
 0xdfd   : > { %v3258_v26 = vmul.f32 1.442695, %v3244_v40  ;;  %v3549_v55 = vpop.permute.xlu0 %3548 }
 0xdfe   : > { %3579 = vmatpush.bf16.msra.mxu2 %v3549_v55 }
 0xdff   : > { %5724 = vpow2.f32 %v3258_v26 }
 0xe00   : > { %5726 = vrcp.f32 %v3511_v62 }
 0xe01   : > { %5129 = vmatmul.msk.bf16.vlgmr.msra.gmra.mxu2 %vm910_vm9, %v3540_v48 }
 0xe02   : > { %v3514_v19 = vpop.xlane.xlu1 %3513 }
 0xe05   : > { %v7632_v14 = vpop.eup %5724 }
 0xe06   : > { %v3280_v28 = vsel %vm910_vm9, %v7632_v14, 0.0  ;;  %v5727_v1 = vpop.eup %5726 }
 0xe07   : > { %3281 = vadd.xlane.f32.xlu2 %v3280_v28  ;;  %v3535_v39 = vmul.f32 %v5727_v1, %v7557_v59 }
 0xe0a   : > { %v3267_v31 = vpop.xlane.xlu1 %3266 }
 0xe12   : > { %v3270_v62 = vpop.xlane.xlu1 %3269 }
 0xe13   : > { %v3508_v46 = vpop.xlane.xlu2 %3507 }
 0xe14   : > { %5728 = vrcp.f32 %v3508_v46 }
 0xe1a   : > { %v5729_v30 = vpop.eup %5728 }
 0xe1b   : > { %v3534_v13 = vmul.f32 %v5729_v30, %v7578_v25  ;;  %v3231_v50 = vpop.xlane.xlu2 %3230 }
 0xe1c   : > { %v3243_v53 = vsub.f32 %v7588_v34, %v3231_v50 }
 0xe1d   : > { %v3541_v37 = vpack.c.bf16 %v3535_v39, %v3534_v13 }
 0xe1e   : > { %v3256_v42 = vmul.f32 1.442695, %v3243_v53 }
 0xe1f   : > { %5130 = vmatmul.msk.bf16.gmra.mxu2 %vm910_vm9, %v3541_v37 }
 0xe20   : > { %5730 = vpow2.f32 %v3256_v42 }
 0xe21   : > { %5732 = vrcp.f32 %v3514_v19 }
 0xe23   : > { %v3517_v15 = vpop.xlane.xlu2 %3516 }
 0xe24   : > { %5734 = vrcp.f32 %v3517_v15 }
 0xe26   : > { %v7640_v47 = vpop.eup %5730 }
 0xe27   : > { %v3277_v51 = vsel %vm910_vm9, %v7640_v47, 0.0  ;;  %v5733_v59 = vpop.eup %5732 }
 0xe28   : > { %3278 = vadd.xlane.f32.xlu1 %v3277_v51  ;;  %v3228_v25 = vpop.xlane.xlu0 %3227  ;;  %v3536_v23 = vmul.f32 %v5733_v59, %v7567_v16  ;;  %v5368_v51 = vld [vmem:[%s8248_s9 + $0x38] sm:$0xff] }
 0xe29   : > { %v3242_v34 = vsub.f32 %v7601_v11, %v3228_v25  ;;  %3694 = vmatpush.bf16.msra.mxu0 %v5368_v51  ;;  %v5367_v25 = vld [vmem:[%s8248_s9 + $0x30] sm:$0xff] }
 0xe2a   : > { %v5735_v33 = vpop.eup %5734 }
 0xe2b   : > { %v3537_v18 = vmul.f32 %v5735_v33, %v7592_v2  ;;  %v3237_v17 = vpop.xlane.xlu2 %3236  ;;  %v3254_v22 = vmul.f32 1.442695, %v3242_v34 }
 0xe2c   : > { %v3245_v49 = vsub.f32 %v7604_v52, %v3237_v17 }
 0xe2d   : > { %v3542_v56 = vpack.c.bf16 %v3537_v18, %v3536_v23  ;;  %5736 = vpow2.f32 %v3254_v22  ;;  %3695 = vmatpush.bf16.msra.mxu0 %v5367_v25  ;;  %v5366_v23 = vld [vmem:[%s8248_s9 + $0x28] sm:$0xff] }
 0xe2e   : > { %5738 = vrcp.f32 %v3267_v31  ;;  %v3260_v21 = vmul.f32 1.442695, %v3245_v49 }
 0xe2f   : > { %5131 = vmatmul.msk.bf16.gmra.mxu2 %vm910_vm9, %v3542_v56 }
 0xe30   : > { %v3264_v24 = vpop.xlane.xlu0 %3263 }
 0xe31   : > { %5740 = vrcp.f32 %v3264_v24  ;;  %3696 = vmatpush.bf16.msra.mxu0 %v5366_v23 }
 0xe32   : > { %5742 = vpow2.f32 %v3260_v21  ;;  %v5365_v21 = vld [vmem:[%s8248_s9 + $0x20] sm:$0xff] }
 0xe33   : > { %v3520_v6 = vpop.xlane.xlu2 %3519  ;;  %v5737_v29 = vpop.eup %5736 }
 0xe34   : > { %v3274_v16 = vsel %vm910_vm9, %v5737_v29, 0.0  ;;  %v5739_v11 = vpop.eup %5738  ;;  %5744 = vrcp.f32 %v3520_v6 }
 0xe35   : > { %3275 = vadd.xlane.f32.xlu0 %v3274_v16  ;;  %v3295_v52 = vmul.f32 %v5739_v11, %v7574_v38  ;;  %3697 = vmatpush.bf16.msra.mxu0 %v5365_v21 }
 0xe37   : > { %v5741_v2 = vpop.eup %5740 }
 0xe38   : > { %v3294_v36 = vmul.f32 %v5741_v2, %v7612_v45  ;;  %v3523_v44 = vpop.xlane.xlu0 %3522  ;;  %v5743_v4 = vpop.eup %5742 }
 0xe39   : > { %5746 = vrcp.f32 %v3523_v44  ;;  %v3283_v35 = vsel %vm910_vm9, %v5743_v4, 0.0 }
 0xe3a   : > { %v3302_v12 = vpack.c.bf16 %v3295_v52, %v3294_v36  ;;  %v5745_v8 = vpop.eup %5744 }
 0xe3b   : > { %v3273_v0 = vpop.xlane.xlu2 %3272  ;;  %v3538_v40 = vmul.f32 %v5745_v8, %v7614_v3 }
 0xe3c   : > { %5121 = vmatmul.msk.bf16.vlgmr.msra.gmra.mxu3 %vm910_vm9, %v3302_v12  ;;  %5748 = vrcp.f32 %v3273_v0 }
 0xe3d   : > { %3284 = vadd.xlane.f32.xlu0 %v3283_v35  ;;  %5750 = vrcp.f32 %v3270_v62 }
 0xe3f   : > { %v5747_v10 = vpop.eup %5746 }
 0xe40   : > { %v3539_v38 = vmul.f32 %v5747_v10, %v7620_v57 }
 0xe42   : > { %v3543_v45 = vpack.c.bf16 %v3539_v38, %v3538_v40  ;;  %v5749_v7 = vpop.eup %5748 }
 0xe43   : > { %v5751_v26 = vpop.eup %5750  ;;  %v3297_v27 = vmul.f32 %v5749_v7, %v7622_v58 }
 0xe44   : > { %5132 = vmatmul.msk.bf16.gmra.mxu2 %vm910_vm9, %v3543_v45  ;;  %v3296_v55 = vmul.f32 %v5751_v26, %v7580_v5 }
 0xe46   : > { %v3303_v48 = vpack.c.bf16 %v3297_v27, %v3296_v55 }
 0xe4c   : > { %5122 = vmatmul.msk.bf16.gmra.mxu3 %vm910_vm9, %v3303_v48 }
 0xe7a   : > { %v3282_v15 = vpop.xlane.xlu2 %3281 }
 0xe84   : > { %v3581_v28 = vpop.f32.mrf.mxu2 }
 0xe8c   : > { %v3583_v46 = vpop.f32.mrf.mxu2 }
 0xe8d   : > { %v5466_v1 = vpack.i.bf16 %v3583_v46, %v3581_v28 }
 0xe8f   : > { %5467 = vrot.lane.b32.xlu1 %v5466_v1, %s8286_s23 }
 0xe9b   : > { %v3279_v30 = vpop.xlane.xlu1 %3278 }
 0xe9c   : > { %5752 = vrcp.f32 %v3279_v30 }
 0xea2   : > { %v3586_v3 = vpop.f32.mrf.mxu2  ;;  %v5753_v58 = vpop.eup %5752 }
 0xea3   : > { %v3299_v5 = vmul.f32 %v5753_v58, %v7640_v47 }
 0xea8   : > { %v3276_v57 = vpop.xlane.xlu0 %3275 }
 0xea9   : > { %5754 = vrcp.f32 %v3276_v57 }
 0xeaa   : > { %v3588_v39 = vpop.f32.mrf.mxu2 }
 0xeab   : > { %v5471_v13 = vpack.i.bf16 %v3588_v39, %v3586_v3 }
 0xead   : > { %5472 = vrot.lane.b32.xlu2 %v5471_v13, %s8286_s23  ;;  %v5496_v13 = vld [vmem:[%s8249_s10 + $0x1] ss:$0 sm:$0xff] }
 0xeaf   : > { %v5755_v50 = vpop.eup %5754 }
 0xeb0   : > { %v3298_v53 = vmul.f32 %v5755_v50, %v5737_v29  ;;  %v3285_v42 = vpop.xlane.xlu0 %3284 }
 0xeb1   : > { %5756 = vrcp.f32 %v3285_v42 }
 0xeb2   : > { %v3591_v37 = vpop.f32.mrf.mxu2  ;;  %v3304_v19 = vpack.c.bf16 %v3299_v5, %v3298_v53  ;;  %5758 = vrcp.f32 %v3282_v15 }
 0xeb4   : > { %5123 = vmatmul.msk.bf16.gmra.mxu3 %vm910_vm9, %v3304_v19 }
 0xeb7   : > { %v5757_v33 = vpop.eup %5756 }
 0xeb8   : > { %v5759_v34 = vpop.eup %5758  ;;  %v3301_v18 = vmul.f32 %v5757_v33, %v5743_v4 }
 0xeb9   : > { %v3300_v17 = vmul.f32 %v5759_v34, %v7632_v14 }
 0xeba   : > { %v3593_v59 = vpop.f32.mrf.mxu2 }
 0xebb   : > { %v5476_v47 = vpack.i.bf16 %v3593_v59, %v3591_v37  ;;  %v3305_v22 = vpack.c.bf16 %v3301_v18, %v3300_v17 }
 0xebd   : > { %5477 = vrot.lane.b32.xlu0 %v5476_v47, %s8286_s23 }
 0xebf   : > { %v3331_v24 = vpop.f32.mrf.mxu3 }
 0xec4   : > { %5124 = vmatmul.msk.bf16.gmra.mxu3 %vm910_vm9, %v3305_v22 }
 0xec7   : > { %v3596_v49 = vpop.f32.mrf.mxu2  ;;  %v3333_v6 = vpop.f32.mrf.mxu3 }
 0xecf   : > { %v3598_v31 = vpop.f32.mrf.mxu2  ;;  %v3336_v36 = vpop.f32.mrf.mxu3 }
 0xed0   : > { %v5481_v56 = vpack.i.bf16 %v3598_v31, %v3596_v49 }
 0xed2   : > { %5482 = vrot.lane.b32.xlu1 %v5481_v56, %s8286_s23 }
 0xed7   : > { %v3338_v0 = vpop.f32.mrf.mxu3 }
 0xf01   : > { %v5468_v29 = vpop.permute.xlu1 %5467 }
 0xf02   : > { %v5470_v16 = vunpack.i.h.bf16 %v5468_v29  ;;  %v5469_v11 = vunpack.i.l.bf16 %v5468_v29 }
 0xf04   : > { %v3634_v14 = vsel %vm1268_vm4, %v3333_v6, %v5470_v16  ;;  %v3633_v2 = vsel %vm1268_vm4, %v3331_v24, %v5469_v11 }
 0xf05   : > { %v3641_v52 = vpack.c.bf16 %v3634_v14, %v3633_v2 }
 0xf07   : > { %5157 = vmatmul.msk.bf16.vlgmr.msra.gmra.mxu0 %vm910_vm9, %v3641_v52  ;;  %v5473_v44 = vpop.permute.xlu2 %5472 }
 0xf08   : > { %v5475_v4 = vunpack.i.h.bf16 %v5473_v44  ;;  %v5474_v12 = vunpack.i.l.bf16 %v5473_v44 }
 0xf0a   : > { %v3636_v62 = vsel %vm1268_vm4, %v3338_v0, %v5475_v4  ;;  %v3635_v35 = vsel %vm1268_vm4, %v3336_v36, %v5474_v12 }
 0xf0b   : > { %v3642_v8 = vpack.c.bf16 %v3636_v62, %v3635_v35 }
 0xf17   : > { %5158 = vmatmul.msk.bf16.gmra.mxu0 %vm910_vm9, %v3642_v8 }
 0xf2f   : > { %v5478_v40 = vpop.permute.xlu0 %5477 }
 0xf30   : > { %v5480_v38 = vunpack.i.h.bf16 %v5478_v40  ;;  %v5479_v45 = vunpack.i.l.bf16 %v5478_v40 }
 0xf37   : > { %v3341_v10 = vpop.f32.mrf.mxu3 }
 0xf38   : > { %v3637_v26 = vsel %vm1268_vm4, %v3341_v10, %v5479_v45 }
 0xf3f   : > { %v3343_v7 = vpop.f32.mrf.mxu3 }
 0xf40   : > { %v3638_v27 = vsel %vm1268_vm4, %v3343_v7, %v5480_v38 }
 0xf41   : > { %v3643_v55 = vpack.c.bf16 %v3638_v27, %v3637_v26 }
 0xf43   : > { %5159 = vmatmul.msk.bf16.gmra.mxu0 %vm910_vm9, %v3643_v55 }
 0xf44   : > { %v5483_v28 = vpop.permute.xlu1 %5482 }
 0xf45   : > { %v5484_v46 = vunpack.i.l.bf16 %v5483_v28  ;;  %v5485_v1 = vunpack.i.h.bf16 %v5483_v28 }
 0xf47   : > { %v3346_v48 = vpop.f32.mrf.mxu3 }
 0xf48   : > { %v3639_v30 = vsel %vm1268_vm4, %v3346_v48, %v5484_v46 }
 0xf4f   : > { %v3348_v3 = vpop.f32.mrf.mxu3 }
 0xf50   : > { %v3640_v57 = vsel %vm1268_vm4, %v3348_v3, %v5485_v1 }
 0xf51   : > { %v3644_v39 = vpack.c.bf16 %v3640_v57, %v3639_v30 }
 0xf53   : > { %5160 = vmatmul.msk.bf16.gmra.mxu0 %vm910_vm9, %v3644_v39 }
 0xf84   : > { %v3699_v58 = vpop.f32.mrf.mxu0 }
 0xf85   : > { %v3719_v50 = vadd.f32 %v3699_v58, %v7191_v41 }
 0xf87   : > { %v7696_v5 = vadd.f32 %v5496_v13, %v3719_v50 }
 0xf89   : > { %v3744_v53 = vsel %vm910_vm9, %v7696_v5, 0.0 }
 0xf8a   : > { %3745 = vadd.xlane.f32.xlu0 %v3744_v53 }
 0xf8c   : > { %v3701_v37 = vpop.f32.mrf.mxu0 }
 0xf8d   : > { %v3720_v42 = vadd.f32 %v3701_v37, %v7196_v54 }
 0xf8f   : > { %v7701_v19 = vadd.f32 %v5496_v13, %v3720_v42 }
 0xf91   : > { %v3747_v15 = vsel %vm910_vm9, %v7701_v19, 0.0 }
 0xf92   : > { %3748 = vadd.xlane.f32.xlu2 %v3747_v15 }
 0xf94   : > { %v3704_v51 = vpop.f32.mrf.mxu0 }
 0xf95   : > { %v3721_v59 = vadd.f32 %v3704_v51, %v7201_v9  ;;  %v5199_v51 = vld [vmem:[%s8252_s13 + $0x70] sm:$0xf] }
 0xf97   : > { %v7706_v25 = vadd.f32 %v5496_v13, %v3721_v59  ;;  %v5376_v59 = vld [vmem:[%s8252_s13 + $0x74] sm:$0xf0] }
 0xf99   : > { %v3750_v41 = vsel %vm910_vm9, %v7706_v25, 0.0 }
 0xf9a   : > { %3751 = vadd.xlane.f32.xlu1 %v3750_v41  ;;  %v5375_v41 = vld [vmem:[%s8252_s13 + $0x74] sm:$0xf] }
 0xf9c   : > { %v3706_v47 = vpop.f32.mrf.mxu0 }
 0xf9d   : > { %v3722_v33 = vadd.f32 %v3706_v47, %v7206_v32 }
 0xf9f   : > { %v7711_v34 = vadd.f32 %v5496_v13, %v3722_v33  ;;  %v5200_v33 = vor.u32 %v5376_v59, %v5199_v51 }
 0xfa1   : > { %v3753_v54 = vsel %vm910_vm9, %v7711_v34, 0.0  ;;  %4018 = vmatpush.bf16.msrb.mxu3 %v5200_v33  ;;  %v7846_v33 = vld [vmem:[%s8250_s11 + $0x1] ss:$0 sm:$0xff] }
 0xfa2   : > { %3754 = vadd.xlane.f32.xlu0 %v3753_v54  ;;  %v5201_v54 = vld [vmem:[%s8252_s13 + $0x78] sm:$0xf0] }
 0xfc0   : > { %v3709_v23 = vpop.f32.mrf.mxu0 }
 0xfc1   : > { %v3723_v18 = vadd.f32 %v3709_v23, %v7211_v43  ;;  %v5204_v23 = vor.u32 %v5375_v41, %v5201_v54 }
 0xfc3   : > { %v7716_v17 = vadd.f32 %v5496_v13, %v3723_v18  ;;  %4047 = vmatpush.bf16.msrb.mxu1 %v5204_v23  ;;  %v5191_v18 = vld [vmem:[%s8252_s13 + $0x60] sm:$0xf] }
 0xfc5   : > { %v3756_v9 = vsel %vm910_vm9, %v7716_v17, 0.0 }
 0xfc6   : > { %3757 = vadd.xlane.f32.xlu2 %v3756_v9  ;;  %v5374_v9 = vld [vmem:[%s8252_s13 + $0x64] sm:$0xf0] }
 0xfc8   : > { %v3711_v22 = vpop.f32.mrf.mxu0 }
 0xfc9   : > { %v3724_v49 = vadd.f32 %v3711_v22, %v7216_v60  ;;  %v5373_v22 = vld [vmem:[%s8252_s13 + $0x64] sm:$0xf] }
 0xfcb   : > { %v7721_v31 = vadd.f32 %v5496_v13, %v3724_v49  ;;  %v5192_v49 = vor.u32 %v5374_v9, %v5191_v18 }
 0xfcd   : > { %v3759_v32 = vsel %vm910_vm9, %v7721_v31, 0.0  ;;  %4019 = vmatpush.bf16.msrb.mxu3 %v5192_v49  ;;  %v7852_v49 = vld [vmem:[%s8251_s12 + $0x1] ss:$0 sm:$0xff] }
 0xfce   : > { %3760 = vadd.xlane.f32.xlu1 %v3759_v32  ;;  %v5193_v32 = vld [vmem:[%s8252_s13 + $0x68] sm:$0xf0] }
 0xfd0   : > { %v3714_v56 = vpop.f32.mrf.mxu0 }
 0xfd1   : > { %v3725_v21 = vadd.f32 %v3714_v56, %v7227_v20 }
 0xfd3   : > { %v7726_v24 = vadd.f32 %v5496_v13, %v3725_v21 }
 0xfd5   : > { %v3762_v43 = vsel %vm910_vm9, %v7726_v24, 0.0 }
 0xfd6   : > { %3763 = vadd.xlane.f32.xlu1 %v3762_v43  ;;  %v5196_v43 = vor.u32 %v5373_v22, %v5193_v32 }
 0xfd8   : > { %v3716_v16 = vpop.f32.mrf.mxu0  ;;  %4048 = vmatpush.bf16.msrb.mxu1 %v5196_v43 }
 0xfd9   : > { %v3726_v14 = vadd.f32 %v3716_v16, %v7239_v63  ;;  %v5183_v16 = vld [vmem:[%s8252_s13 + $0x50] sm:$0xf] }
 0xfdb   : > { %v7739_v36 = vadd.f32 %v5496_v13, %v3726_v14  ;;  %v5371_v14 = vld [vmem:[%s8252_s13 + $0x54] sm:$0xf] }
 0xfdd   : > { %v3765_v0 = vsel %vm910_vm9, %v7739_v36, 0.0 }
 0xffd   : > { %v3746_v6 = vpop.xlane.xlu0 %3745 }
 0xffe   : > { %v3768_v29 = vmul.f32 %v3746_v6, %v6256_v61 }
0x1000   : > { %v7732_v60 = vsub.f32 %v7696_v5, %v3768_v29 }
0x1002   : > { %v3784_v11 = vmul.f32 %v7732_v60, %v7732_v60 }
0x1004   : > { %v3792_v20 = vsel %vm910_vm9, %v3784_v11, 0.0  ;;  %v5372_v11 = vld [vmem:[%s8252_s13 + $0x54] sm:$0xf0] }
0x1005   : > { %v3749_v2 = vpop.xlane.xlu2 %3748  ;;  %3793 = vadd.xlane.f32.xlu0 %v3792_v20 }
0x1006   : > { %v3769_v52 = vmul.f32 %v3749_v2, %v6256_v61 }
0x1008   : > { %v7742_v44 = vsub.f32 %v7701_v19, %v3769_v52 }
0x100a   : > { %v3785_v4 = vmul.f32 %v7742_v44, %v7742_v44 }
0x100c   : > { %v3795_v12 = vsel %vm910_vm9, %v3785_v4, 0.0  ;;  %v5184_v4 = vor.u32 %v5372_v11, %v5183_v16 }
0x100d   : > { %v3752_v63 = vpop.xlane.xlu1 %3751  ;;  %3796 = vadd.xlane.f32.xlu2 %v3795_v12  ;;  %3766 = vadd.xlane.f32.xlu0 %v3765_v0  ;;  %v5185_v12 = vld [vmem:[%s8252_s13 + $0x58] sm:$0xf0] }
0x100e   : > { %v3770_v62 = vmul.f32 %v3752_v63, %v6256_v61  ;;  %v5188_v63 = vor.u32 %v5371_v14, %v5185_v12  ;;  %4020 = vmatpush.bf16.msrb.mxu3 %v5184_v4 }
0x1010   : > { %v7751_v35 = vsub.f32 %v7706_v25, %v3770_v62  ;;  %4049 = vmatpush.bf16.msrb.mxu1 %v5188_v63 }
0x1012   : > { %v3786_v8 = vmul.f32 %v7751_v35, %v7751_v35 }
0x1014   : > { %v3798_v10 = vsel %vm910_vm9, %v3786_v8, 0.0 }
0x1015   : > { %v3755_v40 = vpop.xlane.xlu0 %3754  ;;  %3799 = vadd.xlane.f32.xlu2 %v3798_v10  ;;  %v5175_v10 = vld [vmem:[%s8252_s13 + $0x40] sm:$0xf] }
0x1016   : > { %v3771_v38 = vmul.f32 %v3755_v40, %v6256_v61  ;;  %v5370_v40 = vld [vmem:[%s8252_s13 + $0x44] sm:$0xf0] }
0x1018   : > { %v7758_v45 = vsub.f32 %v7711_v34, %v3771_v38  ;;  %v5369_v38 = vld [vmem:[%s8252_s13 + $0x44] sm:$0xf] }
0x101a   : > { %v3787_v7 = vmul.f32 %v7758_v45, %v7758_v45 }
0x101c   : > { %v3801_v26 = vsel %vm910_vm9, %v3787_v7, 0.0 }
0x101d   : > { %3802 = vadd.xlane.f32.xlu1 %v3801_v26  ;;  %v5176_v26 = vor.u32 %v5370_v40, %v5175_v10 }
0x101f   : > { %4021 = vmatpush.bf16.msrb.mxu3 %v5176_v26 }
0x1039   : > { %v3758_v27 = vpop.xlane.xlu2 %3757 }
0x103a   : > { %v3772_v55 = vmul.f32 %v3758_v27, %v6256_v61  ;;  %v5177_v27 = vld [vmem:[%s8252_s13 + $0x48] sm:$0xf0] }
0x103c   : > { %v7765_v48 = vsub.f32 %v7716_v17, %v3772_v55 }
0x103e   : > { %v3788_v28 = vmul.f32 %v7765_v48, %v7765_v48 }
0x1040   : > { %v3804_v46 = vsel %vm910_vm9, %v3788_v28, 0.0 }
0x1041   : > { %v3761_v1 = vpop.xlane.xlu1 %3760  ;;  %3805 = vadd.xlane.f32.xlu0 %v3804_v46  ;;  %v5180_v46 = vor.u32 %v5369_v38, %v5177_v27 }
0x1042   : > { %v3773_v3 = vmul.f32 %v3761_v1, %v6256_v61 }
0x1043   : > { %4050 = vmatpush.bf16.msrb.mxu1 %v5180_v46 }
0x1044   : > { %v7772_v30 = vsub.f32 %v7721_v31, %v3773_v3 }
0x1046   : > { %v3789_v57 = vmul.f32 %v7772_v30, %v7772_v30 }
0x1048   : > { %v3807_v39 = vsel %vm910_vm9, %v3789_v57, 0.0 }
0x1049   : > { %3808 = vadd.xlane.f32.xlu2 %v3807_v39  ;;  %v3764_v13 = vpop.xlane.xlu1 %3763 }
0x104a   : > { %v3774_v58 = vmul.f32 %v3764_v13, %v6256_v61 }
0x104c   : > { %v7779_v50 = vsub.f32 %v7726_v24, %v3774_v58 }
0x104e   : > { %v3790_v53 = vmul.f32 %v7779_v50, %v7779_v50 }
0x1050   : > { %v3810_v37 = vsel %vm910_vm9, %v3790_v53, 0.0 }
0x1051   : > { %3811 = vadd.xlane.f32.xlu1 %v3810_v37 }
0x1078   : > { %v3794_v42 = vpop.xlane.xlu0 %3793 }
0x1079   : > { %v3816_v15 = vmul.f32 %v3794_v42, %v6256_v61 }
0x107b   : > { %v3824_v47 = vadd.f32 1e-05, %v3816_v15 }
0x107d   : > { %5760 = vrsqrt.f32 %v3824_v47  ;;  %vm3838_vm14 = vweird.f32 %v3824_v47 }
0x1080   : > { %v3797_v56 = vpop.xlane.xlu2 %3796  ;;  %v3767_v21 = vpop.xlane.xlu0 %3766 }
0x1081   : > { %v3817_v6 = vmul.f32 %v3797_v56, %v6256_v61  ;;  %v3775_v29 = vmul.f32 %v3767_v21, %v6256_v61 }
0x1083   : > { %v5761_v20 = vpop.eup %5760  ;;  %v3825_v2 = vadd.f32 1e-05, %v3817_v6  ;;  %v7821_v52 = vsub.f32 %v7739_v36, %v3775_v29 }
0x1084   : > { %v3833_v0 = vmul.f32 %v5761_v20, %v3824_v47  ;;  %vm3839_vm4 = vweird.f32 %v5761_v20 }
0x1085   : > { %5762 = vrsqrt.f32 %v3825_v2  ;;  %v3791_v62 = vmul.f32 %v7821_v52, %v7821_v52  ;;  %vm3840_vm15 = vmor %vm3838_vm14, %vm3839_vm4  ;;  %vm3848_vm1 = vweird.f32 %v3825_v2 }
0x1086   : > { %v3834_v8 = vmul.f32 %v5761_v20, %v3833_v0 }
0x1087   : > { %v3813_v7 = vsel %vm910_vm9, %v3791_v62, 0.0 }
0x1088   : > { %v3835_v55 = vmul.f32 0.5, %v3834_v8  ;;  %v3800_v28 = vpop.xlane.xlu2 %3799  ;;  %3814 = vadd.xlane.f32.xlu0 %v3813_v7 }
0x1089   : > { %v3818_v1 = vmul.f32 %v3800_v28, %v6256_v61 }
0x108a   : > { %v3836_v3 = vsub.f32 1.5, %v3835_v55 }
0x108b   : > { %v5763_v57 = vpop.eup %5762  ;;  %v3826_v39 = vadd.f32 1e-05, %v3818_v1 }
0x108c   : > { %v3837_v13 = vmul.f32 %v5761_v20, %v3836_v3  ;;  %v3843_v58 = vmul.f32 %v5763_v57, %v3825_v2  ;;  %vm3849_vm0 = vweird.f32 %v5763_v57 }
0x108d   : > { %5764 = vrsqrt.f32 %v3826_v39  ;;  %vm3850_vm2 = vmor %vm3848_vm1, %vm3849_vm0  ;;  %vm3858_vm5 = vweird.f32 %v3826_v39 }
0x108e   : > { %v3844_v53 = vmul.f32 %v5763_v57, %v3843_v58  ;;  %v3841_v37 = vsel %vm3840_vm15, %v5761_v20, %v3837_v13 }
0x108f   : > { %v3912_v54 = vmul.f32 %v3841_v37, %v7732_v60 }
0x1090   : > { %v3845_v42 = vmul.f32 0.5, %v3844_v53  ;;  %v3803_v15 = vpop.xlane.xlu1 %3802 }
0x1091   : > { %v3819_v51 = vmul.f32 %v3803_v15, %v6256_v61  ;;  %v3923_v32 = vmul.f32 %v7846_v33, %v3912_v54 }
0x1092   : > { %v3846_v59 = vsub.f32 1.5, %v3845_v42 }
0x1093   : > { %v5765_v41 = vpop.eup %5764  ;;  %v3827_v23 = vadd.f32 1e-05, %v3819_v51  ;;  %v3934_v29 = vadd.f32 %v7852_v49, %v3923_v32 }
0x1094   : > { %v3847_v18 = vmul.f32 %v5763_v57, %v3846_v59  ;;  %v3853_v47 = vmul.f32 %v5765_v41, %v3826_v39  ;;  %vm3859_vm3 = vweird.f32 %v5765_v41 }
0x1095   : > { %5766 = vrsqrt.f32 %v3827_v23  ;;  %vm3860_vm6 = vmor %vm3858_vm5, %vm3859_vm3  ;;  %vm3868_vm8 = vweird.f32 %v3827_v23 }
0x1096   : > { %v3851_v9 = vsel %vm3850_vm2, %v5763_v57, %v3847_v18  ;;  %v3854_v22 = vmul.f32 %v5765_v41, %v3853_v47 }
0x1097   : > { %v3913_v56 = vmul.f32 %v3851_v9, %v7742_v44 }
0x1098   : > { %v3855_v21 = vmul.f32 0.5, %v3854_v22 }
0x1099   : > { %v3924_v60 = vmul.f32 %v7846_v33, %v3913_v56 }
0x109a   : > { %v3856_v43 = vsub.f32 1.5, %v3855_v21 }
0x109b   : > { %v5767_v6 = vpop.eup %5766  ;;  %v3935_v16 = vadd.f32 %v7852_v49, %v3924_v60 }
0x109c   : > { %v3857_v11 = vmul.f32 %v5765_v41, %v3856_v43  ;;  %v3863_v14 = vmul.f32 %v5767_v6, %v3827_v23  ;;  %vm3869_vm7 = vweird.f32 %v5767_v6 }
0x109d   : > { %v3942_v20 = vpack.c.bf16 %v3935_v16, %v3934_v29  ;;  %vm3870_vm10 = vmor %vm3868_vm8, %vm3869_vm7 }
0x109e   : > { %v3864_v2 = vmul.f32 %v5767_v6, %v3863_v14  ;;  %v3861_v44 = vsel %vm3860_vm6, %v5765_v41, %v3857_v11 }
0x109f   : > { %5205 = vmatmul.msk.bf16.vlgmr.msrb.gmra.mxu3 %vm910_vm9, %v3942_v20  ;;  %5209 = vmatmul.msk.bf16.vlgmr.msrb.gmra.mxu1 %vm910_vm9, %v3942_v20  ;;  %v3914_v0 = vmul.f32 %v3861_v44, %v7751_v35 }
0x10a0   : > { %v3865_v4 = vmul.f32 0.5, %v3864_v2 }
0x10a1   : > { %v3925_v10 = vmul.f32 %v7846_v33, %v3914_v0 }
0x10a2   : > { %v3866_v12 = vsub.f32 1.5, %v3865_v4 }
0x10a3   : > { %v3936_v38 = vadd.f32 %v7852_v49, %v3925_v10 }
0x10a4   : > { %v3867_v63 = vmul.f32 %v5767_v6, %v3866_v12 }
0x10a6   : > { %v3871_v62 = vsel %vm3870_vm10, %v5767_v6, %v3867_v63 }
0x10a7   : > { %v3915_v8 = vmul.f32 %v3871_v62, %v7758_v45 }
0x10a9   : > { %v3926_v40 = vmul.f32 %v7846_v33, %v3915_v8 }
0x10ab   : > { %v3937_v7 = vadd.f32 %v7852_v49, %v3926_v40 }
0x10ad   : > { %v3943_v26 = vpack.c.bf16 %v3937_v7, %v3936_v38 }
0x10af   : > { %5206 = vmatmul.msk.bf16.gmra.mxu3 %vm910_vm9, %v3943_v26  ;;  %5210 = vmatmul.msk.bf16.gmra.mxu1 %vm910_vm9, %v3943_v26 }
0x10b4   : > { %v3806_v35 = vpop.xlane.xlu0 %3805 }
0x10b5   : > { %v3820_v27 = vmul.f32 %v3806_v35, %v6256_v61 }
0x10b7   : > { %v3828_v55 = vadd.f32 1e-05, %v3820_v27  ;;  %v5172_v27 = vld [vmem:[%s8253_s14 + $0x2] sm:$0x3] }
0x10b9   : > { %5768 = vrsqrt.f32 %v3828_v55  ;;  %vm3878_vm12 = vweird.f32 %v3828_v55 }
0x10bc   : > { %v3809_v28 = vpop.xlane.xlu2 %3808 }
0x10bd   : > { %v3821_v45 = vmul.f32 %v3809_v28, %v6256_v61 }
0x10bf   : > { %v5769_v46 = vpop.eup %5768  ;;  %v3829_v1 = vadd.f32 1e-05, %v3821_v45  ;;  %v7900_v45 = vperm.slane %v5172_v27, 0 }
0x10c0   : > { %v3873_v3 = vmul.f32 %v5769_v46, %v3828_v55  ;;  %vm3879_vm11 = vweird.f32 %v5769_v46 }
0x10c1   : > { %5770 = vrsqrt.f32 %v3829_v1  ;;  %vm3880_vm13 = vmor %vm3878_vm12, %vm3879_vm11  ;;  %vm3888_vm14 = vweird.f32 %v3829_v1 }
0x10c2   : > { %v3874_v57 = vmul.f32 %v5769_v46, %v3873_v3 }
0x10c4   : > { %v3875_v39 = vmul.f32 0.5, %v3874_v57 }
0x10c6   : > { %v3876_v13 = vsub.f32 1.5, %v3875_v39 }
0x10c7   : > { %v5771_v58 = vpop.eup %5770 }
0x10c8   : > { %v3877_v53 = vmul.f32 %v5769_v46, %v3876_v13  ;;  %v3883_v37 = vmul.f32 %v5771_v58, %v3829_v1  ;;  %vm3889_vm4 = vweird.f32 %v5771_v58 }
0x10c9   : > { %vm3890_vm15 = vmor %vm3888_vm14, %vm3889_vm4 }
0x10ca   : > { %v3884_v42 = vmul.f32 %v5771_v58, %v3883_v37  ;;  %v3881_v15 = vsel %vm3880_vm13, %v5769_v46, %v3877_v53  ;;  %v5392_v46 = vld [vmem:[%s8254_s15 + $0xf8] sm:$0xff]  ;;  %v5391_v53 = vld [vmem:[%s8254_s15 + $0xf0] sm:$0xff] }
0x10cb   : > { %v3916_v41 = vmul.f32 %v3881_v15, %v7765_v48  ;;  %v3812_v48 = vpop.xlane.xlu1 %3811  ;;  %4654 = vmatpush.bf16.msrb.mxu0 %v5392_v46  ;;  %v5384_v15 = vld [vmem:[%s8254_s15 + $0xb8] sm:$0xff] }
0x10cc   : > { %v3885_v51 = vmul.f32 0.5, %v3884_v42  ;;  %v3822_v21 = vmul.f32 %v3812_v48, %v6256_v61  ;;  %4625 = vmatpush.bf16.msrb.mxu2 %v5384_v15 }
0x10cd   : > { %v3927_v47 = vmul.f32 %v7846_v33, %v3916_v41  ;;  %v5390_v41 = vld [vmem:[%s8254_s15 + $0xe8] sm:$0xff] }
0x10ce   : > { %v3886_v59 = vsub.f32 1.5, %v3885_v51  ;;  %v3830_v60 = vadd.f32 1e-05, %v3822_v21 }
0x10cf   : > { %v3938_v22 = vadd.f32 %v7852_v49, %v3927_v47  ;;  %4655 = vmatpush.bf16.msrb.mxu0 %v5391_v53  ;;  %v5380_v53 = vld [vmem:[%s8254_s15 + $0x98] sm:$0xff] }
0x10d0   : > { %v3887_v54 = vmul.f32 %v5771_v58, %v3886_v59  ;;  %5772 = vrsqrt.f32 %v3830_v60  ;;  %vm3898_vm1 = vweird.f32 %v3830_v60 }
0x10d2   : > { %v3891_v23 = vsel %vm3890_vm15, %v5771_v58, %v3887_v54 }
0x10d3   : > { %v3917_v18 = vmul.f32 %v3891_v23, %v7772_v30  ;;  %4656 = vmatpush.bf16.msrb.mxu0 %v5390_v41 }
0x10d5   : > { %v3928_v9 = vmul.f32 %v7846_v33, %v3917_v18 }
0x10d6   : > { %v5773_v43 = vpop.eup %5772 }
0x10d7   : > { %v3939_v32 = vadd.f32 %v7852_v49, %v3928_v9  ;;  %v3893_v30 = vmul.f32 %v5773_v43, %v3830_v60  ;;  %vm3899_vm0 = vweird.f32 %v5773_v43  ;;  %v5383_v9 = vld [vmem:[%s8254_s15 + $0xb0] sm:$0xff]  ;;  %v5389_v60 = vld [vmem:[%s8254_s15 + $0xe0] sm:$0xff] }
0x10d8   : > { %vm3900_vm2 = vmor %vm3898_vm1, %vm3899_vm0  ;;  %4626 = vmatpush.bf16.msrb.mxu2 %v5383_v9  ;;  %4657 = vmatpush.bf16.msrb.mxu0 %v5389_v60 }
0x10d9   : > { %v3944_v56 = vpack.c.bf16 %v3939_v32, %v3938_v22  ;;  %v3894_v6 = vmul.f32 %v5773_v43, %v3893_v30 }
0x10db   : > { %5207 = vmatmul.msk.bf16.gmra.mxu3 %vm910_vm9, %v3944_v56  ;;  %5211 = vmatmul.msk.bf16.gmra.mxu1 %vm910_vm9, %v3944_v56  ;;  %v3895_v14 = vmul.f32 0.5, %v3894_v6 }
0x10dd   : > { %v3896_v20 = vsub.f32 1.5, %v3895_v14 }
0x10df   : > { %v3897_v44 = vmul.f32 %v5773_v43, %v3896_v20 }
0x10e1   : > { %v3901_v0 = vsel %vm3900_vm2, %v5773_v43, %v3897_v44  ;;  %v5388_v44 = vld [vmem:[%s8254_s15 + $0xd8] sm:$0xff] }
0x10e2   : > { %v3918_v8 = vmul.f32 %v3901_v0, %v7779_v50  ;;  %v7890_v50 = vperm.slane %v5172_v27, 1  ;;  %4658 = vmatpush.bf16.msrb.mxu0 %v5388_v44  ;;  %v5387_v27 = vld [vmem:[%s8254_s15 + $0xd0] sm:$0xff] }
0x10e4   : > { %v3929_v38 = vmul.f32 %v7846_v33, %v3918_v8 }
0x10e6   : > { %v3940_v26 = vadd.f32 %v7852_v49, %v3929_v38  ;;  %4659 = vmatpush.bf16.msrb.mxu0 %v5387_v27 }
0x10fb   : > { %v3815_v29 = vpop.xlane.xlu0 %3814 }
0x10fc   : > { %v3823_v16 = vmul.f32 %v3815_v29, %v6256_v61 }
0x10fe   : > { %v3831_v11 = vadd.f32 1e-05, %v3823_v16  ;;  %v5382_v16 = vld [vmem:[%s8254_s15 + $0xa8] sm:$0xff] }
0x10ff   : > { %4627 = vmatpush.bf16.msrb.mxu2 %v5382_v16 }
0x1100   : > { %5774 = vrsqrt.f32 %v3831_v11  ;;  %vm3908_vm5 = vweird.f32 %v3831_v11 }
0x1106   : > { %v5775_v2 = vpop.eup %5774 }
0x1107   : > { %v3903_v4 = vmul.f32 %v5775_v2, %v3831_v11  ;;  %vm3909_vm3 = vweird.f32 %v5775_v2 }
0x1108   : > { %vm3910_vm6 = vmor %vm3908_vm5, %vm3909_vm3 }
0x1109   : > { %v3904_v12 = vmul.f32 %v5775_v2, %v3903_v4 }
0x110b   : > { %v3905_v63 = vmul.f32 0.5, %v3904_v12 }
0x110d   : > { %v3906_v62 = vsub.f32 1.5, %v3905_v63 }
0x110f   : > { %v3907_v10 = vmul.f32 %v5775_v2, %v3906_v62 }
0x1111   : > { %v3911_v61 = vsel %vm3910_vm6, %v5775_v2, %v3907_v10  ;;  %v5381_v10 = vld [vmem:[%s8254_s15 + $0xa0] sm:$0xff] }
0x1112   : > { %v3919_v40 = vmul.f32 %v3911_v61, %v7821_v52  ;;  %4628 = vmatpush.bf16.msrb.mxu2 %v5381_v10 }
0x1114   : > { %v3930_v7 = vmul.f32 %v7846_v33, %v3919_v40 }
0x1116   : > { %v3941_v35 = vadd.f32 %v7852_v49, %v3930_v7  ;;  %4629 = vmatpush.bf16.msrb.mxu2 %v5380_v53 }
0x1118   : > { %v3945_v55 = vpack.c.bf16 %v3941_v35, %v3940_v26 }
0x111a   : > { %5208 = vmatmul.msk.bf16.gmra.mxu3 %vm910_vm9, %v3945_v55  ;;  %5212 = vmatmul.msk.bf16.gmra.mxu1 %vm910_vm9, %v3945_v55 }
0x111c   : > { %v4052_v52 = vpop.f32.mrf.mxu1 }
0x111d   : > { %v7895_v28 = vadd.f32 %v4052_v52, %v7890_v50 }
0x111f   : > { %v7898_v33 = vmul.f32 0.70710677, %v7895_v28  ;;  %v7992_v9 = vmul.f32 0.5, %v7895_v28  ;;  %v5379_v28 = vld [vmem:[%s8254_s15 + $0x90] sm:$0xff] }
0x1120   : > { %4630 = vmatpush.bf16.msrb.mxu2 %v5379_v28 }
0x1121   : > { %v4105_v49 = vand.u32 2147483647, %v7898_v33  ;;  %vm4409_vm7 = vcmp.lt.f32.partialorder %v7898_v33, 0.0 }
0x1122   : > { %v4023_v1 = vpop.f32.mrf.mxu3 }
0x1123   : > { %v4121_v3 = vmul.f32 0.3275911, %v4105_v49  ;;  %v7907_v57 = vadd.f32 %v4023_v1, %v7900_v45  ;;  %v4313_v22 = vmul.f32 %v4105_v49, %v4105_v49 }
0x1124   : > { %v4054_v39 = vpop.f32.mrf.mxu1 }
0x1125   : > { %v4137_v13 = vadd.f32 1.0, %v4121_v3  ;;  %v7910_v58 = vmul.f32 0.70710677, %v7907_v57  ;;  %v7916_v37 = vadd.f32 %v4054_v39, %v7890_v50  ;;  %v4329_v14 = vsub.f32 0.0, %v4313_v22 }
0x1127   : > { %5776 = vrcp.f32 %v4137_v13  ;;  %v4104_v42 = vand.u32 2147483647, %v7910_v58  ;;  %v7923_v51 = vmul.f32 0.70710677, %v7916_v37  ;;  %v4346_v40 = vmul.f32 1.442695, %v4329_v14 }
0x1128   : > { %vm4408_vm8 = vcmp.lt.f32.partialorder %v7910_v58, 0.0 }
0x1129   : > { %v4120_v59 = vmul.f32 0.3275911, %v4104_v42  ;;  %v4107_v54 = vand.u32 2147483647, %v7923_v51  ;;  %v4312_v63 = vmul.f32 %v4104_v42, %v4104_v42  ;;  %vm4411_vm10 = vcmp.lt.f32.partialorder %v7923_v51, 0.0 }
0x112a   : > { %v4025_v23 = vpop.f32.mrf.mxu3 }
0x112b   : > { %v4136_v18 = vadd.f32 1.0, %v4120_v59  ;;  %v7930_v47 = vadd.f32 %v4025_v23, %v7900_v45  ;;  %v4123_v32 = vmul.f32 0.3275911, %v4107_v54  ;;  %v4315_v26 = vmul.f32 %v4107_v54, %v4107_v54 }
0x112c   : > { %v4057_v56 = vpop.f32.mrf.mxu1  ;;  %v4328_v3 = vsub.f32 0.0, %v4312_v63 }
0x112d   : > { %v7935_v48 = vpop.eup %5776  ;;  %5778 = vrcp.f32 %v4136_v18  ;;  %v7938_v21 = vmul.f32 0.70710677, %v7930_v47  ;;  %v4139_v30 = vadd.f32 1.0, %v4123_v32  ;;  %v7945_v6 = vadd.f32 %v4057_v56, %v7890_v50  ;;  %v5386_v18 = vld [vmem:[%s8254_s15 + $0xc8] sm:$0xff] }
0x112e   : > { %v4169_v43 = vmul.f32 1.0614054, %v7935_v48  ;;  %v4331_v54 = vsub.f32 0.0, %v4315_v26  ;;  %4660 = vmatpush.bf16.msrb.mxu0 %v5386_v18  ;;  %v5385_v26 = vld [vmem:[%s8254_s15 + $0xc0] sm:$0xff] }
0x112f   : > { %v4106_v29 = vand.u32 2147483647, %v7938_v21  ;;  %5780 = vrcp.f32 %v4139_v30  ;;  %v7952_v2 = vmul.f32 0.70710677, %v7945_v6  ;;  %vm4410_vm11 = vcmp.lt.f32.partialorder %v7938_v21, 0.0 }
0x1130   : > { %v4185_v11 = vadd.f32 -1.4531521, %v4169_v43  ;;  %v4344_v43 = vmul.f32 1.442695, %v4328_v3  ;;  %v4350_v63 = vmul.f32 1.442695, %v4331_v54 }
0x1131   : > { %v4122_v20 = vmul.f32 0.3275911, %v4106_v29  ;;  %v4109_v8 = vand.u32 2147483647, %v7952_v2  ;;  %v4314_v16 = vmul.f32 %v4106_v29, %v4106_v29  ;;  %vm4413_vm12 = vcmp.lt.f32.partialorder %v7952_v2, 0.0 }
0x1132   : > { %v4201_v4 = vmul.f32 %v7935_v48, %v4185_v11  ;;  %v4028_v12 = vpop.f32.mrf.mxu3  ;;  %4661 = vmatpush.bf16.msrb.mxu0 %v5385_v26 }
0x1133   : > { %v7958_v0 = vpop.eup %5778  ;;  %v4138_v62 = vadd.f32 1.0, %v4122_v20  ;;  %v7966_v7 = vadd.f32 %v4028_v12, %v7900_v45  ;;  %v4125_v35 = vmul.f32 0.3275911, %v4109_v8 }
0x1134   : > { %v4217_v61 = vadd.f32 1.4214138, %v4201_v4  ;;  %v4168_v38 = vmul.f32 1.0614054, %v7958_v0  ;;  %v4059_v1 = vpop.f32.mrf.mxu1 }
0x1135   : > { %5782 = vrcp.f32 %v4138_v62  ;;  %v7971_v55 = vpop.eup %5780  ;;  %v7975_v46 = vmul.f32 0.70710677, %v7966_v7  ;;  %v4141_v13 = vadd.f32 1.0, %v4125_v35  ;;  %v7986_v23 = vadd.f32 %v4059_v1, %v7890_v50  ;;  %v5378_v1 = vld [vmem:[%s8254_s15 + $0x88] sm:$0xff] }
0x1136   : > { %v4233_v52 = vmul.f32 %v7935_v48, %v4217_v61  ;;  %v4184_v49 = vadd.f32 -1.4531521, %v4168_v38  ;;  %v4171_v39 = vmul.f32 1.0614054, %v7971_v55  ;;  %5784 = vpow2.f32 %v4346_v40  ;;  %4631 = vmatpush.bf16.msrb.mxu2 %v5378_v1 }
0x1137   : > { %v7983_v59 = vand.u32 2147483647, %v7975_v46  ;;  %5786 = vrcp.f32 %v4141_v13  ;;  %v8000_v11 = vmul.f32 0.70710677, %v7986_v23  ;;  %v4317_v62 = vmul.f32 %v4109_v8, %v4109_v8 }
0x1138   : > { %v4249_v42 = vadd.f32 -0.28449672, %v4233_v52  ;;  %v4200_v15 = vmul.f32 %v7958_v0, %v4184_v49  ;;  %v4187_v41 = vadd.f32 -1.4531521, %v4171_v39  ;;  %v4330_v52 = vsub.f32 0.0, %v4314_v16 }
0x1139   : > { %v4124_v56 = vmul.f32 0.3275911, %v7983_v59  ;;  %v4111_v10 = vand.u32 2147483647, %v8000_v11  ;;  %vm4415_vm13 = vcmp.lt.f32.partialorder %v8000_v11, 0.0  ;;  %vm4412_vm4 = vcmp.lt.f32.partialorder %v7975_v46, 0.0 }
0x113a   : > { %v4265_v22 = vmul.f32 %v7935_v48, %v4249_v42  ;;  %v4216_v32 = vadd.f32 1.4214138, %v4200_v15  ;;  %v4203_v30 = vmul.f32 %v7971_v55, %v4187_v41  ;;  %v4030_v49 = vpop.f32.mrf.mxu3  ;;  %v4333_v42 = vsub.f32 0.0, %v4317_v62 }
0x113b   : > { %v7996_v60 = vpop.eup %5782  ;;  %v4140_v4 = vadd.f32 1.0, %v4124_v56  ;;  %v4127_v8 = vmul.f32 0.3275911, %v4111_v10  ;;  %v4348_v56 = vmul.f32 1.442695, %v4330_v52 }
0x113c   : > { %v4281_v14 = vadd.f32 0.2548296, %v4265_v22  ;;  %v4232_v20 = vmul.f32 %v7958_v0, %v4216_v32  ;;  %v4170_v44 = vmul.f32 1.0614054, %v7996_v60  ;;  %v4219_v12 = vadd.f32 1.4214138, %v4203_v30  ;;  %v5785_v29 = vpop.eup %5784 }
0x113d   : > { %5788 = vrcp.f32 %v4140_v4  ;;  %v8012_v35 = vpop.eup %5786  ;;  %v4143_v15 = vadd.f32 1.0, %v4127_v8  ;;  %v8022_v22 = vadd.f32 %v4030_v49, %v7900_v45  ;;  %v5377_v30 = vld [vmem:[%s8254_s15 + $0x80] sm:$0xff]  ;;  %v4319_v49 = vmul.f32 %v4111_v10, %v4111_v10 }
0x113e   : > { %v4297_v61 = vmul.f32 %v7935_v48, %v4281_v14  ;;  %v4248_v40 = vadd.f32 -0.28449672, %v4232_v20  ;;  %v4186_v38 = vadd.f32 -1.4531521, %v4170_v44  ;;  %5790 = vpow2.f32 %v4344_v43  ;;  %4632 = vmatpush.bf16.msrb.mxu2 %v5377_v30 }
0x113f   : > { %v4235_v27 = vmul.f32 %v7971_v55, %v4219_v12  ;;  %v4173_v13 = vmul.f32 1.0614054, %v8012_v35  ;;  %5792 = vpow2.f32 %v4350_v63  ;;  %v4075_v14 = vmul.f32 0.5, %v7916_v37 }
0x1140   : > { %v4377_v48 = vmul.f32 %v5785_v29, %v4297_v61  ;;  %v4264_v3 = vmul.f32 %v7958_v0, %v4248_v40  ;;  %v4202_v39 = vmul.f32 %v7996_v60, %v4186_v38  ;;  %5794 = vrcp.f32 %v4143_v15 }
0x1141   : > { %v4251_v53 = vadd.f32 -0.28449672, %v4235_v27  ;;  %v4189_v43 = vadd.f32 -1.4531521, %v4173_v13  ;;  %v4354_v63 = vmul.f32 1.442695, %v4333_v42  ;;  %5796 = vpow2.f32 %v4348_v56 }
0x1142   : > { %v4393_v41 = vsub.f32 1.0, %v4377_v48  ;;  %v4280_v54 = vadd.f32 0.2548296, %v4264_v3  ;;  %v4218_v18 = vadd.f32 1.4214138, %v4202_v39  ;;  %v4335_v30 = vsub.f32 0.0, %v4319_v49 }
0x1143   : > { %v4267_v32 = vmul.f32 %v7971_v55, %v4251_v53  ;;  %v8028_v16 = vpop.eup %5788  ;;  %v4205_v12 = vmul.f32 %v8012_v35, %v4189_v43  ;;  %v4316_v53 = vmul.f32 %v7983_v59, %v7983_v59  ;;  %5798 = vpow2.f32 %v4354_v63 }
0x1144   : > { %v4296_v28 = vmul.f32 %v7958_v0, %v4280_v54  ;;  %v4234_v20 = vmul.f32 %v7996_v60, %v4218_v18  ;;  %v5791_v44 = vpop.eup %5790  ;;  %v4172_v62 = vmul.f32 1.0614054, %v8028_v16  ;;  %v4425_v29 = vsub.f32 0.0, %v4393_v41 }
0x1145   : > { %v4283_v4 = vadd.f32 0.2548296, %v4267_v32  ;;  %v8039_v0 = vmul.f32 0.70710677, %v8022_v22  ;;  %v5793_v37 = vpop.eup %5792  ;;  %v4221_v26 = vadd.f32 1.4214138, %v4205_v12 }
0x1146   : > { %v4376_v61 = vmul.f32 %v5791_v44, %v4296_v28  ;;  %v4250_v40 = vadd.f32 -0.28449672, %v4234_v20  ;;  %v4188_v27 = vadd.f32 -1.4531521, %v4172_v62  ;;  %v8044_v48 = vpop.eup %5794  ;;  %v4332_v12 = vsub.f32 0.0, %v4316_v53 }
0x1147   : > { %v4299_v38 = vmul.f32 %v7971_v55, %v4283_v4  ;;  %v4110_v1 = vand.u32 2147483647, %v8039_v0  ;;  %v4237_v39 = vmul.f32 %v8012_v35, %v4221_v26  ;;  %v4441_v55 = vsel %vm4409_vm7, %v4425_v29, %v4393_v41  ;;  %v5797_v20 = vpop.eup %5796 }
0x1148   : > { %v4392_v52 = vsub.f32 1.0, %v4376_v61  ;;  %v4266_v8 = vmul.f32 %v7996_v60, %v4250_v40  ;;  %v4204_v13 = vmul.f32 %v8028_v16, %v4188_v27  ;;  %v4175_v15 = vmul.f32 1.0614054, %v8044_v48 }
0x1149   : > { %v4379_v3 = vmul.f32 %v5793_v37, %v4299_v38  ;;  %v4253_v18 = vadd.f32 -0.28449672, %v4237_v39  ;;  %v4126_v28 = vmul.f32 0.3275911, %v4110_v1  ;;  %v4457_v44 = vadd.f32 1.0, %v4441_v55  ;;  %v5799_v37 = vpop.eup %5798 }
0x114a   : > { %v4282_v42 = vadd.f32 0.2548296, %v4266_v8  ;;  %v4424_v10 = vsub.f32 0.0, %v4392_v52  ;;  %v4220_v32 = vadd.f32 1.4214138, %v4204_v13  ;;  %vm4414_vm14 = vcmp.lt.f32.partialorder %v8039_v0, 0.0 }
0x114b   : > { %v4395_v54 = vsub.f32 1.0, %v4379_v3  ;;  %v4191_v43 = vadd.f32 -1.4531521, %v4175_v15  ;;  %v4269_v59 = vmul.f32 %v8012_v35, %v4253_v18  ;;  %v4142_v62 = vadd.f32 1.0, %v4126_v28 }
0x114c   : > { %v4298_v56 = vmul.f32 %v7996_v60, %v4282_v42  ;;  %v4236_v33 = vmul.f32 %v8028_v16, %v4220_v32  ;;  %v4440_v29 = vsel %vm4408_vm8, %v4424_v10, %v4392_v52  ;;  %v4473_v8 = vmul.f32 %v4457_v44, %v7992_v9 }
0x114d   : > { %v4427_v4 = vsub.f32 0.0, %v4395_v54  ;;  %v4207_v63 = vmul.f32 %v8044_v48, %v4191_v43  ;;  %v4285_v61 = vadd.f32 0.2548296, %v4269_v59  ;;  %5800 = vrcp.f32 %v4142_v62 }
0x114e   : > { %v4378_v41 = vmul.f32 %v5797_v20, %v4298_v56  ;;  %v4252_v40 = vadd.f32 -0.28449672, %v4236_v33  ;;  %v4358_v3 = vmul.f32 1.442695, %v4335_v30  ;;  %v4456_v51 = vadd.f32 1.0, %v4440_v29 }
0x114f   : > { %v4443_v60 = vsel %vm4411_vm10, %v4427_v4, %v4395_v54  ;;  %v4223_v27 = vadd.f32 1.4214138, %v4207_v63  ;;  %v4301_v49 = vmul.f32 %v8012_v35, %v4285_v61  ;;  %v4352_v55 = vmul.f32 1.442695, %v4332_v12 }
0x1150   : > { %v4459_v38 = vadd.f32 1.0, %v4443_v60  ;;  %v4394_v26 = vsub.f32 1.0, %v4378_v41  ;;  %v4268_v58 = vmul.f32 %v8028_v16, %v4252_v40  ;;  %v4072_v42 = vmul.f32 0.5, %v7907_v57 }
0x1151   : > { %v4239_v52 = vmul.f32 %v8044_v48, %v4223_v27  ;;  %v4381_v53 = vmul.f32 %v5799_v37, %v4301_v49  ;;  %v4074_v9 = vmul.f32 0.5, %v7930_v47  ;;  %5802 = vpow2.f32 %v4358_v3 }
0x1152   : > { %v4475_v39 = vmul.f32 %v4459_v38, %v4075_v14  ;;  %v4426_v13 = vsub.f32 0.0, %v4394_v26  ;;  %v4318_v14 = vmul.f32 %v4110_v1, %v4110_v1  ;;  %v4284_v56 = vadd.f32 0.2548296, %v4268_v58 }
0x1153   : > { %v4255_v54 = vadd.f32 -0.28449672, %v4239_v52  ;;  %v5801_v18 = vpop.eup %5800  ;;  %v4397_v32 = vsub.f32 1.0, %v4381_v53  ;;  %v4472_v30 = vmul.f32 %v4456_v51, %v4072_v42  ;;  %5804 = vpow2.f32 %v4352_v55 }
0x1154   : > { %v4489_v15 = vpack.c.bf16 %v4475_v39, %v4473_v8  ;;  %v4442_v10 = vsel %vm4410_vm11, %v4426_v13, %v4394_v26  ;;  %v4174_v28 = vmul.f32 1.0614054, %v5801_v18  ;;  %v4334_v59 = vsub.f32 0.0, %v4318_v14 }
0x1155   : > { %v4458_v35 = vadd.f32 1.0, %v4442_v10  ;;  %v4271_v43 = vmul.f32 %v8044_v48, %v4255_v54  ;;  %v4429_v33 = vsub.f32 0.0, %v4397_v32  ;;  %v4300_v47 = vmul.f32 %v8028_v16, %v4284_v56 }
0x1156   : > { %4662 = vmatmul.bf16.vlgmr.msrb.gmra.mxu0 %v4489_v15  ;;  %v4190_v4 = vadd.f32 -1.4531521, %v4174_v28  ;;  %v4356_v40 = vmul.f32 1.442695, %v4334_v59  ;;  %v4077_v49 = vmul.f32 0.5, %v7945_v6  ;;  %v4079_v15 = vmul.f32 0.5, %v7986_v23 }
0x1157   : > { %v4474_v21 = vmul.f32 %v4458_v35, %v4074_v9  ;;  %v4287_v20 = vadd.f32 0.2548296, %v4271_v43  ;;  %v5803_v12 = vpop.eup %5802  ;;  %v4445_v37 = vsel %vm4413_vm12, %v4429_v33, %v4397_v32  ;;  %vm618_vm8 = vcmask 253952  }
0x1158   : > { %v4062_v57 = vpop.f32.mrf.mxu1  ;;  %v4206_v63 = vmul.f32 %v5801_v18, %v4190_v4  ;;  %v4461_v2 = vadd.f32 1.0, %v4445_v37  ;;  %5806 = vpow2.f32 %v4356_v40 }
0x1159   : > { %v4488_v44 = vpack.c.bf16 %v4474_v21, %v4472_v30  ;;  %v4303_v1 = vmul.f32 %v8044_v48, %v4287_v20  ;;  %v8072_v41 = vadd.f32 %v4062_v57, %v7890_v50  ;;  %v5805_v60 = vpop.eup %5804 }
0x115a   : > { %v4222_v61 = vadd.f32 1.4214138, %v4206_v63  ;;  %v4380_v38 = vmul.f32 %v5805_v60, %v4300_v47  ;;  %v4477_v9 = vmul.f32 %v4461_v2, %v4077_v49  ;;  %v4078_v49 = vmul.f32 0.5, %v8022_v22 }
0x115b   : > { %4633 = vmatmul.bf16.vlgmr.msrb.gmra.mxu2 %v4488_v44  ;;  %v4383_v62 = vmul.f32 %v5803_v12, %v4303_v1  ;;  %v8075_v29 = vmul.f32 0.70710677, %v8072_v41 }
0x115c   : > { %v4238_v27 = vmul.f32 %v5801_v18, %v4222_v61  ;;  %v4396_v53 = vsub.f32 1.0, %v4380_v38 }
0x115d   : > { %v4399_v16 = vsub.f32 1.0, %v4383_v62  ;;  %v4113_v48 = vand.u32 2147483647, %v8075_v29  ;;  %vm4417_vm15 = vcmp.lt.f32.partialorder %v8075_v29, 0.0 }
0x115e   : > { %v4033_v26 = vpop.f32.mrf.mxu3  ;;  %v4254_v58 = vadd.f32 -0.28449672, %v4238_v27  ;;  %v4428_v56 = vsub.f32 0.0, %v4396_v53  ;;  %v5807_v23 = vpop.eup %5806 }
0x115f   : > { %v8080_v8 = vadd.f32 %v4033_v26, %v7900_v45  ;;  %v4431_v3 = vsub.f32 0.0, %v4399_v16  ;;  %v4129_v39 = vmul.f32 0.3275911, %v4113_v48  ;;  %v4321_v59 = vmul.f32 %v4113_v48, %v4113_v48 }
0x1160   : > { %v4064_v13 = vpop.f32.mrf.mxu1  ;;  %v4270_v10 = vmul.f32 %v5801_v18, %v4254_v58  ;;  %v4444_v47 = vsel %vm4412_vm4, %v4428_v56, %v4396_v53 }
0x1161   : > { %v8085_v52 = vmul.f32 0.70710677, %v8080_v8  ;;  %v8088_v51 = vadd.f32 %v4064_v13, %v7890_v50  ;;  %v4447_v55 = vsel %vm4415_vm13, %v4431_v3, %v4399_v16  ;;  %v4145_v42 = vadd.f32 1.0, %v4129_v39 }
0x1162   : > { %v4463_v6 = vadd.f32 1.0, %v4447_v55  ;;  %v4286_v14 = vadd.f32 0.2548296, %v4270_v10  ;;  %v4460_v60 = vadd.f32 1.0, %v4444_v47  ;;  %v4337_v37 = vsub.f32 0.0, %v4321_v59 }
0x1163   : > { %v4112_v11 = vand.u32 2147483647, %v8085_v52  ;;  %5808 = vrcp.f32 %v4145_v42  ;;  %v8093_v54 = vmul.f32 0.70710677, %v8088_v51  ;;  %v4076_v16 = vmul.f32 0.5, %v7966_v7 }
0x1164   : > { %v4479_v35 = vmul.f32 %v4463_v6, %v4079_v15  ;;  %v4302_v21 = vmul.f32 %v5801_v18, %v4286_v14  ;;  %v4362_v53 = vmul.f32 1.442695, %v4337_v37  ;;  %vm4416_vm1 = vcmp.lt.f32.partialorder %v8085_v52, 0.0 }
0x1165   : > { %v4128_v32 = vmul.f32 0.3275911, %v4112_v11  ;;  %v4115_v43 = vand.u32 2147483647, %v8093_v54  ;;  %v4320_v27 = vmul.f32 %v4112_v11, %v4112_v11  ;;  %v4476_v2 = vmul.f32 %v4460_v60, %v4076_v16 }
0x1166   : > { %v4035_v30 = vpop.f32.mrf.mxu3  ;;  %v4491_v20 = vpack.c.bf16 %v4479_v35, %v4477_v9  ;;  %v4382_v4 = vmul.f32 %v5807_v23, %v4302_v21  ;;  %vm4419_vm0 = vcmp.lt.f32.partialorder %v8093_v54, 0.0  ;;  %v4080_v54 = vmul.f32 0.5, %v8080_v8 }
0x1167   : > { %v4144_v28 = vadd.f32 1.0, %v4128_v32  ;;  %v4131_v57 = vmul.f32 0.3275911, %v4115_v43  ;;  %v8097_v44 = vadd.f32 %v4035_v30, %v7900_v45  ;;  %v4323_v6 = vmul.f32 %v4115_v43, %v4115_v43 }
0x1168   : > { %4667 = vmatmul.bf16.gmra.mxu0 %v4491_v20  ;;  %v4398_v18 = vsub.f32 1.0, %v4382_v4  ;;  %v4336_v10 = vsub.f32 0.0, %v4320_v27 }
0x1169   : > { %5810 = vrcp.f32 %v4144_v28  ;;  %v5809_v33 = vpop.eup %5808  ;;  %v4147_v1 = vadd.f32 1.0, %v4131_v57  ;;  %v8101_v12 = vmul.f32 0.70710677, %v8097_v44  ;;  %v4339_v32 = vsub.f32 0.0, %v4323_v6 }
0x116a   : > { %v4177_v63 = vmul.f32 1.0614054, %v5809_v33  ;;  %v4430_v61 = vsub.f32 0.0, %v4398_v18  ;;  %v4360_v30 = vmul.f32 1.442695, %v4336_v10 }
0x116b   : > { %5812 = vrcp.f32 %v4147_v1  ;;  %v4114_v62 = vand.u32 2147483647, %v8101_v12  ;;  %v4366_v47 = vmul.f32 1.442695, %v4339_v32  ;;  %vm4418_vm2 = vcmp.lt.f32.partialorder %v8101_v12, 0.0 }
0x116c   : > { %v4193_v40 = vadd.f32 -1.4531521, %v4177_v63  ;;  %v4446_v48 = vsel %vm4414_vm14, %v4430_v61, %v4398_v18 }
0x116d   : > { %v4130_v46 = vmul.f32 0.3275911, %v4114_v62  ;;  %v4462_v3 = vadd.f32 1.0, %v4446_v48  ;;  %v4322_v23 = vmul.f32 %v4114_v62, %v4114_v62 }
0x116e   : > { %v4209_v26 = vmul.f32 %v5809_v33, %v4193_v40 }
0x116f   : > { %v5811_v38 = vpop.eup %5810  ;;  %v4146_v13 = vadd.f32 1.0, %v4130_v46  ;;  %v4478_v42 = vmul.f32 %v4462_v3, %v4078_v49  ;;  %v4338_v40 = vsub.f32 0.0, %v4322_v23 }
0x1170   : > { %v4176_v39 = vmul.f32 1.0614054, %v5811_v38  ;;  %v4225_v58 = vadd.f32 1.4214138, %v4209_v26 }
0x1171   : > { %v5813_v55 = vpop.eup %5812  ;;  %5814 = vrcp.f32 %v4146_v13  ;;  %v4490_v35 = vpack.c.bf16 %v4478_v42, %v4476_v2  ;;  %v4364_v3 = vmul.f32 1.442695, %v4338_v40 }
0x1172   : > { %v4192_v15 = vadd.f32 -1.4531521, %v4176_v39  ;;  %v4241_v0 = vmul.f32 %v5809_v33, %v4225_v58  ;;  %v4179_v9 = vmul.f32 1.0614054, %v5813_v55  ;;  %5816 = vpow2.f32 %v4362_v53 }
0x1173   : > { %4638 = vmatmul.bf16.gmra.mxu2 %v4490_v35  ;;  %5818 = vpow2.f32 %v4360_v30  ;;  %v4081_v30 = vmul.f32 0.5, %v8072_v41 }
0x1174   : > { %v4208_v7 = vmul.f32 %v5811_v38, %v4192_v15  ;;  %v4257_v14 = vadd.f32 -0.28449672, %v4241_v0  ;;  %v4195_v11 = vadd.f32 -1.4531521, %v4179_v9  ;;  %5820 = vpow2.f32 %v4366_v47 }
0x1175   : > { %5822 = vpow2.f32 %v4364_v3 }
0x1176   : > { %v4224_v22 = vadd.f32 1.4214138, %v4208_v7  ;;  %v4273_v56 = vmul.f32 %v5809_v33, %v4257_v14  ;;  %v4211_v21 = vmul.f32 %v5813_v55, %v4195_v11 }
0x1177   : > { %v5815_v28 = vpop.eup %5814 }
0x1178   : > { %v4240_v20 = vmul.f32 %v5811_v38, %v4224_v22  ;;  %v4289_v57 = vadd.f32 0.2548296, %v4273_v56  ;;  %v4227_v43 = vadd.f32 1.4214138, %v4211_v21  ;;  %v4178_v4 = vmul.f32 1.0614054, %v5815_v28  ;;  %v5817_v60 = vpop.eup %5816 }
0x1179   : > { %v5819_v39 = vpop.eup %5818  ;;  %v4083_v21 = vmul.f32 0.5, %v8088_v51 }
0x117a   : > { %v4256_v59 = vadd.f32 -0.28449672, %v4240_v20  ;;  %v4305_v1 = vmul.f32 %v5809_v33, %v4289_v57  ;;  %v4243_v18 = vmul.f32 %v5813_v55, %v4227_v43  ;;  %v4194_v63 = vadd.f32 -1.4531521, %v4178_v4  ;;  %v5821_v15 = vpop.eup %5820 }
0x117b   : > { %v5823_v22 = vpop.eup %5822 }
0x117c   : > { %v4272_v61 = vmul.f32 %v5811_v38, %v4256_v59  ;;  %v4385_v37 = vmul.f32 %v5817_v60, %v4305_v1  ;;  %v4259_v46 = vadd.f32 -0.28449672, %v4243_v18  ;;  %v4210_v16 = vmul.f32 %v5815_v28, %v4194_v63 }
0x117d   : > { %v4082_v1 = vmul.f32 0.5, %v8097_v44 }
0x117e   : > { %v4288_v48 = vadd.f32 0.2548296, %v4272_v61  ;;  %v4401_v26 = vsub.f32 1.0, %v4385_v37  ;;  %v4275_v27 = vmul.f32 %v5813_v55, %v4259_v46  ;;  %v4226_v62 = vadd.f32 1.4214138, %v4210_v16 }
0x1180   : > { %v4304_v49 = vmul.f32 %v5811_v38, %v4288_v48  ;;  %v4291_v13 = vadd.f32 0.2548296, %v4275_v27  ;;  %v4242_v2 = vmul.f32 %v5815_v28, %v4226_v62  ;;  %v4433_v58 = vsub.f32 0.0, %v4401_v26 }
0x1182   : > { %v4384_v33 = vmul.f32 %v5819_v39, %v4304_v49  ;;  %v4307_v53 = vmul.f32 %v5813_v55, %v4291_v13  ;;  %v4258_v42 = vadd.f32 -0.28449672, %v4242_v2  ;;  %v4449_v9 = vsel %vm4417_vm15, %v4433_v58, %v4401_v26 }
0x1183   : > { %v4465_v32 = vadd.f32 1.0, %v4449_v9 }
0x1184   : > { %v4400_v6 = vsub.f32 1.0, %v4384_v33  ;;  %v4387_v0 = vmul.f32 %v5821_v15, %v4307_v53  ;;  %v4274_v10 = vmul.f32 %v5815_v28, %v4258_v42 }
0x1185   : > { %v4481_v57 = vmul.f32 %v4465_v32, %v4081_v30 }
0x1186   : > { %v4403_v7 = vsub.f32 1.0, %v4387_v0  ;;  %v4290_v35 = vadd.f32 0.2548296, %v4274_v10  ;;  %v4432_v14 = vsub.f32 0.0, %v4400_v6 }
0x1188   : > { %v4435_v38 = vsub.f32 0.0, %v4403_v7  ;;  %v4306_v11 = vmul.f32 %v5815_v28, %v4290_v35  ;;  %v4448_v29 = vsel %vm4416_vm1, %v4432_v14, %v4400_v6 }
0x1189   : > { %v4464_v59 = vadd.f32 1.0, %v4448_v29 }
0x118a   : > { %v4451_v56 = vsel %vm4419_vm0, %v4435_v38, %v4403_v7  ;;  %v4386_v55 = vmul.f32 %v5823_v22, %v4306_v11 }
0x118b   : > { %v4467_v20 = vadd.f32 1.0, %v4451_v56  ;;  %v4480_v52 = vmul.f32 %v4464_v59, %v4080_v54 }
0x118c   : > { %v4402_v23 = vsub.f32 1.0, %v4386_v55 }
0x118d   : > { %v4483_v43 = vmul.f32 %v4467_v20, %v4083_v21 }
0x118e   : > { %v4434_v4 = vsub.f32 0.0, %v4402_v23 }
0x118f   : > { %v4493_v28 = vpack.c.bf16 %v4483_v43, %v4481_v57 }
0x1190   : > { %v4450_v47 = vsel %vm4418_vm2, %v4434_v4, %v4402_v23 }
0x1191   : > { %v4466_v41 = vadd.f32 1.0, %v4450_v47  ;;  %4672 = vmatmul.bf16.gmra.mxu0 %v4493_v28 }
0x1193   : > { %v4482_v18 = vmul.f32 %v4466_v41, %v4082_v1 }
0x1195   : > { %v4492_v51 = vpack.c.bf16 %v4482_v18, %v4480_v52 }
0x1197   : > { %v4067_v63 = vpop.f32.mrf.mxu1  ;;  %4643 = vmatmul.bf16.gmra.mxu2 %v4492_v51 }
0x1198   : > { %v8116_v60 = vadd.f32 %v4067_v63, %v7890_v50 }
0x119a   : > { %v8119_v61 = vmul.f32 0.70710677, %v8116_v60 }
0x119c   : > { %v4117_v12 = vand.u32 2147483647, %v8119_v61  ;;  %vm4421_vm3 = vcmp.lt.f32.partialorder %v8119_v61, 0.0 }
0x119d   : > { %v4038_v40 = vpop.f32.mrf.mxu3 }
0x119e   : > { %v4133_v37 = vmul.f32 0.3275911, %v4117_v12  ;;  %v8123_v8 = vadd.f32 %v4038_v40, %v7900_v45  ;;  %v4325_v58 = vmul.f32 %v4117_v12, %v4117_v12 }
0x119f   : > { %v4069_v44 = vpop.f32.mrf.mxu1 }
0x11a0   : > { %v4149_v46 = vadd.f32 1.0, %v4133_v37  ;;  %v8126_v16 = vmul.f32 0.70710677, %v8123_v8  ;;  %v8129_v48 = vadd.f32 %v4069_v44, %v7890_v50  ;;  %v4341_v0 = vsub.f32 0.0, %v4325_v58 }
0x11a2   : > { %5824 = vrcp.f32 %v4149_v46  ;;  %v4116_v26 = vand.u32 2147483647, %v8126_v16  ;;  %v8133_v27 = vmul.f32 0.70710677, %v8129_v48  ;;  %v4370_v11 = vmul.f32 1.442695, %v4341_v0 }
0x11a3   : > { %vm4420_vm6 = vcmp.lt.f32.partialorder %v8126_v16, 0.0 }
0x11a4   : > { %v4132_v62 = vmul.f32 0.3275911, %v4116_v26  ;;  %v4119_v49 = vand.u32 2147483647, %v8133_v27  ;;  %v4324_v35 = vmul.f32 %v4116_v26, %v4116_v26  ;;  %vm4423_vm5 = vcmp.lt.f32.partialorder %v8133_v27, 0.0 }
0x11a5   : > { %v4040_v3 = vpop.f32.mrf.mxu3  ;;  %v4084_v27 = vmul.f32 0.5, %v8123_v8  ;;  %v5847_v8 = vld [vmem:[%s6097_s21 + $0x38] sm:$0xff] }
0x11a6   : > { %v4148_v39 = vadd.f32 1.0, %v4132_v62  ;;  %v8137_v13 = vadd.f32 %v4040_v3, %v7900_v45  ;;  %v4135_v2 = vmul.f32 0.3275911, %v4119_v49  ;;  %v4327_v55 = vmul.f32 %v4119_v49, %v4119_v49 }
0x11a7   : > { %v4340_v30 = vsub.f32 0.0, %v4324_v35 }
0x11a8   : > { %v5825_v33 = vpop.eup %5824  ;;  %5826 = vrcp.f32 %v4148_v39  ;;  %v8140_v50 = vmul.f32 0.70710677, %v8137_v13  ;;  %v4151_v42 = vadd.f32 1.0, %v4135_v2  ;;  %v4343_v4 = vsub.f32 0.0, %v4327_v55 }
0x11a9   : > { %v4181_v53 = vmul.f32 1.0614054, %v5825_v33  ;;  %v4368_v28 = vmul.f32 1.442695, %v4340_v30 }
0x11aa   : > { %v4118_v15 = vand.u32 2147483647, %v8140_v50  ;;  %5828 = vrcp.f32 %v4151_v42  ;;  %v4374_v12 = vmul.f32 1.442695, %v4343_v4  ;;  %vm4422_vm7 = vcmp.lt.f32.partialorder %v8140_v50, 0.0  ;;  %v5843_v50 = vld [vmem:[%s6097_s21 + $0x8] sm:$0xff] }
0x11ab   : > { %v4197_v6 = vadd.f32 -1.4531521, %v4181_v53 }
0x11ac   : > { %v4134_v10 = vmul.f32 0.3275911, %v4118_v15  ;;  %v4326_v54 = vmul.f32 %v4118_v15, %v4118_v15 }
0x11ad   : > { %v4213_v9 = vmul.f32 %v5825_v33, %v4197_v6 }
0x11ae   : > { %v5827_v7 = vpop.eup %5826  ;;  %v4150_v45 = vadd.f32 1.0, %v4134_v10  ;;  %v4342_v46 = vsub.f32 0.0, %v4326_v54 }
0x11af   : > { %v4229_v14 = vadd.f32 1.4214138, %v4213_v9  ;;  %v4180_v38 = vmul.f32 1.0614054, %v5827_v7 }
0x11b0   : > { %5830 = vrcp.f32 %v4150_v45  ;;  %v5829_v22 = vpop.eup %5828  ;;  %v4372_v42 = vmul.f32 1.442695, %v4342_v46 }
0x11b1   : > { %v4245_v32 = vmul.f32 %v5825_v33, %v4229_v14  ;;  %v4196_v56 = vadd.f32 -1.4531521, %v4180_v38  ;;  %v4183_v21 = vmul.f32 1.0614054, %v5829_v22  ;;  %5832 = vpow2.f32 %v4370_v11 }
0x11b2   : > { %5834 = vpow2.f32 %v4368_v28  ;;  %v4087_v28 = vmul.f32 0.5, %v8129_v48  ;;  %v4086_v48 = vmul.f32 0.5, %v8137_v13 }
0x11b3   : > { %v4261_v20 = vadd.f32 -0.28449672, %v4245_v32  ;;  %v4212_v29 = vmul.f32 %v5827_v7, %v4196_v56  ;;  %v4199_v23 = vadd.f32 -1.4531521, %v4183_v21  ;;  %5836 = vpow2.f32 %v4374_v12  ;;  %v5840_v12 = vld [vmem:[%s6097_s21 + $0x20] sm:$0xff] }
0x11b4   : > { %5838 = vpow2.f32 %v4372_v42 }
0x11b5   : > { %v4277_v57 = vmul.f32 %v5825_v33, %v4261_v20  ;;  %v4228_v43 = vadd.f32 1.4214138, %v4212_v29  ;;  %v4215_v47 = vmul.f32 %v5829_v22, %v4199_v23 }
0x11b6   : > { %v5831_v59 = vpop.eup %5830 }
0x11b7   : > { %v4293_v1 = vadd.f32 0.2548296, %v4277_v57  ;;  %v4244_v41 = vmul.f32 %v5827_v7, %v4228_v43  ;;  %v4182_v52 = vmul.f32 1.0614054, %v5831_v59  ;;  %v4231_v18 = vadd.f32 1.4214138, %v4215_v47  ;;  %v5833_v37 = vpop.eup %5832 }
0x11b9   : > { %v4309_v51 = vmul.f32 %v5825_v33, %v4293_v1  ;;  %v4260_v63 = vadd.f32 -0.28449672, %v4244_v41  ;;  %v4198_v40 = vadd.f32 -1.4531521, %v4182_v52  ;;  %v4247_v44 = vmul.f32 %v5829_v22, %v4231_v18  ;;  %v5835_v33 = vpop.eup %5834 }
0x11ba   : > { %v5837_v14 = vpop.eup %5836 }
0x11bb   : > { %v4389_v26 = vmul.f32 %v5833_v37, %v4309_v51  ;;  %v4276_v62 = vmul.f32 %v5827_v7, %v4260_v63  ;;  %v4214_v49 = vmul.f32 %v5831_v59, %v4198_v40  ;;  %v4263_v3 = vadd.f32 -0.28449672, %v4247_v44  ;;  %v5841_v40 = vld [vmem:[%s6097_s21] sm:$0xff]  ;;  %v5842_v44 = vld [vmem:[%s6097_s21 + $0x28] sm:$0xff] }
0x11bc   : > { %v592_v37 = vmax.f32 %v5841_v40, %v5840_v12  ;;  %v593_v46 = vmax.f32 %v5843_v50, %v5842_v44 }
0x11bd   : > { %v4292_v39 = vadd.f32 0.2548296, %v4276_v62  ;;  %v4230_v2 = vadd.f32 1.4214138, %v4214_v49  ;;  %v4405_v58 = vsub.f32 1.0, %v4389_v26  ;;  %v4279_v53 = vmul.f32 %v5829_v22, %v4263_v3  ;;  %v5844_v26 = vld [vmem:[%s6097_s21 + $0x10] sm:$0xff] }
0x11be   : > { %v5845_v62 = vld [vmem:[%s6097_s21 + $0x30] sm:$0xff]  ;;  %v5846_v3 = vld [vmem:[%s6097_s21 + $0x18] sm:$0xff]  ;;  %v596_v13 = vmax.f32 %v592_v37, %v593_v46  ;;  %s8165_s21 = sand.u32 1, %s5934_s28  }
0x11bf   : > { %v4308_v15 = vmul.f32 %v5827_v7, %v4292_v39  ;;  %v4246_v6 = vmul.f32 %v5831_v59, %v4230_v2  ;;  %v4295_v0 = vadd.f32 0.2548296, %v4279_v53  ;;  %v4437_v35 = vsub.f32 0.0, %v4405_v58  ;;  %v5839_v7 = vpop.eup %5838  ;;  %s571_s29 = scalar_lea.vmem [#allocation2], %s8165_s21  ;;  %s4728_s4 = scalar_lea.sflag [#allocation3], %s8165_s21 }
0x11c0   : > { %v594_v49 = vmax.f32 %v5844_v26, %v5845_v62  ;;  %v595_v39 = vmax.f32 %v5846_v3, %v5847_v8  ;;  %s8180_s19 = sshll.u32 %s571_s29, 4  ;;  %s4743_s19 = int_to_ptr.vmem [resolvable:$true] %s8180_s19 }
0x11c1   : > { %v4388_v10 = vmul.f32 %v5835_v33, %v4308_v15  ;;  %v4262_v9 = vadd.f32 -0.28449672, %v4246_v6  ;;  %v4311_v45 = vmul.f32 %v5829_v22, %v4295_v0  ;;  %v4453_v55 = vsel %vm4421_vm3, %v4437_v35, %v4405_v58 }
0x11c2   : > { %v4469_v23 = vadd.f32 1.0, %v4453_v55  ;;  %v4085_v22 = vmul.f32 0.5, %v8116_v60  ;;  %v597_v2 = vmax.f32 %v594_v49, %v595_v39 }
0x11c3   : > { %v4404_v38 = vsub.f32 1.0, %v4388_v10  ;;  %v4278_v11 = vmul.f32 %v5831_v59, %v4262_v9  ;;  %v4391_v32 = vmul.f32 %v5837_v14, %v4311_v45 }
0x11c4   : > { %v4485_v54 = vmul.f32 %v4469_v23, %v4085_v22  ;;  %v598_v58 = vmax.f32 %v596_v13, %v597_v2 }
0x11c5   : > { %v4294_v56 = vadd.f32 0.2548296, %v4278_v11  ;;  %v4407_v30 = vsub.f32 1.0, %v4391_v32  ;;  %v4436_v21 = vsub.f32 0.0, %v4404_v38 }
0x11c6   : > { %v599_v53 = vrot.slane %v598_v58, 4 }
0x11c7   : > { %v4310_v20 = vmul.f32 %v5831_v59, %v4294_v56  ;;  %v4439_v29 = vsub.f32 0.0, %v4407_v30  ;;  %v4452_v4 = vsel %vm4420_vm6, %v4436_v21, %v4404_v38 }
0x11c8   : > { %v4468_v41 = vadd.f32 1.0, %v4452_v4  ;;  %v600_v42 = vmax.f32 %v598_v58, %v599_v53 }
0x11c9   : > { %v4390_v57 = vmul.f32 %v5839_v7, %v4310_v20  ;;  %v4455_v43 = vsel %vm4423_vm5, %v4439_v29, %v4407_v30 }
0x11ca   : > { %v4471_v61 = vadd.f32 1.0, %v4455_v43  ;;  %v4484_v18 = vmul.f32 %v4468_v41, %v4084_v27  ;;  %v601_v15 = vrot.slane %v600_v42, 2 }
0x11cb   : > { %v4406_v47 = vsub.f32 1.0, %v4390_v57 }
0x11cc   : > { %v4487_v59 = vmul.f32 %v4471_v61, %v4087_v28  ;;  %v602_v6 = vmax.f32 %v600_v42, %v601_v15 }
0x11cd   : > { %v4438_v1 = vsub.f32 0.0, %v4406_v47 }
0x11ce   : > { %v4495_v16 = vpack.c.bf16 %v4487_v59, %v4485_v54  ;;  %v603_v33 = vrot.slane %v602_v6, 1  ;;  %v5499_v59 = vld [vmem:[%s8255_s16 + $0x1] ss:$0 sm:$0xff] }
0x11cf   : > { %v4454_v60 = vsel %vm4422_vm7, %v4438_v1, %v4406_v47 }
0x11d0   : > { %v4470_v52 = vadd.f32 1.0, %v4454_v60  ;;  %4677 = vmatmul.bf16.gmra.mxu0 %v4495_v16  ;;  %v604_v0 = vmax.f32 %v602_v6, %v603_v33 }
0x11d2   : > { %v4486_v51 = vmul.f32 %v4470_v52, %v4086_v48  ;;  %610 = vrot.lane.b32.xlu1 %v604_v0, %s8287_s20  ;;  %614 = vrot.lane.b32.xlu0 %v604_v0, %s8286_s23  ;;  %s5868_s20 = scalar_lea.hbm %s8256_s17, 2 }
0x11d3   : > { %606 = vrot.lane.b32.xlu2 %v604_v0, %s8288_s26  ;;  %v4663_v10 = vpop.f32.mrf.mxu0  ;;  %p5870_p1 = scmp.lt.s32.totalorder %s5868_s20, %s5864_s25 }
0x11d4   : > { %v4494_v63 = vpack.c.bf16 %v4486_v51, %v4484_v18 }
0x11d5   : > { %p5871_p2 = por %p5870_p1, %p5869_p0 }
0x11d6   : > { %4648 = vmatmul.bf16.gmra.mxu2 %v4494_v63 }
0x11d7   : > { %p5872_p3 = pnand %p5871_p2, %p5867_p13 }
0x11db   : > { %v4665_v35 = vpop.f32.mrf.mxu0 }
0x11de   : > { %v4634_v9 = vpop.f32.mrf.mxu2 }
0x11df   : > { %v4664_v43 = vadd.f32 %v4663_v10, %v4634_v9 }
0x11e1   : > { %v4683_v60 = vadd.f32 %v4664_v43, %v7696_v5 }
0x11e5   : > { %v4668_v14 = vpop.f32.mrf.mxu0 }
0x11e6   : > { %v4636_v45 = vpop.f32.mrf.mxu2 }
0x11e7   : > { %v4666_v29 = vadd.f32 %v4665_v35, %v4636_v45 }
0x11e9   : > { %v4684_v47 = vadd.f32 %v4666_v29, %v7701_v19 }
0x11eb   : > { %v4697_v48 = vadd.f32 %v5499_v59, %v4684_v47 }
0x11ed   : > { %v4670_v11 = vpop.f32.mrf.mxu0  ;;  %v4705_v50 = vsel %vm910_vm9, %v4697_v48, -inf }
0x11f6   : > { %v4639_v38 = vpop.f32.mrf.mxu2 }
0x11f7   : > { %v4669_v4 = vadd.f32 %v4668_v14, %v4639_v38 }
0x11f9   : > { %v4685_v16 = vadd.f32 %v4669_v4, %v7706_v25 }
0x11fb   : > { %v4698_v12 = vadd.f32 %v5499_v59, %v4685_v16 }
0x11fd   : > { %v4706_v39 = vsel %vm910_vm9, %v4698_v12, -inf }
0x11fe   : > { %v4641_v32 = vpop.f32.mrf.mxu2 }
0x11ff   : > { %v4671_v28 = vadd.f32 %v4670_v11, %v4641_v32 }
0x120e   : > { %v4673_v56 = vpop.f32.mrf.mxu0 }
0x1216   : > { %v4675_v30 = vpop.f32.mrf.mxu0 }
0x121a   : > { %v4644_v55 = vpop.f32.mrf.mxu2 }
0x121b   : > { %v4674_v57 = vadd.f32 %v4673_v56, %v4644_v55 }
0x121d   : > { %v4687_v1 = vadd.f32 %v4674_v57, %v7716_v17 }
0x121f   : > { %v4700_v51 = vadd.f32 %v5499_v59, %v4687_v1 }
0x1221   : > { %v4708_v46 = vsel %vm910_vm9, %v4700_v51, -inf }
0x1222   : > { %v4646_v21 = vpop.f32.mrf.mxu2 }
0x1223   : > { %v4676_v7 = vadd.f32 %v4675_v30, %v4646_v21 }
0x1225   : > { %v4688_v61 = vadd.f32 %v4676_v7, %v7721_v31  ;;  %v4686_v31 = vadd.f32 %v4671_v28, %v7711_v34 }
0x1227   : > { %v4701_v27 = vadd.f32 %v5499_v59, %v4688_v61  ;;  %v4699_v25 = vadd.f32 %v5499_v59, %v4686_v31 }
0x1229   : > { %v4710_v34 = vsel %vm910_vm9, %v4701_v27, -inf }
0x122a   : > { %v4711_v3 = vmax.f32 %v4705_v50, %v4710_v34 }
0x122d   : > { %v607_v54 = vpop.permute.xlu2 %606 }
0x122e   : > { %v609_v19 = vmax.f32 %v604_v0, %v607_v54 }
0x1244   : > { %v611_v5 = vpop.permute.xlu1 %610  ;;  %v615_v40 = vpop.permute.xlu0 %614 }
0x1245   : > { %v613_v44 = vmax.f32 %v609_v19, %v611_v5 }
0x1247   : > { %v617_v49 = vmax.f32 %v613_v44, %v615_v40 }
0x1249   : > { %619 = vst.msk [vmem:[%s571_s29] sm:$0x1] %vm618_vm8, %v617_v49 }
0x124d   : > { %v4678_v20 = vpop.f32.mrf.mxu0 }
0x1255   : > { %v4680_v52 = vpop.f32.mrf.mxu0 }
0x1259   : > { %v4649_v23 = vpop.f32.mrf.mxu2 }
0x125a   : > { %v4679_v22 = vadd.f32 %v4678_v20, %v4649_v23 }
0x125c   : > { %v4689_v41 = vadd.f32 %v4679_v22, %v7726_v24  ;;  %v4696_v24 = vadd.f32 %v5499_v59, %v4683_v60 }
0x125e   : > { %v4702_v17 = vadd.f32 %v5499_v59, %v4689_v41  ;;  %v4704_v8 = vsel %vm910_vm9, %v4696_v24, -inf }
0x125f   : > { %v4709_v2 = vmax.f32 %v4704_v8, %v4708_v46 }
0x1260   : > { %v4712_v26 = vsel %vm910_vm9, %v4702_v17, -inf }
0x1261   : > { %v4651_v18 = vpop.f32.mrf.mxu2  ;;  %v4713_v58 = vmax.f32 %v4706_v39, %v4712_v26 }
0x1262   : > { %v4681_v63 = vadd.f32 %v4680_v52, %v4651_v18 }
0x1264   : > { %v4690_v37 = vadd.f32 %v4681_v63, %v7739_v36  ;;  %v4707_v36 = vsel %vm910_vm9, %v4699_v25, -inf }
0x1266   : > { %v4703_v62 = vadd.f32 %v5499_v59, %v4690_v37 }
0x1268   : > { %v4714_v13 = vsel %vm910_vm9, %v4703_v62, -inf }
0x1269   : > { %v4715_v53 = vmax.f32 %v4707_v36, %v4714_v13 }
0x126a   : > { %5875 = shalt.err (!%p5872_p3)
}
0x126b   : > { %5397 = dma.vmem_to_hbm [thread:$0]  (%p6082_p5), %s4743_s19, 16, %s4745_s1, %s4728_s4   ;;  %v4716_v42 = vmax.f32 %v4709_v2, %v4711_v3  ;;  %v4717_v15 = vmax.f32 %v4713_v58, %v4715_v53  ;;  %vm4725_vm9 = vcmask 516096  }
0x126c   : > { %s4753_s27 = scalar_lea.hbm %s8257_s18, %s6065_s0  ;;  %s577_s25 = scalar_lea.vmem [#allocation4], %s8165_s21 }
0x126d   : > { %v4718_v6 = vmax.f32 %v4716_v42, %v4717_v15  ;;  %s4755_s3 = sshll.u32 %s577_s25, 4  ;;  %s4757_s23 = sshll.u32 %s4753_s27, 4  ;;  %s4756_s3 = int_to_ptr.vmem [resolvable:$true] %s4755_s3  ;;  %s4758_s23 = int_to_ptr.hbm [resolvable:$true] %s4757_s23 }
0x126e   : > { %s4732_s19 = scalar_lea.sflag [#allocation5], %s8165_s21  ;;  %s5890_s1 = sshra.s32 %s4758_s23, 4  ;;  %s5891_s1 = int_to_ptr.hbm [resolvable:$true] %s5890_s1 }
0x126f   : > { %v4719_v33 = vrot.slane %v4718_v6, 4  ;;  %s5892_s4 = scalar_lea.hbm %s5891_s1, 1  ;;  %s5896_s26 = scalar_lea.hbm %s8257_s18, 2 }
0x1270   : > { %p5893_p4 = scmp.ne.s32.totalorder %s5891_s1, %s5892_s4  ;;  %p5897_p9 = scmp.lt.s32.totalorder %s5891_s1, %s8257_s18 }
0x1271   : > { %v4720_v0 = vmax.f32 %v4718_v6, %v4719_v33  ;;  %p5898_p10 = scmp.lt.s32.totalorder %s5896_s26, %s5892_s4 }
0x1272   : > { %p5894_p7 = pnand %p5893_p4, %p6082_p5 }
0x1273   : > { %v4721_v10 = vrot.slane %v4720_v0, 2  ;;  %p5899_p11 = por %p5898_p10, %p5897_p9 }
0x1274   : > { %p5895_p8 = pneg %p5894_p7 }
0x1275   : > { %v4722_v9 = vmax.f32 %v4720_v0, %v4721_v10 }
0x1276   : > { %p5900_p12 = pnand %p5899_p11, %p5895_p8 }
0x1277   : > { %v4723_v35 = vrot.slane %v4722_v9, 1 }
0x1279   : > { %v4724_v45 = vmax.f32 %v4722_v9, %v4723_v35 }
0x127b   : > { %4726 = vst.msk [vmem:[%s577_s25] sm:$0x1] %vm4725_vm9, %v4724_v45 }
0x127c   : > { %5903 = shalt.err (!%p5900_p12)
}
0x127d   : > { %5398 = dma.vmem_to_hbm [thread:$0]  (%p6082_p5), %s4756_s3, 16, %s4758_s23, %s4732_s19  }
0x127e PF: > { %s8289_s21 = sld [smem:[#allocation8_spill]]  ;;  %p5408_p13 = scmp.ge.s32.totalorder %s5942_s30, 2 }
0x1280   : > { %p5402_p0 = pnand %p5408_p13, %p6086_p6 }
0x1282   : > { %p5403_p1 = pneg %p5402_p0 }
0x1284   : > { %s4769_s27 = sand.u32 1, %s8289_s21  }
0x1285   : > { %s4770_s25 = scalar_lea.sflag [#allocation3], %s4769_s27 }
0x1286   : > { %5921 = dma.done.wait (%p5403_p1), %s4770_s25, 16  }
0x1287   : > { %5923 = vsyncadd (%p5403_p1), %s4770_s25, 4294967280  ;;  %s4779_s1 = scalar_lea.sflag [#allocation5], %s4769_s27 }
0x1288   : > { %5925 = dma.done.wait (%p5403_p1), %s4779_s1, 16  }
0x1289   : > { %5927 = vsyncadd (%p5403_p1), %s4779_s1, 4294967280  ;;  %s8291_s30 = sld [smem:[#allocation10_spill]]  ;;  %s8294_s27 = smov %s5934_s28 }
0x128a   : > { %s8292_s4 = sld [smem:[#allocation9_spill]] }
0x128b   : > { %s8293_s29 = sld [smem:[#allocation11_spill]] }
0x128f   : > { %p32_p5 = scmp.ge.s32.totalorder %s8291_s30, 4  }
0x1290   : > { %s8295_s28 = smov %s8292_s4 }
0x1291   :  { %34 = sbr.rel (!%p32_p5) target bundleno = 11 (0xb), region = 153 }
0x1296   :  { %4784 = vsyncpa [#allocation3], 1 }
0x1297   :  { %4786 = vsyncpa [#allocation3 + $0x1], 1 }
0x1298   :  { %4787 = vsyncpa [#allocation5], 1 }
0x1299   :  { %4789 = vsyncpa [#allocation5 + $0x1], 1 }

</bundles_post_ra>
